<compile_context>
chip_gen: v7x
topology: tpu7x:2x2x1
jax: 0.10.0
libtpu: 0.0.40
codegen_flags: <defaults>
</compile_context>

<pallas_src>
import functools
import math

import jax
import jax.numpy as jnp
from jax.experimental import pallas as pl
from jax.experimental.pallas import tpu as pltpu


# ------------------------------ fused kernel -------------------------------

def _fused_loss_kernel(
    logits_ref, gum_ref, segm_ref, ein_ref, emk_ref,      # inputs
    out_ref,                                              # (1, 128) output
    hist_seg, hist_att, lp_seg, lp_att, ey_buf,           # (C, S, 128) scratch
    cntC,                                                 # (2, S, 128) label==C counts
    u_sum, u_hit, g_max, hit_cnt,                         # (S, 128) dual-task scratch
    pos_cnt, neg_cnt, pos_bce, neg_bce,                   # (S, 128) BCE scratch
    *, num_classes, upper_bound, total_dual, total_edge, lo_const,
    hw_valid, lanes_per_tile, padded):
  C = num_classes
  f32 = jnp.float32
  i = pl.program_id(0)
  t = pl.program_id(1)
  is_first = (i == 0) & (t == 0)
  is_last = (i == pl.num_programs(0) - 1) & (t == pl.num_programs(1) - 1)

  tgt = segm_ref[0]                       # (S, 128) int32 labels
  ein = ein_ref[0].astype(f32)            # (S, 128) edge logits
  emk = emk_ref[0].astype(f32)            # (S, 128) edge labels {0,1} (2.0 = pad/ignore)
  S = tgt.shape[0]

  @pl.when(is_first)
  def _init():
    hist_seg[...] = jnp.zeros_like(hist_seg)
    hist_att[...] = jnp.zeros_like(hist_att)
    lp_seg[...] = jnp.zeros_like(lp_seg)
    lp_att[...] = jnp.zeros_like(lp_att)
    cntC[...] = jnp.zeros_like(cntC)
    u_sum[...] = jnp.zeros_like(u_sum)
    u_hit[...] = jnp.zeros_like(u_hit)
    g_max[...] = jnp.zeros_like(g_max)
    hit_cnt[...] = jnp.zeros_like(hit_cnt)
    pos_cnt[...] = jnp.zeros_like(pos_cnt)
    neg_cnt[...] = jnp.zeros_like(neg_cnt)
    pos_bce[...] = jnp.zeros_like(pos_bce)
    neg_bce[...] = jnp.zeros_like(neg_bce)

  ign5 = tgt == 5                                          # dual-task ignore (reference value)
  t_att = jnp.where(ein > 0.8, tgt, jnp.int32(255))        # attention target (in-kernel)

  if padded:
    sub = jax.lax.broadcasted_iota(jnp.int32, (S, 128), 0)
    lane = jax.lax.broadcasted_iota(jnp.int32, (S, 128), 1)
    pix = t * lanes_per_tile + sub * 128 + lane
    valid = (pix < hw_valid).astype(f32)
  else:
    valid = None

  def load_x(cc):
    return logits_ref[0, cc].astype(f32)

  def load_y(cc, xc):
    gc = gum_ref[0, cc].astype(f32)
    return 2.0 * (jnp.where(ign5, 0.0, xc) + gc)           # (logits+gumbel)/tau, tau=0.5

  # ---- pass 1 over classes: running maxes of the two softmax arguments ----
  x0 = load_x(0)
  m1 = x0
  my = load_y(0, x0)
  for cc in range(1, C):
    xc = load_x(cc)
    m1 = jnp.maximum(m1, xc)
    my = jnp.maximum(my, load_y(cc, xc))

  # ---- pass 2: exp sums (EUP); stash gumbel exps so they are not recomputed ----
  sx = jnp.zeros((S, 128), f32)
  sy = jnp.zeros((S, 128), f32)
  for cc in range(C):
    xc = load_x(cc)
    sx = sx + jnp.exp(xc - m1)
    eyc = jnp.exp(load_y(cc, xc) - my)
    ey_buf[cc] = eyc
    sy = sy + eyc

  lse = m1 + jnp.log(sx)                         # shared log-softmax denominator
  inv = pl.reciprocal(sy, approx=True)           # gumbel-softmax denominator (EUP slot)
  g_pk = inv                                     # per-pixel max softmax prob == 1/sum(exp)

  # ---- pass 3: per-class accumulation (NLL stats + dual-task sums) ----
  u_tot = jnp.zeros((S, 128), f32)
  u_at = jnp.zeros((S, 128), f32)
  hit_any = jnp.zeros((S, 128), f32)
  u0 = None
  for cc in range(C):
    xc = load_x(cc)
    logsm_c = xc - lse
    oh_c = (tgt == cc).astype(f32)
    oha_c = (t_att == cc).astype(f32)
    hist_seg[cc] = hist_seg[cc] + oh_c
    hist_att[cc] = hist_att[cc] + oha_c
    lp_seg[cc] = lp_seg[cc] + oh_c * logsm_c
    lp_att[cc] = lp_att[cc] + oha_c * logsm_c
    g_c = ey_buf[cc] * inv
    u_c = jnp.sqrt(2.0 * g_c * g_c + 1e-6)
    if cc == 0:
      u0 = u_c
    u_tot = u_tot + u_c
    u_at = u_at + oh_c * u_c
    hit_any = hit_any + oh_c

  # ignored (==5) pixels use class 0 as the one-hot target (reference semantics)
  u_at = jnp.where(ign5, u0, u_at)
  hitm = jnp.where(ign5, 1.0, hit_any)
  if padded:
    u_tot = u_tot * valid
    u_at = u_at * valid
    hitm = hitm * valid
    g_pk = g_pk * valid
  u_sum[...] += u_tot
  u_hit[...] += u_at
  hit_cnt[...] += hitm
  g_max[...] = jnp.maximum(g_max[...], g_pk)

  # np.histogram fold: labels exactly == C count toward the last bin
  cntC[0] = cntC[0] + (tgt == C).astype(f32)
  cntC[1] = cntC[1] + (t_att == C).astype(f32)

  # ---- class-balanced edge BCE partial sums (pad/ignore labels > 1 excluded) ----
  posm = (emk == 1.0).astype(f32)
  negm = (emk == 0.0).astype(f32)
  bce = (jnp.maximum(ein, 0.0) - ein * emk
         + jnp.log(1.0 + jnp.exp(-jnp.abs(ein))))
  pos_cnt[...] += posm
  neg_cnt[...] += negm
  pos_bce[...] += posm * bce
  neg_bce[...] += negm * bce

  # ------------------------ finalize on the last step ---------------------
  @pl.when(is_last)
  def _finalize():
    def nll_loss(hist_ref, lp_ref, cfold):
      cnts = [jnp.sum(hist_ref[cc], keepdims=True) for cc in range(C)]
      lps = [jnp.sum(lp_ref[cc], keepdims=True) for cc in range(C)]
      folds = []
      for cc in range(C):
        fcnt = cnts[cc]
        if cc == C - 1:
          fcnt = fcnt + cfold
        folds.append(fcnt)
      total = folds[0]
      for cc in range(1, C):
        total = total + folds[cc]
      num = jnp.zeros((1, 1), jnp.float32)
      den = jnp.zeros((1, 1), jnp.float32)
      for cc in range(C):
        hfrac = folds[cc] / total
        cw = jnp.where(folds[cc] != 0.0, upper_bound * (1.0 - hfrac), 0.0) + 1.0
        num = num + cw * lps[cc]
        den = den + cw * cnts[cc]
      return -num / den

    cf_s = jnp.sum(cntC[0], keepdims=True)
    cf_a = jnp.sum(cntC[1], keepdims=True)
    seg_l = nll_loss(hist_seg, lp_seg, cf_s)
    att_l = nll_loss(hist_att, lp_att, cf_a)

    pc = jnp.sum(pos_cnt[...], keepdims=True)
    nc = jnp.sum(neg_cnt[...], keepdims=True)
    pb = jnp.sum(pos_bce[...], keepdims=True)
    nb = jnp.sum(neg_bce[...], keepdims=True)
    edge_l = (nc * pb + pc * nb) / (pc + nc) / total_edge

    # dual loss: separable |gmag-hmag| (masks >=1e-8 are provably all-ones).
    gm = jnp.max(g_max[...], keepdims=True)                # global max softmax prob
    big_m = jnp.sqrt(2.0 * gm * gm + 1e-6)                 # global max of u (exact)
    su = jnp.sum(u_sum[...], keepdims=True)
    sh = jnp.sum(u_hit[...], keepdims=True)
    nh = jnp.sum(hit_cnt[...], keepdims=True)
    dual_sum = nh - (total_dual - nh) * lo_const + (su - 2.0 * sh) / big_m
    dual_l = dual_sum / (total_dual + 1e-10)

    lanevec = jax.lax.broadcasted_iota(jnp.int32, out_ref.shape, 1)
    out_ref[...] = (jnp.where(lanevec == 0, seg_l, 0.0)
                    + jnp.where(lanevec == 1, edge_l, 0.0)
                    + jnp.where(lanevec == 2, att_l, 0.0)
                    + jnp.where(lanevec == 3, dual_l, 0.0))


# ------------------------------- JAX wrapper --------------------------------

def _pick_tile(hw, max_sublanes=64):
  """Return (S sublanes per tile, padded row count); rows are 128-lane groups."""
  rows = -(-hw // 128)
  if rows <= max_sublanes:
    return rows, rows                       # one tile per image (block == full extent)
  s = max_sublanes                          # multiple of 8
  rows_pad = -(-rows // s) * s
  return s, rows_pad


def joint_edge_seg_loss(segin, edgein, segmask, edgemask, gumbel_noise,
                        num_classes, seg_weight=1.0, edge_weight=1.0,
                        att_weight=1.0, dual_weight=1.0, upper_bound=1.0):
  n, c, h, w = segin.shape
  assert c == num_classes
  hw = h * w
  s_tile, rows_pad = _pick_tile(hw)
  hw_pad = rows_pad * 128
  n_tiles = rows_pad // s_tile
  padded = (hw_pad != hw)

  # Pure reshapes of the NCHW tensors (no transpose, no dtype upcast; bf16 logits
  # are supported and cast to f32 inside the kernel).
  logits = segin.reshape(n, c, hw)
  gum = gumbel_noise.reshape(n, c, hw)
  segm = segmask.reshape(n, hw).astype(jnp.int32)
  ein = edgein.reshape(n, hw)
  emk = edgemask.reshape(n, hw)
  if padded:
    pad = hw_pad - hw
    logits = jnp.pad(logits, ((0, 0), (0, 0), (0, pad)))
    gum = jnp.pad(gum, ((0, 0), (0, 0), (0, pad)))
    segm = jnp.pad(segm, ((0, 0), (0, pad)), constant_values=255)   # NLL/hist ignore
    ein = jnp.pad(ein, ((0, 0), (0, pad)))
    emk = jnp.pad(emk, ((0, 0), (0, pad)), constant_values=2.0)     # BCE ignore
  logits = logits.reshape(n, c, rows_pad, 128)
  gum = gum.reshape(n, c, rows_pad, 128)
  segm = segm.reshape(n, rows_pad, 128)
  ein = ein.reshape(n, rows_pad, 128)
  emk = emk.reshape(n, rows_pad, 128)

  kernel = functools.partial(
      _fused_loss_kernel,
      num_classes=c,
      upper_bound=float(upper_bound),
      total_dual=float(n * c * hw),
      total_edge=float(n * hw),
      lo_const=math.sqrt(1e-6) / math.sqrt(2.0 + 1e-6),
      hw_valid=hw,
      lanes_per_tile=s_tile * 128,
      padded=padded)

  heavy_map = lambda i, t: (i, 0, t, 0)
  small_map = lambda i, t: (i, t, 0)
  grid_spec = pltpu.PrefetchScalarGridSpec(
      num_scalar_prefetch=0,
      grid=(n, n_tiles),                              # (image, pixel tile) — single pass
      in_specs=[
          pl.BlockSpec((1, c, s_tile, 128), heavy_map),   # seg logits
          pl.BlockSpec((1, c, s_tile, 128), heavy_map),   # gumbel noise
          pl.BlockSpec((1, s_tile, 128), small_map),      # seg labels
          pl.BlockSpec((1, s_tile, 128), small_map),      # edge logits
          pl.BlockSpec((1, s_tile, 128), small_map),      # edge labels
      ],
      out_specs=pl.BlockSpec((1, 128), lambda i, t: (0, 0)),
      scratch_shapes=[
          pltpu.VMEM((c, s_tile, 128), jnp.float32),      # hist_seg
          pltpu.VMEM((c, s_tile, 128), jnp.float32),      # hist_att
          pltpu.VMEM((c, s_tile, 128), jnp.float32),      # lp_seg
          pltpu.VMEM((c, s_tile, 128), jnp.float32),      # lp_att
          pltpu.VMEM((c, s_tile, 128), jnp.float32),      # ey_buf (gumbel exps)
          pltpu.VMEM((2, s_tile, 128), jnp.float32),      # cntC (labels == C)
          pltpu.VMEM((s_tile, 128), jnp.float32),         # u_sum
          pltpu.VMEM((s_tile, 128), jnp.float32),         # u_hit
          pltpu.VMEM((s_tile, 128), jnp.float32),         # g_max
          pltpu.VMEM((s_tile, 128), jnp.float32),         # hit_cnt
          pltpu.VMEM((s_tile, 128), jnp.float32),         # pos_cnt
          pltpu.VMEM((s_tile, 128), jnp.float32),         # neg_cnt
          pltpu.VMEM((s_tile, 128), jnp.float32),         # pos_bce
          pltpu.VMEM((s_tile, 128), jnp.float32),         # neg_bce
      ],
  )

  # VMEM budget derived from the actual buffer math (double-buffered inputs + scratch),
  # clamped to stay comfortably inside v7x's 64 MiB physical VMEM.
  itemsize = jnp.dtype(logits.dtype).itemsize
  vmem_bytes = (2 * 2 * c * s_tile * 128 * itemsize        # logits + gumbel, 2 buffers
                + 3 * 2 * s_tile * 128 * 4                 # small inputs, 2 buffers
                + (5 * c + 10) * s_tile * 128 * 4          # scratch accumulators
                + (2 << 20))                               # slack
  vmem_limit = int(min(max(vmem_bytes, 8 << 20), 48 << 20))

  out = pl.pallas_call(
      kernel,
      out_shape=jax.ShapeDtypeStruct((1, 128), jnp.float32),
      grid_spec=grid_spec,
      compiler_params=pltpu.CompilerParams(
          # Scratch accumulators are shared across the whole grid -> sequential.
          dimension_semantics=("arbitrary", "arbitrary"),
          vmem_limit_bytes=vmem_limit),
  )(logits, gum, segm, ein, emk)

  seg, edge, att, dual = out[0, 0], out[0, 1], out[0, 2], out[0, 3]
  return {
      'seg_loss': seg_weight * seg,
      'edge_loss': edge_weight * 20.0 * edge,
      'att_loss': att_weight * att,
      'dual_loss': dual_weight * dual,
  }


# --------------------------- pure-JAX reference -----------------------------

def _calc_class_weights_ref(target, num_classes, upper_bound=1.0):
  flat = target.reshape(-1)
  oh = jax.nn.one_hot(flat, num_classes + 1, dtype=jnp.float32)
  counts = jnp.sum(oh, axis=0)
  counts = counts.at[num_classes - 1].add(counts[num_classes])
  counts = counts[:num_classes]
  hist = counts / jnp.sum(counts)
  return (hist != 0).astype(jnp.float32) * upper_bound * (1.0 - hist) + 1.0


def _ref_losses(segin, edgein, segmask, edgemask, gumbel, num_classes):
  c = num_classes

  def nll(logits, tgt, cw):
    logsm = jax.nn.log_softmax(logits, axis=1)
    t = tgt[:, 0]
    valid = (t != 255)
    tc = jnp.clip(t, 0, c - 1)
    lp = jnp.take_along_axis(logsm, tc[:, None, :, :], axis=1)[:, 0]
    w = cw[tc]
    num = jnp.sum(jnp.where(valid, w * lp, 0.0))
    den = jnp.sum(jnp.where(valid, w, 0.0))
    return -num / den

  seg = nll(segin, segmask, _calc_class_weights_ref(segmask, c))

  x = edgein.reshape(-1)
  t = edgemask.reshape(-1)
  pos = (t == 1.0).astype(jnp.float32)
  neg = (t == 0.0).astype(jnp.float32)
  pn, ng = jnp.sum(pos), jnp.sum(neg)
  wgt = pos * (ng / (pn + ng)) + neg * (pn / (pn + ng))
  bce = jnp.maximum(x, 0.0) - x * t + jnp.log(1.0 + jnp.exp(-jnp.abs(x)))
  edge = jnp.sum(wgt * bce) / x.size

  tgt_att = jnp.where(edgein > 0.8, segmask, jnp.int32(255))
  att = nll(segin, tgt_att, _calc_class_weights_ref(tgt_att, c))

  ign = (segmask == 5)
  xl = jnp.where(jnp.broadcast_to(ign, segin.shape), 0.0, segin)
  t0 = jnp.where(ign, 0, segmask)[:, 0]
  onehot = jax.nn.one_hot(t0, c, axis=1, dtype=jnp.float32)
  g = jax.nn.softmax((xl + gumbel) / 0.5, axis=1)
  gmag = jnp.sqrt(2.0 * g * g + 1e-6)
  gmag = gmag / jnp.max(gmag)
  hmag = jnp.sqrt(2.0 * onehot * onehot + 1e-6)
  hmag = hmag / jnp.max(hmag)
  l1 = jnp.abs(gmag - hmag)
  mg = (gmag >= 1e-8).astype(jnp.float32)
  mh = (hmag >= 1e-8).astype(jnp.float32)
  dual = (0.5 * jnp.sum(l1 * mg) / (jnp.sum(mg) + 1e-10)
          + 0.5 * jnp.sum(l1 * mh) / (jnp.sum(mh) + 1e-10))

  return {'seg_loss': seg, 'edge_loss': 20.0 * edge,
          'att_loss': att, 'dual_loss': dual}


# ----------------------------------- main -----------------------------------

if __name__ == "__main__":
  key = jax.random.PRNGKey(0)
  k1, k2, k3, k4, k5 = jax.random.split(key, 5)
  N, C, H, W = 2, 4, 16, 16

  segin = jax.random.normal(k1, (N, C, H, W), jnp.float32)            # seg logits
  edgein = jax.random.normal(k2, (N, 1, H, W), jnp.float32)           # edge logits
  segmask = jax.random.randint(k3, (N, 1, H, W), 0, C, jnp.int32)     # class labels
  edgemask = jax.random.bernoulli(k4, 0.3, (N, 1, H, W)).astype(jnp.float32)

  # Gumbel(0,1) noise for the gumbel-softmax sample (the only stochastic part).
  # TODO(synk): torch.rand's exact RNG stream is not reproducible in JAX; we draw
  # deterministic noise from PRNGKey(0) and feed it in as an input.
  eps = 1e-10
  U = jax.random.uniform(k5, (N, C, H, W), jnp.float32)
  gumbel = -jnp.log(eps - jnp.log(U + eps))

  losses = joint_edge_seg_loss(segin, edgein, segmask, edgemask, gumbel, C)
  losses = jax.block_until_ready(losses)

  ref = _ref_losses(segin, edgein, segmask, edgemask, gumbel, C)
  for name in ('seg_loss', 'edge_loss', 'att_loss', 'dual_loss'):
    got = float(losses[name])
    want = float(ref[name])
    assert jnp.isfinite(losses[name]), name
    # 2e-3 tolerance: the dual path uses the EUP approx reciprocal (~1e-4 rel).
    assert abs(got - want) <= 2e-3 * (1.0 + abs(want)), (name, got, want)

  print("KERNEL_OK")
</pallas_src>

<mosaic_0001>
module attributes {stable_mosaic.version = 11 : i64} {
  func.func @_fused_loss_kernel(%arg0: i32, %arg1: i32, %arg2: memref<1x4x2x128xf32, #tpu.memory_space<vmem>>, %arg3: memref<1x4x2x128xf32, #tpu.memory_space<vmem>>, %arg4: memref<1x2x128xi32, #tpu.memory_space<vmem>>, %arg5: memref<1x2x128xf32, #tpu.memory_space<vmem>>, %arg6: memref<1x2x128xf32, #tpu.memory_space<vmem>>, %arg7: memref<1x128xf32, #tpu.memory_space<vmem>>, %arg8: memref<4x2x128xf32, #tpu.memory_space<vmem>>, %arg9: memref<4x2x128xf32, #tpu.memory_space<vmem>>, %arg10: memref<4x2x128xf32, #tpu.memory_space<vmem>>, %arg11: memref<4x2x128xf32, #tpu.memory_space<vmem>>, %arg12: memref<4x2x128xf32, #tpu.memory_space<vmem>>, %arg13: memref<2x2x128xf32, #tpu.memory_space<vmem>>, %arg14: memref<2x128xf32, #tpu.memory_space<vmem>>, %arg15: memref<2x128xf32, #tpu.memory_space<vmem>>, %arg16: memref<2x128xf32, #tpu.memory_space<vmem>>, %arg17: memref<2x128xf32, #tpu.memory_space<vmem>>, %arg18: memref<2x128xf32, #tpu.memory_space<vmem>>, %arg19: memref<2x128xf32, #tpu.memory_space<vmem>>, %arg20: memref<2x128xf32, #tpu.memory_space<vmem>>, %arg21: memref<2x128xf32, #tpu.memory_space<vmem>>) attributes {dimension_semantics = [#tpu.dimension_semantics<arbitrary>, #tpu.dimension_semantics<arbitrary>], iteration_bounds = array<i64: 2, 1>, scalar_prefetch = 0 : i64, scratch_operands = 14 : i64, tpu.core_type = #tpu.core_type<tc>, window_params = [{transform_indices = @transform_0, window_bounds = array<i64: 1, 4, 2, 128>}, {transform_indices = @transform_1, window_bounds = array<i64: 1, 4, 2, 128>}, {transform_indices = @transform_2, window_bounds = array<i64: 1, 2, 128>}, {transform_indices = @transform_3, window_bounds = array<i64: 1, 2, 128>}, {transform_indices = @transform_4, window_bounds = array<i64: 1, 2, 128>}, {pipeline_mode = #tpu.pipeline_mode<synchronous>, transform_indices = @transform_5, window_bounds = array<i64: 1, 128>}]} {
    %c0_i32 = arith.constant 0 : i32
    %0 = arith.cmpi eq, %arg0, %c0_i32 : i32
    %c0_i32_0 = arith.constant 0 : i32
    %1 = arith.cmpi eq, %arg1, %c0_i32_0 : i32
    %2 = arith.andi %0, %1 : i1
    %c1_i32 = arith.constant 1 : i32
    %3 = arith.cmpi eq, %arg0, %c1_i32 : i32
    %c0_i32_1 = arith.constant 0 : i32
    %4 = arith.cmpi eq, %arg1, %c0_i32_1 : i32
    %5 = arith.andi %3, %4 : i1
    %c0 = arith.constant 0 : index
    %c0_2 = arith.constant 0 : index
    %c0_3 = arith.constant 0 : index
    %6 = vector.load %arg4[%c0, %c0_2, %c0_3] : memref<1x2x128xi32, #tpu.memory_space<vmem>>, vector<1x2x128xi32>
    %7 = vector.shape_cast %6 : vector<1x2x128xi32> to vector<2x128xi32>
    %c0_4 = arith.constant 0 : index
    %c0_5 = arith.constant 0 : index
    %c0_6 = arith.constant 0 : index
    %8 = vector.load %arg5[%c0_4, %c0_5, %c0_6] : memref<1x2x128xf32, #tpu.memory_space<vmem>>, vector<1x2x128xf32>
    %9 = vector.shape_cast %8 : vector<1x2x128xf32> to vector<2x128xf32>
    %c0_7 = arith.constant 0 : index
    %c0_8 = arith.constant 0 : index
    %c0_9 = arith.constant 0 : index
    %10 = vector.load %arg6[%c0_7, %c0_8, %c0_9] : memref<1x2x128xf32, #tpu.memory_space<vmem>>, vector<1x2x128xf32>
    %11 = vector.shape_cast %10 : vector<1x2x128xf32> to vector<2x128xf32>
    %12 = arith.extui %2 : i1 to i32
    %c0_i32_10 = arith.constant 0 : i32
    %13 = arith.cmpi ne, %12, %c0_i32_10 : i32
    scf.if %13 {
      %cst_295 = arith.constant 0.000000e+00 : f32
      %413 = vector.broadcast %cst_295 : f32 to vector<4x2x128xf32>
      %c0_296 = arith.constant 0 : index
      %c0_297 = arith.constant 0 : index
      %c0_298 = arith.constant 0 : index
      %414 = vector.load %arg8[%c0_296, %c0_297, %c0_298] : memref<4x2x128xf32, #tpu.memory_space<vmem>>, vector<4x2x128xf32>
      tpu.vector_store %arg8[%c0_296, %c0_297, %c0_298], %413 {strides = array<i32>} : memref<4x2x128xf32, #tpu.memory_space<vmem>>, vector<4x2x128xf32>,
      %cst_299 = arith.constant 0.000000e+00 : f32
      %415 = vector.broadcast %cst_299 : f32 to vector<4x2x128xf32>
      %c0_300 = arith.constant 0 : index
      %c0_301 = arith.constant 0 : index
      %c0_302 = arith.constant 0 : index
      %416 = vector.load %arg9[%c0_300, %c0_301, %c0_302] : memref<4x2x128xf32, #tpu.memory_space<vmem>>, vector<4x2x128xf32>
      tpu.vector_store %arg9[%c0_300, %c0_301, %c0_302], %415 {strides = array<i32>} : memref<4x2x128xf32, #tpu.memory_space<vmem>>, vector<4x2x128xf32>,
      %cst_303 = arith.constant 0.000000e+00 : f32
      %417 = vector.broadcast %cst_303 : f32 to vector<4x2x128xf32>
      %c0_304 = arith.constant 0 : index
      %c0_305 = arith.constant 0 : index
      %c0_306 = arith.constant 0 : index
      %418 = vector.load %arg10[%c0_304, %c0_305, %c0_306] : memref<4x2x128xf32, #tpu.memory_space<vmem>>, vector<4x2x128xf32>
      tpu.vector_store %arg10[%c0_304, %c0_305, %c0_306], %417 {strides = array<i32>} : memref<4x2x128xf32, #tpu.memory_space<vmem>>, vector<4x2x128xf32>,
      %cst_307 = arith.constant 0.000000e+00 : f32
      %419 = vector.broadcast %cst_307 : f32 to vector<4x2x128xf32>
      %c0_308 = arith.constant 0 : index
      %c0_309 = arith.constant 0 : index
      %c0_310 = arith.constant 0 : index
      %420 = vector.load %arg11[%c0_308, %c0_309, %c0_310] : memref<4x2x128xf32, #tpu.memory_space<vmem>>, vector<4x2x128xf32>
      tpu.vector_store %arg11[%c0_308, %c0_309, %c0_310], %419 {strides = array<i32>} : memref<4x2x128xf32, #tpu.memory_space<vmem>>, vector<4x2x128xf32>,
      %cst_311 = arith.constant 0.000000e+00 : f32
      %421 = vector.broadcast %cst_311 : f32 to vector<2x2x128xf32>
      %c0_312 = arith.constant 0 : index
      %c0_313 = arith.constant 0 : index
      %c0_314 = arith.constant 0 : index
      %422 = vector.load %arg13[%c0_312, %c0_313, %c0_314] : memref<2x2x128xf32, #tpu.memory_space<vmem>>, vector<2x2x128xf32>
      tpu.vector_store %arg13[%c0_312, %c0_313, %c0_314], %421 {strides = array<i32>} : memref<2x2x128xf32, #tpu.memory_space<vmem>>, vector<2x2x128xf32>,
      %cst_315 = arith.constant 0.000000e+00 : f32
      %423 = vector.broadcast %cst_315 : f32 to vector<2x128xf32>
      %c0_316 = arith.constant 0 : index
      %c0_317 = arith.constant 0 : index
      %424 = vector.load %arg14[%c0_316, %c0_317] : memref<2x128xf32, #tpu.memory_space<vmem>>, vector<2x128xf32>
      tpu.vector_store %arg14[%c0_316, %c0_317], %423 {strides = array<i32>} : memref<2x128xf32, #tpu.memory_space<vmem>>, vector<2x128xf32>,
      %cst_318 = arith.constant 0.000000e+00 : f32
      %425 = vector.broadcast %cst_318 : f32 to vector<2x128xf32>
      %c0_319 = arith.constant 0 : index
      %c0_320 = arith.constant 0 : index
      %426 = vector.load %arg15[%c0_319, %c0_320] : memref<2x128xf32, #tpu.memory_space<vmem>>, vector<2x128xf32>
      tpu.vector_store %arg15[%c0_319, %c0_320], %425 {strides = array<i32>} : memref<2x128xf32, #tpu.memory_space<vmem>>, vector<2x128xf32>,
      %cst_321 = arith.constant 0.000000e+00 : f32
      %427 = vector.broadcast %cst_321 : f32 to vector<2x128xf32>
      %c0_322 = arith.constant 0 : index
      %c0_323 = arith.constant 0 : index
      %428 = vector.load %arg16[%c0_322, %c0_323] : memref<2x128xf32, #tpu.memory_space<vmem>>, vector<2x128xf32>
      tpu.vector_store %arg16[%c0_322, %c0_323], %427 {strides = array<i32>} : memref<2x128xf32, #tpu.memory_space<vmem>>, vector<2x128xf32>,
      %cst_324 = arith.constant 0.000000e+00 : f32
      %429 = vector.broadcast %cst_324 : f32 to vector<2x128xf32>
      %c0_325 = arith.constant 0 : index
      %c0_326 = arith.constant 0 : index
      %430 = vector.load %arg17[%c0_325, %c0_326] : memref<2x128xf32, #tpu.memory_space<vmem>>, vector<2x128xf32>
      tpu.vector_store %arg17[%c0_325, %c0_326], %429 {strides = array<i32>} : memref<2x128xf32, #tpu.memory_space<vmem>>, vector<2x128xf32>,
      %cst_327 = arith.constant 0.000000e+00 : f32
      %431 = vector.broadcast %cst_327 : f32 to vector<2x128xf32>
      %c0_328 = arith.constant 0 : index
      %c0_329 = arith.constant 0 : index
      %432 = vector.load %arg18[%c0_328, %c0_329] : memref<2x128xf32, #tpu.memory_space<vmem>>, vector<2x128xf32>
      tpu.vector_store %arg18[%c0_328, %c0_329], %431 {strides = array<i32>} : memref<2x128xf32, #tpu.memory_space<vmem>>, vector<2x128xf32>,
      %cst_330 = arith.constant 0.000000e+00 : f32
      %433 = vector.broadcast %cst_330 : f32 to vector<2x128xf32>
      %c0_331 = arith.constant 0 : index
      %c0_332 = arith.constant 0 : index
      %434 = vector.load %arg19[%c0_331, %c0_332] : memref<2x128xf32, #tpu.memory_space<vmem>>, vector<2x128xf32>
      tpu.vector_store %arg19[%c0_331, %c0_332], %433 {strides = array<i32>} : memref<2x128xf32, #tpu.memory_space<vmem>>, vector<2x128xf32>,
      %cst_333 = arith.constant 0.000000e+00 : f32
      %435 = vector.broadcast %cst_333 : f32 to vector<2x128xf32>
      %c0_334 = arith.constant 0 : index
      %c0_335 = arith.constant 0 : index
      %436 = vector.load %arg20[%c0_334, %c0_335] : memref<2x128xf32, #tpu.memory_space<vmem>>, vector<2x128xf32>
      tpu.vector_store %arg20[%c0_334, %c0_335], %435 {strides = array<i32>} : memref<2x128xf32, #tpu.memory_space<vmem>>, vector<2x128xf32>,
      %cst_336 = arith.constant 0.000000e+00 : f32
      %437 = vector.broadcast %cst_336 : f32 to vector<2x128xf32>
      %c0_337 = arith.constant 0 : index
      %c0_338 = arith.constant 0 : index
      %438 = vector.load %arg21[%c0_337, %c0_338] : memref<2x128xf32, #tpu.memory_space<vmem>>, vector<2x128xf32>
      tpu.vector_store %arg21[%c0_337, %c0_338], %437 {strides = array<i32>} : memref<2x128xf32, #tpu.memory_space<vmem>>, vector<2x128xf32>,
    } else {
    }
    %c5_i32 = arith.constant 5 : i32
    %14 = vector.broadcast %c5_i32 : i32 to vector<2x128xi32>
    %15 = arith.cmpi eq, %7, %14 : vector<2x128xi32>
    %cst = arith.constant 8.000000e-01 : f32
    %16 = vector.broadcast %cst : f32 to vector<2x128xf32>
    %17 = arith.cmpf ogt, %9, %16 : vector<2x128xf32>
    %c255_i32 = arith.constant 255 : i32
    %18 = vector.broadcast %c255_i32 : i32 to vector<2x128xi32>
    %19 = arith.select %17, %7, %18 : vector<2x128xi1>, vector<2x128xi32>
    %c0_11 = arith.constant 0 : index
    %c0_12 = arith.constant 0 : index
    %c0_13 = arith.constant 0 : index
    %c0_14 = arith.constant 0 : index
    %20 = vector.load %arg2[%c0_11, %c0_12, %c0_13, %c0_14] : memref<1x4x2x128xf32, #tpu.memory_space<vmem>>, vector<1x1x2x128xf32>
    %21 = vector.shape_cast %20 : vector<1x1x2x128xf32> to vector<2x128xf32>
    %c0_15 = arith.constant 0 : index
    %c0_16 = arith.constant 0 : index
    %c0_17 = arith.constant 0 : index
    %c0_18 = arith.constant 0 : index
    %22 = vector.load %arg3[%c0_15, %c0_16, %c0_17, %c0_18] : memref<1x4x2x128xf32, #tpu.memory_space<vmem>>, vector<1x1x2x128xf32>
    %23 = vector.shape_cast %22 : vector<1x1x2x128xf32> to vector<2x128xf32>
    %cst_19 = arith.constant 0.000000e+00 : f32
    %24 = vector.broadcast %cst_19 : f32 to vector<2x128xf32>
    %25 = arith.select %15, %24, %21 : vector<2x128xi1>, vector<2x128xf32>
    %26 = arith.addf %25, %23 : vector<2x128xf32>
    %cst_20 = arith.constant 2.000000e+00 : f32
    %27 = vector.broadcast %cst_20 : f32 to vector<2x128xf32>
    %28 = arith.mulf %27, %26 : vector<2x128xf32>
    %c0_21 = arith.constant 0 : index
    %c1 = arith.constant 1 : index
    %c0_22 = arith.constant 0 : index
    %c0_23 = arith.constant 0 : index
    %29 = vector.load %arg2[%c0_21, %c1, %c0_22, %c0_23] : memref<1x4x2x128xf32, #tpu.memory_space<vmem>>, vector<1x1x2x128xf32>
    %30 = vector.shape_cast %29 : vector<1x1x2x128xf32> to vector<2x128xf32>
    %31 = arith.maximumf %21, %30 : vector<2x128xf32>
    %c0_24 = arith.constant 0 : index
    %c1_25 = arith.constant 1 : index
    %c0_26 = arith.constant 0 : index
    %c0_27 = arith.constant 0 : index
    %32 = vector.load %arg3[%c0_24, %c1_25, %c0_26, %c0_27] : memref<1x4x2x128xf32, #tpu.memory_space<vmem>>, vector<1x1x2x128xf32>
    %33 = vector.shape_cast %32 : vector<1x1x2x128xf32> to vector<2x128xf32>
    %cst_28 = arith.constant 0.000000e+00 : f32
    %34 = vector.broadcast %cst_28 : f32 to vector<2x128xf32>
    %35 = arith.select %15, %34, %30 : vector<2x128xi1>, vector<2x128xf32>
    %36 = arith.addf %35, %33 : vector<2x128xf32>
    %cst_29 = arith.constant 2.000000e+00 : f32
    %37 = vector.broadcast %cst_29 : f32 to vector<2x128xf32>
    %38 = arith.mulf %37, %36 : vector<2x128xf32>
    %39 = arith.maximumf %28, %38 : vector<2x128xf32>
    %c0_30 = arith.constant 0 : index
    %c2 = arith.constant 2 : index
    %c0_31 = arith.constant 0 : index
    %c0_32 = arith.constant 0 : index
    %40 = vector.load %arg2[%c0_30, %c2, %c0_31, %c0_32] : memref<1x4x2x128xf32, #tpu.memory_space<vmem>>, vector<1x1x2x128xf32>
    %41 = vector.shape_cast %40 : vector<1x1x2x128xf32> to vector<2x128xf32>
    %42 = arith.maximumf %31, %41 : vector<2x128xf32>
    %c0_33 = arith.constant 0 : index
    %c2_34 = arith.constant 2 : index
    %c0_35 = arith.constant 0 : index
    %c0_36 = arith.constant 0 : index
    %43 = vector.load %arg3[%c0_33, %c2_34, %c0_35, %c0_36] : memref<1x4x2x128xf32, #tpu.memory_space<vmem>>, vector<1x1x2x128xf32>
    %44 = vector.shape_cast %43 : vector<1x1x2x128xf32> to vector<2x128xf32>
    %cst_37 = arith.constant 0.000000e+00 : f32
    %45 = vector.broadcast %cst_37 : f32 to vector<2x128xf32>
    %46 = arith.select %15, %45, %41 : vector<2x128xi1>, vector<2x128xf32>
    %47 = arith.addf %46, %44 : vector<2x128xf32>
    %cst_38 = arith.constant 2.000000e+00 : f32
    %48 = vector.broadcast %cst_38 : f32 to vector<2x128xf32>
    %49 = arith.mulf %48, %47 : vector<2x128xf32>
    %50 = arith.maximumf %39, %49 : vector<2x128xf32>
    %c0_39 = arith.constant 0 : index
    %c3 = arith.constant 3 : index
    %c0_40 = arith.constant 0 : index
    %c0_41 = arith.constant 0 : index
    %51 = vector.load %arg2[%c0_39, %c3, %c0_40, %c0_41] : memref<1x4x2x128xf32, #tpu.memory_space<vmem>>, vector<1x1x2x128xf32>
    %52 = vector.shape_cast %51 : vector<1x1x2x128xf32> to vector<2x128xf32>
    %53 = arith.maximumf %42, %52 : vector<2x128xf32>
    %c0_42 = arith.constant 0 : index
    %c3_43 = arith.constant 3 : index
    %c0_44 = arith.constant 0 : index
    %c0_45 = arith.constant 0 : index
    %54 = vector.load %arg3[%c0_42, %c3_43, %c0_44, %c0_45] : memref<1x4x2x128xf32, #tpu.memory_space<vmem>>, vector<1x1x2x128xf32>
    %55 = vector.shape_cast %54 : vector<1x1x2x128xf32> to vector<2x128xf32>
    %cst_46 = arith.constant 0.000000e+00 : f32
    %56 = vector.broadcast %cst_46 : f32 to vector<2x128xf32>
    %57 = arith.select %15, %56, %52 : vector<2x128xi1>, vector<2x128xf32>
    %58 = arith.addf %57, %55 : vector<2x128xf32>
    %cst_47 = arith.constant 2.000000e+00 : f32
    %59 = vector.broadcast %cst_47 : f32 to vector<2x128xf32>
    %60 = arith.mulf %59, %58 : vector<2x128xf32>
    %61 = arith.maximumf %50, %60 : vector<2x128xf32>
    %cst_48 = arith.constant 0.000000e+00 : f32
    %62 = vector.broadcast %cst_48 : f32 to vector<2x128xf32>
    %cst_49 = arith.constant 0.000000e+00 : f32
    %63 = vector.broadcast %cst_49 : f32 to vector<2x128xf32>
    %c0_50 = arith.constant 0 : index
    %c0_51 = arith.constant 0 : index
    %c0_52 = arith.constant 0 : index
    %c0_53 = arith.constant 0 : index
    %64 = vector.load %arg2[%c0_50, %c0_51, %c0_52, %c0_53] : memref<1x4x2x128xf32, #tpu.memory_space<vmem>>, vector<1x1x2x128xf32>
    %65 = vector.shape_cast %64 : vector<1x1x2x128xf32> to vector<2x128xf32>
    %66 = arith.subf %65, %53 : vector<2x128xf32>
    %67 = math.exp %66 : vector<2x128xf32>
    %68 = arith.addf %62, %67 : vector<2x128xf32>
    %c0_54 = arith.constant 0 : index
    %c0_55 = arith.constant 0 : index
    %c0_56 = arith.constant 0 : index
    %c0_57 = arith.constant 0 : index
    %69 = vector.load %arg3[%c0_54, %c0_55, %c0_56, %c0_57] : memref<1x4x2x128xf32, #tpu.memory_space<vmem>>, vector<1x1x2x128xf32>
    %70 = vector.shape_cast %69 : vector<1x1x2x128xf32> to vector<2x128xf32>
    %cst_58 = arith.constant 0.000000e+00 : f32
    %71 = vector.broadcast %cst_58 : f32 to vector<2x128xf32>
    %72 = arith.select %15, %71, %65 : vector<2x128xi1>, vector<2x128xf32>
    %73 = arith.addf %72, %70 : vector<2x128xf32>
    %cst_59 = arith.constant 2.000000e+00 : f32
    %74 = vector.broadcast %cst_59 : f32 to vector<2x128xf32>
    %75 = arith.mulf %74, %73 : vector<2x128xf32>
    %76 = arith.subf %75, %61 : vector<2x128xf32>
    %77 = math.exp %76 : vector<2x128xf32>
    %c0_60 = arith.constant 0 : index
    %c0_61 = arith.constant 0 : index
    %c0_62 = arith.constant 0 : index
    %78 = vector.load %arg12[%c0_60, %c0_61, %c0_62] : memref<4x2x128xf32, #tpu.memory_space<vmem>>, vector<1x2x128xf32>
    %79 = vector.shape_cast %78 : vector<1x2x128xf32> to vector<2x128xf32>
    %80 = vector.shape_cast %77 : vector<2x128xf32> to vector<1x2x128xf32>
    tpu.vector_store %arg12[%c0_60, %c0_61, %c0_62], %80 {strides = array<i32>} : memref<4x2x128xf32, #tpu.memory_space<vmem>>, vector<1x2x128xf32>,
    %81 = arith.addf %63, %77 : vector<2x128xf32>
    %c0_63 = arith.constant 0 : index
    %c1_64 = arith.constant 1 : index
    %c0_65 = arith.constant 0 : index
    %c0_66 = arith.constant 0 : index
    %82 = vector.load %arg2[%c0_63, %c1_64, %c0_65, %c0_66] : memref<1x4x2x128xf32, #tpu.memory_space<vmem>>, vector<1x1x2x128xf32>
    %83 = vector.shape_cast %82 : vector<1x1x2x128xf32> to vector<2x128xf32>
    %84 = arith.subf %83, %53 : vector<2x128xf32>
    %85 = math.exp %84 : vector<2x128xf32>
    %86 = arith.addf %68, %85 : vector<2x128xf32>
    %c0_67 = arith.constant 0 : index
    %c1_68 = arith.constant 1 : index
    %c0_69 = arith.constant 0 : index
    %c0_70 = arith.constant 0 : index
    %87 = vector.load %arg3[%c0_67, %c1_68, %c0_69, %c0_70] : memref<1x4x2x128xf32, #tpu.memory_space<vmem>>, vector<1x1x2x128xf32>
    %88 = vector.shape_cast %87 : vector<1x1x2x128xf32> to vector<2x128xf32>
    %cst_71 = arith.constant 0.000000e+00 : f32
    %89 = vector.broadcast %cst_71 : f32 to vector<2x128xf32>
    %90 = arith.select %15, %89, %83 : vector<2x128xi1>, vector<2x128xf32>
    %91 = arith.addf %90, %88 : vector<2x128xf32>
    %cst_72 = arith.constant 2.000000e+00 : f32
    %92 = vector.broadcast %cst_72 : f32 to vector<2x128xf32>
    %93 = arith.mulf %92, %91 : vector<2x128xf32>
    %94 = arith.subf %93, %61 : vector<2x128xf32>
    %95 = math.exp %94 : vector<2x128xf32>
    %c1_73 = arith.constant 1 : index
    %c0_74 = arith.constant 0 : index
    %c0_75 = arith.constant 0 : index
    %96 = vector.load %arg12[%c1_73, %c0_74, %c0_75] : memref<4x2x128xf32, #tpu.memory_space<vmem>>, vector<1x2x128xf32>
    %97 = vector.shape_cast %96 : vector<1x2x128xf32> to vector<2x128xf32>
    %98 = vector.shape_cast %95 : vector<2x128xf32> to vector<1x2x128xf32>
    tpu.vector_store %arg12[%c1_73, %c0_74, %c0_75], %98 {strides = array<i32>} : memref<4x2x128xf32, #tpu.memory_space<vmem>>, vector<1x2x128xf32>,
    %99 = arith.addf %81, %95 : vector<2x128xf32>
    %c0_76 = arith.constant 0 : index
    %c2_77 = arith.constant 2 : index
    %c0_78 = arith.constant 0 : index
    %c0_79 = arith.constant 0 : index
    %100 = vector.load %arg2[%c0_76, %c2_77, %c0_78, %c0_79] : memref<1x4x2x128xf32, #tpu.memory_space<vmem>>, vector<1x1x2x128xf32>
    %101 = vector.shape_cast %100 : vector<1x1x2x128xf32> to vector<2x128xf32>
    %102 = arith.subf %101, %53 : vector<2x128xf32>
    %103 = math.exp %102 : vector<2x128xf32>
    %104 = arith.addf %86, %103 : vector<2x128xf32>
    %c0_80 = arith.constant 0 : index
    %c2_81 = arith.constant 2 : index
    %c0_82 = arith.constant 0 : index
    %c0_83 = arith.constant 0 : index
    %105 = vector.load %arg3[%c0_80, %c2_81, %c0_82, %c0_83] : memref<1x4x2x128xf32, #tpu.memory_space<vmem>>, vector<1x1x2x128xf32>
    %106 = vector.shape_cast %105 : vector<1x1x2x128xf32> to vector<2x128xf32>
    %cst_84 = arith.constant 0.000000e+00 : f32
    %107 = vector.broadcast %cst_84 : f32 to vector<2x128xf32>
    %108 = arith.select %15, %107, %101 : vector<2x128xi1>, vector<2x128xf32>
    %109 = arith.addf %108, %106 : vector<2x128xf32>
    %cst_85 = arith.constant 2.000000e+00 : f32
    %110 = vector.broadcast %cst_85 : f32 to vector<2x128xf32>
    %111 = arith.mulf %110, %109 : vector<2x128xf32>
    %112 = arith.subf %111, %61 : vector<2x128xf32>
    %113 = math.exp %112 : vector<2x128xf32>
    %c2_86 = arith.constant 2 : index
    %c0_87 = arith.constant 0 : index
    %c0_88 = arith.constant 0 : index
    %114 = vector.load %arg12[%c2_86, %c0_87, %c0_88] : memref<4x2x128xf32, #tpu.memory_space<vmem>>, vector<1x2x128xf32>
    %115 = vector.shape_cast %114 : vector<1x2x128xf32> to vector<2x128xf32>
    %116 = vector.shape_cast %113 : vector<2x128xf32> to vector<1x2x128xf32>
    tpu.vector_store %arg12[%c2_86, %c0_87, %c0_88], %116 {strides = array<i32>} : memref<4x2x128xf32, #tpu.memory_space<vmem>>, vector<1x2x128xf32>,
    %117 = arith.addf %99, %113 : vector<2x128xf32>
    %c0_89 = arith.constant 0 : index
    %c3_90 = arith.constant 3 : index
    %c0_91 = arith.constant 0 : index
    %c0_92 = arith.constant 0 : index
    %118 = vector.load %arg2[%c0_89, %c3_90, %c0_91, %c0_92] : memref<1x4x2x128xf32, #tpu.memory_space<vmem>>, vector<1x1x2x128xf32>
    %119 = vector.shape_cast %118 : vector<1x1x2x128xf32> to vector<2x128xf32>
    %120 = arith.subf %119, %53 : vector<2x128xf32>
    %121 = math.exp %120 : vector<2x128xf32>
    %122 = arith.addf %104, %121 : vector<2x128xf32>
    %c0_93 = arith.constant 0 : index
    %c3_94 = arith.constant 3 : index
    %c0_95 = arith.constant 0 : index
    %c0_96 = arith.constant 0 : index
    %123 = vector.load %arg3[%c0_93, %c3_94, %c0_95, %c0_96] : memref<1x4x2x128xf32, #tpu.memory_space<vmem>>, vector<1x1x2x128xf32>
    %124 = vector.shape_cast %123 : vector<1x1x2x128xf32> to vector<2x128xf32>
    %cst_97 = arith.constant 0.000000e+00 : f32
    %125 = vector.broadcast %cst_97 : f32 to vector<2x128xf32>
    %126 = arith.select %15, %125, %119 : vector<2x128xi1>, vector<2x128xf32>
    %127 = arith.addf %126, %124 : vector<2x128xf32>
    %cst_98 = arith.constant 2.000000e+00 : f32
    %128 = vector.broadcast %cst_98 : f32 to vector<2x128xf32>
    %129 = arith.mulf %128, %127 : vector<2x128xf32>
    %130 = arith.subf %129, %61 : vector<2x128xf32>
    %131 = math.exp %130 : vector<2x128xf32>
    %c3_99 = arith.constant 3 : index
    %c0_100 = arith.constant 0 : index
    %c0_101 = arith.constant 0 : index
    %132 = vector.load %arg12[%c3_99, %c0_100, %c0_101] : memref<4x2x128xf32, #tpu.memory_space<vmem>>, vector<1x2x128xf32>
    %133 = vector.shape_cast %132 : vector<1x2x128xf32> to vector<2x128xf32>
    %134 = vector.shape_cast %131 : vector<2x128xf32> to vector<1x2x128xf32>
    tpu.vector_store %arg12[%c3_99, %c0_100, %c0_101], %134 {strides = array<i32>} : memref<4x2x128xf32, #tpu.memory_space<vmem>>, vector<1x2x128xf32>,
    %135 = arith.addf %117, %131 : vector<2x128xf32>
    %136 = math.log %122 : vector<2x128xf32>
    %137 = arith.addf %53, %136 : vector<2x128xf32>
    %138 = tpu.reciprocal %135 {approx = true} : vector<2x128xf32> -> vector<2x128xf32>
    %cst_102 = arith.constant 0.000000e+00 : f32
    %139 = vector.broadcast %cst_102 : f32 to vector<2x128xf32>
    %cst_103 = arith.constant 0.000000e+00 : f32
    %140 = vector.broadcast %cst_103 : f32 to vector<2x128xf32>
    %cst_104 = arith.constant 0.000000e+00 : f32
    %141 = vector.broadcast %cst_104 : f32 to vector<2x128xf32>
    %c0_105 = arith.constant 0 : index
    %c0_106 = arith.constant 0 : index
    %c0_107 = arith.constant 0 : index
    %c0_108 = arith.constant 0 : index
    %142 = vector.load %arg2[%c0_105, %c0_106, %c0_107, %c0_108] : memref<1x4x2x128xf32, #tpu.memory_space<vmem>>, vector<1x1x2x128xf32>
    %143 = vector.shape_cast %142 : vector<1x1x2x128xf32> to vector<2x128xf32>
    %144 = arith.subf %143, %137 : vector<2x128xf32>
    %c0_i32_109 = arith.constant 0 : i32
    %145 = vector.broadcast %c0_i32_109 : i32 to vector<2x128xi32>
    %146 = arith.cmpi eq, %7, %145 : vector<2x128xi32>
    %147 = arith.extui %146 : vector<2x128xi1> to vector<2x128xi32>
    %148 = arith.sitofp %147 : vector<2x128xi32> to vector<2x128xf32>
    %c0_i32_110 = arith.constant 0 : i32
    %149 = vector.broadcast %c0_i32_110 : i32 to vector<2x128xi32>
    %150 = arith.cmpi eq, %19, %149 : vector<2x128xi32>
    %151 = arith.extui %150 : vector<2x128xi1> to vector<2x128xi32>
    %152 = arith.sitofp %151 : vector<2x128xi32> to vector<2x128xf32>
    %c0_111 = arith.constant 0 : index
    %c0_112 = arith.constant 0 : index
    %c0_113 = arith.constant 0 : index
    %153 = vector.load %arg8[%c0_111, %c0_112, %c0_113] : memref<4x2x128xf32, #tpu.memory_space<vmem>>, vector<1x2x128xf32>
    %154 = vector.shape_cast %153 : vector<1x2x128xf32> to vector<2x128xf32>
    %155 = arith.addf %154, %148 : vector<2x128xf32>
    %c0_114 = arith.constant 0 : index
    %c0_115 = arith.constant 0 : index
    %c0_116 = arith.constant 0 : index
    %156 = vector.load %arg8[%c0_114, %c0_115, %c0_116] : memref<4x2x128xf32, #tpu.memory_space<vmem>>, vector<1x2x128xf32>
    %157 = vector.shape_cast %156 : vector<1x2x128xf32> to vector<2x128xf32>
    %158 = vector.shape_cast %155 : vector<2x128xf32> to vector<1x2x128xf32>
    tpu.vector_store %arg8[%c0_114, %c0_115, %c0_116], %158 {strides = array<i32>} : memref<4x2x128xf32, #tpu.memory_space<vmem>>, vector<1x2x128xf32>,
    %c0_117 = arith.constant 0 : index
    %c0_118 = arith.constant 0 : index
    %c0_119 = arith.constant 0 : index
    %159 = vector.load %arg9[%c0_117, %c0_118, %c0_119] : memref<4x2x128xf32, #tpu.memory_space<vmem>>, vector<1x2x128xf32>
    %160 = vector.shape_cast %159 : vector<1x2x128xf32> to vector<2x128xf32>
    %161 = arith.addf %160, %152 : vector<2x128xf32>
    %c0_120 = arith.constant 0 : index
    %c0_121 = arith.constant 0 : index
    %c0_122 = arith.constant 0 : index
    %162 = vector.load %arg9[%c0_120, %c0_121, %c0_122] : memref<4x2x128xf32, #tpu.memory_space<vmem>>, vector<1x2x128xf32>
    %163 = vector.shape_cast %162 : vector<1x2x128xf32> to vector<2x128xf32>
    %164 = vector.shape_cast %161 : vector<2x128xf32> to vector<1x2x128xf32>
    tpu.vector_store %arg9[%c0_120, %c0_121, %c0_122], %164 {strides = array<i32>} : memref<4x2x128xf32, #tpu.memory_space<vmem>>, vector<1x2x128xf32>,
    %c0_123 = arith.constant 0 : index
    %c0_124 = arith.constant 0 : index
    %c0_125 = arith.constant 0 : index
    %165 = vector.load %arg10[%c0_123, %c0_124, %c0_125] : memref<4x2x128xf32, #tpu.memory_space<vmem>>, vector<1x2x128xf32>
    %166 = vector.shape_cast %165 : vector<1x2x128xf32> to vector<2x128xf32>
    %167 = arith.mulf %148, %144 : vector<2x128xf32>
    %168 = arith.addf %166, %167 : vector<2x128xf32>
    %c0_126 = arith.constant 0 : index
    %c0_127 = arith.constant 0 : index
    %c0_128 = arith.constant 0 : index
    %169 = vector.load %arg10[%c0_126, %c0_127, %c0_128] : memref<4x2x128xf32, #tpu.memory_space<vmem>>, vector<1x2x128xf32>
    %170 = vector.shape_cast %169 : vector<1x2x128xf32> to vector<2x128xf32>
    %171 = vector.shape_cast %168 : vector<2x128xf32> to vector<1x2x128xf32>
    tpu.vector_store %arg10[%c0_126, %c0_127, %c0_128], %171 {strides = array<i32>} : memref<4x2x128xf32, #tpu.memory_space<vmem>>, vector<1x2x128xf32>,
    %c0_129 = arith.constant 0 : index
    %c0_130 = arith.constant 0 : index
    %c0_131 = arith.constant 0 : index
    %172 = vector.load %arg11[%c0_129, %c0_130, %c0_131] : memref<4x2x128xf32, #tpu.memory_space<vmem>>, vector<1x2x128xf32>
    %173 = vector.shape_cast %172 : vector<1x2x128xf32> to vector<2x128xf32>
    %174 = arith.mulf %152, %144 : vector<2x128xf32>
    %175 = arith.addf %173, %174 : vector<2x128xf32>
    %c0_132 = arith.constant 0 : index
    %c0_133 = arith.constant 0 : index
    %c0_134 = arith.constant 0 : index
    %176 = vector.load %arg11[%c0_132, %c0_133, %c0_134] : memref<4x2x128xf32, #tpu.memory_space<vmem>>, vector<1x2x128xf32>
    %177 = vector.shape_cast %176 : vector<1x2x128xf32> to vector<2x128xf32>
    %178 = vector.shape_cast %175 : vector<2x128xf32> to vector<1x2x128xf32>
    tpu.vector_store %arg11[%c0_132, %c0_133, %c0_134], %178 {strides = array<i32>} : memref<4x2x128xf32, #tpu.memory_space<vmem>>, vector<1x2x128xf32>,
    %c0_135 = arith.constant 0 : index
    %c0_136 = arith.constant 0 : index
    %c0_137 = arith.constant 0 : index
    %179 = vector.load %arg12[%c0_135, %c0_136, %c0_137] : memref<4x2x128xf32, #tpu.memory_space<vmem>>, vector<1x2x128xf32>
    %180 = vector.shape_cast %179 : vector<1x2x128xf32> to vector<2x128xf32>
    %181 = arith.mulf %180, %138 : vector<2x128xf32>
    %cst_138 = arith.constant 2.000000e+00 : f32
    %182 = vector.broadcast %cst_138 : f32 to vector<2x128xf32>
    %183 = arith.mulf %182, %181 : vector<2x128xf32>
    %184 = arith.mulf %183, %181 : vector<2x128xf32>
    %cst_139 = arith.constant 9.99999997E-7 : f32
    %185 = vector.broadcast %cst_139 : f32 to vector<2x128xf32>
    %186 = arith.addf %184, %185 : vector<2x128xf32>
    %187 = math.sqrt %186 : vector<2x128xf32>
    %188 = arith.addf %139, %187 : vector<2x128xf32>
    %189 = arith.mulf %148, %187 : vector<2x128xf32>
    %190 = arith.addf %140, %189 : vector<2x128xf32>
    %191 = arith.addf %141, %148 : vector<2x128xf32>
    %c0_140 = arith.constant 0 : index
    %c1_141 = arith.constant 1 : index
    %c0_142 = arith.constant 0 : index
    %c0_143 = arith.constant 0 : index
    %192 = vector.load %arg2[%c0_140, %c1_141, %c0_142, %c0_143] : memref<1x4x2x128xf32, #tpu.memory_space<vmem>>, vector<1x1x2x128xf32>
    %193 = vector.shape_cast %192 : vector<1x1x2x128xf32> to vector<2x128xf32>
    %194 = arith.subf %193, %137 : vector<2x128xf32>
    %c1_i32_144 = arith.constant 1 : i32
    %195 = vector.broadcast %c1_i32_144 : i32 to vector<2x128xi32>
    %196 = arith.cmpi eq, %7, %195 : vector<2x128xi32>
    %197 = arith.extui %196 : vector<2x128xi1> to vector<2x128xi32>
    %198 = arith.sitofp %197 : vector<2x128xi32> to vector<2x128xf32>
    %c1_i32_145 = arith.constant 1 : i32
    %199 = vector.broadcast %c1_i32_145 : i32 to vector<2x128xi32>
    %200 = arith.cmpi eq, %19, %199 : vector<2x128xi32>
    %201 = arith.extui %200 : vector<2x128xi1> to vector<2x128xi32>
    %202 = arith.sitofp %201 : vector<2x128xi32> to vector<2x128xf32>
    %c1_146 = arith.constant 1 : index
    %c0_147 = arith.constant 0 : index
    %c0_148 = arith.constant 0 : index
    %203 = vector.load %arg8[%c1_146, %c0_147, %c0_148] : memref<4x2x128xf32, #tpu.memory_space<vmem>>, vector<1x2x128xf32>
    %204 = vector.shape_cast %203 : vector<1x2x128xf32> to vector<2x128xf32>
    %205 = arith.addf %204, %198 : vector<2x128xf32>
    %c1_149 = arith.constant 1 : index
    %c0_150 = arith.constant 0 : index
    %c0_151 = arith.constant 0 : index
    %206 = vector.load %arg8[%c1_149, %c0_150, %c0_151] : memref<4x2x128xf32, #tpu.memory_space<vmem>>, vector<1x2x128xf32>
    %207 = vector.shape_cast %206 : vector<1x2x128xf32> to vector<2x128xf32>
    %208 = vector.shape_cast %205 : vector<2x128xf32> to vector<1x2x128xf32>
    tpu.vector_store %arg8[%c1_149, %c0_150, %c0_151], %208 {strides = array<i32>} : memref<4x2x128xf32, #tpu.memory_space<vmem>>, vector<1x2x128xf32>,
    %c1_152 = arith.constant 1 : index
    %c0_153 = arith.constant 0 : index
    %c0_154 = arith.constant 0 : index
    %209 = vector.load %arg9[%c1_152, %c0_153, %c0_154] : memref<4x2x128xf32, #tpu.memory_space<vmem>>, vector<1x2x128xf32>
    %210 = vector.shape_cast %209 : vector<1x2x128xf32> to vector<2x128xf32>
    %211 = arith.addf %210, %202 : vector<2x128xf32>
    %c1_155 = arith.constant 1 : index
    %c0_156 = arith.constant 0 : index
    %c0_157 = arith.constant 0 : index
    %212 = vector.load %arg9[%c1_155, %c0_156, %c0_157] : memref<4x2x128xf32, #tpu.memory_space<vmem>>, vector<1x2x128xf32>
    %213 = vector.shape_cast %212 : vector<1x2x128xf32> to vector<2x128xf32>
    %214 = vector.shape_cast %211 : vector<2x128xf32> to vector<1x2x128xf32>
    tpu.vector_store %arg9[%c1_155, %c0_156, %c0_157], %214 {strides = array<i32>} : memref<4x2x128xf32, #tpu.memory_space<vmem>>, vector<1x2x128xf32>,
    %c1_158 = arith.constant 1 : index
    %c0_159 = arith.constant 0 : index
    %c0_160 = arith.constant 0 : index
    %215 = vector.load %arg10[%c1_158, %c0_159, %c0_160] : memref<4x2x128xf32, #tpu.memory_space<vmem>>, vector<1x2x128xf32>
    %216 = vector.shape_cast %215 : vector<1x2x128xf32> to vector<2x128xf32>
    %217 = arith.mulf %198, %194 : vector<2x128xf32>
    %218 = arith.addf %216, %217 : vector<2x128xf32>
    %c1_161 = arith.constant 1 : index
    %c0_162 = arith.constant 0 : index
    %c0_163 = arith.constant 0 : index
    %219 = vector.load %arg10[%c1_161, %c0_162, %c0_163] : memref<4x2x128xf32, #tpu.memory_space<vmem>>, vector<1x2x128xf32>
    %220 = vector.shape_cast %219 : vector<1x2x128xf32> to vector<2x128xf32>
    %221 = vector.shape_cast %218 : vector<2x128xf32> to vector<1x2x128xf32>
    tpu.vector_store %arg10[%c1_161, %c0_162, %c0_163], %221 {strides = array<i32>} : memref<4x2x128xf32, #tpu.memory_space<vmem>>, vector<1x2x128xf32>,
    %c1_164 = arith.constant 1 : index
    %c0_165 = arith.constant 0 : index
    %c0_166 = arith.constant 0 : index
    %222 = vector.load %arg11[%c1_164, %c0_165, %c0_166] : memref<4x2x128xf32, #tpu.memory_space<vmem>>, vector<1x2x128xf32>
    %223 = vector.shape_cast %222 : vector<1x2x128xf32> to vector<2x128xf32>
    %224 = arith.mulf %202, %194 : vector<2x128xf32>
    %225 = arith.addf %223, %224 : vector<2x128xf32>
    %c1_167 = arith.constant 1 : index
    %c0_168 = arith.constant 0 : index
    %c0_169 = arith.constant 0 : index
    %226 = vector.load %arg11[%c1_167, %c0_168, %c0_169] : memref<4x2x128xf32, #tpu.memory_space<vmem>>, vector<1x2x128xf32>
    %227 = vector.shape_cast %226 : vector<1x2x128xf32> to vector<2x128xf32>
    %228 = vector.shape_cast %225 : vector<2x128xf32> to vector<1x2x128xf32>
    tpu.vector_store %arg11[%c1_167, %c0_168, %c0_169], %228 {strides = array<i32>} : memref<4x2x128xf32, #tpu.memory_space<vmem>>, vector<1x2x128xf32>,
    %c1_170 = arith.constant 1 : index
    %c0_171 = arith.constant 0 : index
    %c0_172 = arith.constant 0 : index
    %229 = vector.load %arg12[%c1_170, %c0_171, %c0_172] : memref<4x2x128xf32, #tpu.memory_space<vmem>>, vector<1x2x128xf32>
    %230 = vector.shape_cast %229 : vector<1x2x128xf32> to vector<2x128xf32>
    %231 = arith.mulf %230, %138 : vector<2x128xf32>
    %cst_173 = arith.constant 2.000000e+00 : f32
    %232 = vector.broadcast %cst_173 : f32 to vector<2x128xf32>
    %233 = arith.mulf %232, %231 : vector<2x128xf32>
    %234 = arith.mulf %233, %231 : vector<2x128xf32>
    %cst_174 = arith.constant 9.99999997E-7 : f32
    %235 = vector.broadcast %cst_174 : f32 to vector<2x128xf32>
    %236 = arith.addf %234, %235 : vector<2x128xf32>
    %237 = math.sqrt %236 : vector<2x128xf32>
    %238 = arith.addf %188, %237 : vector<2x128xf32>
    %239 = arith.mulf %198, %237 : vector<2x128xf32>
    %240 = arith.addf %190, %239 : vector<2x128xf32>
    %241 = arith.addf %191, %198 : vector<2x128xf32>
    %c0_175 = arith.constant 0 : index
    %c2_176 = arith.constant 2 : index
    %c0_177 = arith.constant 0 : index
    %c0_178 = arith.constant 0 : index
    %242 = vector.load %arg2[%c0_175, %c2_176, %c0_177, %c0_178] : memref<1x4x2x128xf32, #tpu.memory_space<vmem>>, vector<1x1x2x128xf32>
    %243 = vector.shape_cast %242 : vector<1x1x2x128xf32> to vector<2x128xf32>
    %244 = arith.subf %243, %137 : vector<2x128xf32>
    %c2_i32 = arith.constant 2 : i32
    %245 = vector.broadcast %c2_i32 : i32 to vector<2x128xi32>
    %246 = arith.cmpi eq, %7, %245 : vector<2x128xi32>
    %247 = arith.extui %246 : vector<2x128xi1> to vector<2x128xi32>
    %248 = arith.sitofp %247 : vector<2x128xi32> to vector<2x128xf32>
    %c2_i32_179 = arith.constant 2 : i32
    %249 = vector.broadcast %c2_i32_179 : i32 to vector<2x128xi32>
    %250 = arith.cmpi eq, %19, %249 : vector<2x128xi32>
    %251 = arith.extui %250 : vector<2x128xi1> to vector<2x128xi32>
    %252 = arith.sitofp %251 : vector<2x128xi32> to vector<2x128xf32>
    %c2_180 = arith.constant 2 : index
    %c0_181 = arith.constant 0 : index
    %c0_182 = arith.constant 0 : index
    %253 = vector.load %arg8[%c2_180, %c0_181, %c0_182] : memref<4x2x128xf32, #tpu.memory_space<vmem>>, vector<1x2x128xf32>
    %254 = vector.shape_cast %253 : vector<1x2x128xf32> to vector<2x128xf32>
    %255 = arith.addf %254, %248 : vector<2x128xf32>
    %c2_183 = arith.constant 2 : index
    %c0_184 = arith.constant 0 : index
    %c0_185 = arith.constant 0 : index
    %256 = vector.load %arg8[%c2_183, %c0_184, %c0_185] : memref<4x2x128xf32, #tpu.memory_space<vmem>>, vector<1x2x128xf32>
    %257 = vector.shape_cast %256 : vector<1x2x128xf32> to vector<2x128xf32>
    %258 = vector.shape_cast %255 : vector<2x128xf32> to vector<1x2x128xf32>
    tpu.vector_store %arg8[%c2_183, %c0_184, %c0_185], %258 {strides = array<i32>} : memref<4x2x128xf32, #tpu.memory_space<vmem>>, vector<1x2x128xf32>,
    %c2_186 = arith.constant 2 : index
    %c0_187 = arith.constant 0 : index
    %c0_188 = arith.constant 0 : index
    %259 = vector.load %arg9[%c2_186, %c0_187, %c0_188] : memref<4x2x128xf32, #tpu.memory_space<vmem>>, vector<1x2x128xf32>
    %260 = vector.shape_cast %259 : vector<1x2x128xf32> to vector<2x128xf32>
    %261 = arith.addf %260, %252 : vector<2x128xf32>
    %c2_189 = arith.constant 2 : index
    %c0_190 = arith.constant 0 : index
    %c0_191 = arith.constant 0 : index
    %262 = vector.load %arg9[%c2_189, %c0_190, %c0_191] : memref<4x2x128xf32, #tpu.memory_space<vmem>>, vector<1x2x128xf32>
    %263 = vector.shape_cast %262 : vector<1x2x128xf32> to vector<2x128xf32>
    %264 = vector.shape_cast %261 : vector<2x128xf32> to vector<1x2x128xf32>
    tpu.vector_store %arg9[%c2_189, %c0_190, %c0_191], %264 {strides = array<i32>} : memref<4x2x128xf32, #tpu.memory_space<vmem>>, vector<1x2x128xf32>,
    %c2_192 = arith.constant 2 : index
    %c0_193 = arith.constant 0 : index
    %c0_194 = arith.constant 0 : index
    %265 = vector.load %arg10[%c2_192, %c0_193, %c0_194] : memref<4x2x128xf32, #tpu.memory_space<vmem>>, vector<1x2x128xf32>
    %266 = vector.shape_cast %265 : vector<1x2x128xf32> to vector<2x128xf32>
    %267 = arith.mulf %248, %244 : vector<2x128xf32>
    %268 = arith.addf %266, %267 : vector<2x128xf32>
    %c2_195 = arith.constant 2 : index
    %c0_196 = arith.constant 0 : index
    %c0_197 = arith.constant 0 : index
    %269 = vector.load %arg10[%c2_195, %c0_196, %c0_197] : memref<4x2x128xf32, #tpu.memory_space<vmem>>, vector<1x2x128xf32>
    %270 = vector.shape_cast %269 : vector<1x2x128xf32> to vector<2x128xf32>
    %271 = vector.shape_cast %268 : vector<2x128xf32> to vector<1x2x128xf32>
    tpu.vector_store %arg10[%c2_195, %c0_196, %c0_197], %271 {strides = array<i32>} : memref<4x2x128xf32, #tpu.memory_space<vmem>>, vector<1x2x128xf32>,
    %c2_198 = arith.constant 2 : index
    %c0_199 = arith.constant 0 : index
    %c0_200 = arith.constant 0 : index
    %272 = vector.load %arg11[%c2_198, %c0_199, %c0_200] : memref<4x2x128xf32, #tpu.memory_space<vmem>>, vector<1x2x128xf32>
    %273 = vector.shape_cast %272 : vector<1x2x128xf32> to vector<2x128xf32>
    %274 = arith.mulf %252, %244 : vector<2x128xf32>
    %275 = arith.addf %273, %274 : vector<2x128xf32>
    %c2_201 = arith.constant 2 : index
    %c0_202 = arith.constant 0 : index
    %c0_203 = arith.constant 0 : index
    %276 = vector.load %arg11[%c2_201, %c0_202, %c0_203] : memref<4x2x128xf32, #tpu.memory_space<vmem>>, vector<1x2x128xf32>
    %277 = vector.shape_cast %276 : vector<1x2x128xf32> to vector<2x128xf32>
    %278 = vector.shape_cast %275 : vector<2x128xf32> to vector<1x2x128xf32>
    tpu.vector_store %arg11[%c2_201, %c0_202, %c0_203], %278 {strides = array<i32>} : memref<4x2x128xf32, #tpu.memory_space<vmem>>, vector<1x2x128xf32>,
    %c2_204 = arith.constant 2 : index
    %c0_205 = arith.constant 0 : index
    %c0_206 = arith.constant 0 : index
    %279 = vector.load %arg12[%c2_204, %c0_205, %c0_206] : memref<4x2x128xf32, #tpu.memory_space<vmem>>, vector<1x2x128xf32>
    %280 = vector.shape_cast %279 : vector<1x2x128xf32> to vector<2x128xf32>
    %281 = arith.mulf %280, %138 : vector<2x128xf32>
    %cst_207 = arith.constant 2.000000e+00 : f32
    %282 = vector.broadcast %cst_207 : f32 to vector<2x128xf32>
    %283 = arith.mulf %282, %281 : vector<2x128xf32>
    %284 = arith.mulf %283, %281 : vector<2x128xf32>
    %cst_208 = arith.constant 9.99999997E-7 : f32
    %285 = vector.broadcast %cst_208 : f32 to vector<2x128xf32>
    %286 = arith.addf %284, %285 : vector<2x128xf32>
    %287 = math.sqrt %286 : vector<2x128xf32>
    %288 = arith.addf %238, %287 : vector<2x128xf32>
    %289 = arith.mulf %248, %287 : vector<2x128xf32>
    %290 = arith.addf %240, %289 : vector<2x128xf32>
    %291 = arith.addf %241, %248 : vector<2x128xf32>
    %c0_209 = arith.constant 0 : index
    %c3_210 = arith.constant 3 : index
    %c0_211 = arith.constant 0 : index
    %c0_212 = arith.constant 0 : index
    %292 = vector.load %arg2[%c0_209, %c3_210, %c0_211, %c0_212] : memref<1x4x2x128xf32, #tpu.memory_space<vmem>>, vector<1x1x2x128xf32>
    %293 = vector.shape_cast %292 : vector<1x1x2x128xf32> to vector<2x128xf32>
    %294 = arith.subf %293, %137 : vector<2x128xf32>
    %c3_i32 = arith.constant 3 : i32
    %295 = vector.broadcast %c3_i32 : i32 to vector<2x128xi32>
    %296 = arith.cmpi eq, %7, %295 : vector<2x128xi32>
    %297 = arith.extui %296 : vector<2x128xi1> to vector<2x128xi32>
    %298 = arith.sitofp %297 : vector<2x128xi32> to vector<2x128xf32>
    %c3_i32_213 = arith.constant 3 : i32
    %299 = vector.broadcast %c3_i32_213 : i32 to vector<2x128xi32>
    %300 = arith.cmpi eq, %19, %299 : vector<2x128xi32>
    %301 = arith.extui %300 : vector<2x128xi1> to vector<2x128xi32>
    %302 = arith.sitofp %301 : vector<2x128xi32> to vector<2x128xf32>
    %c3_214 = arith.constant 3 : index
    %c0_215 = arith.constant 0 : index
    %c0_216 = arith.constant 0 : index
    %303 = vector.load %arg8[%c3_214, %c0_215, %c0_216] : memref<4x2x128xf32, #tpu.memory_space<vmem>>, vector<1x2x128xf32>
    %304 = vector.shape_cast %303 : vector<1x2x128xf32> to vector<2x128xf32>
    %305 = arith.addf %304, %298 : vector<2x128xf32>
    %c3_217 = arith.constant 3 : index
    %c0_218 = arith.constant 0 : index
    %c0_219 = arith.constant 0 : index
    %306 = vector.load %arg8[%c3_217, %c0_218, %c0_219] : memref<4x2x128xf32, #tpu.memory_space<vmem>>, vector<1x2x128xf32>
    %307 = vector.shape_cast %306 : vector<1x2x128xf32> to vector<2x128xf32>
    %308 = vector.shape_cast %305 : vector<2x128xf32> to vector<1x2x128xf32>
    tpu.vector_store %arg8[%c3_217, %c0_218, %c0_219], %308 {strides = array<i32>} : memref<4x2x128xf32, #tpu.memory_space<vmem>>, vector<1x2x128xf32>,
    %c3_220 = arith.constant 3 : index
    %c0_221 = arith.constant 0 : index
    %c0_222 = arith.constant 0 : index
    %309 = vector.load %arg9[%c3_220, %c0_221, %c0_222] : memref<4x2x128xf32, #tpu.memory_space<vmem>>, vector<1x2x128xf32>
    %310 = vector.shape_cast %309 : vector<1x2x128xf32> to vector<2x128xf32>
    %311 = arith.addf %310, %302 : vector<2x128xf32>
    %c3_223 = arith.constant 3 : index
    %c0_224 = arith.constant 0 : index
    %c0_225 = arith.constant 0 : index
    %312 = vector.load %arg9[%c3_223, %c0_224, %c0_225] : memref<4x2x128xf32, #tpu.memory_space<vmem>>, vector<1x2x128xf32>
    %313 = vector.shape_cast %312 : vector<1x2x128xf32> to vector<2x128xf32>
    %314 = vector.shape_cast %311 : vector<2x128xf32> to vector<1x2x128xf32>
    tpu.vector_store %arg9[%c3_223, %c0_224, %c0_225], %314 {strides = array<i32>} : memref<4x2x128xf32, #tpu.memory_space<vmem>>, vector<1x2x128xf32>,
    %c3_226 = arith.constant 3 : index
    %c0_227 = arith.constant 0 : index
    %c0_228 = arith.constant 0 : index
    %315 = vector.load %arg10[%c3_226, %c0_227, %c0_228] : memref<4x2x128xf32, #tpu.memory_space<vmem>>, vector<1x2x128xf32>
    %316 = vector.shape_cast %315 : vector<1x2x128xf32> to vector<2x128xf32>
    %317 = arith.mulf %298, %294 : vector<2x128xf32>
    %318 = arith.addf %316, %317 : vector<2x128xf32>
    %c3_229 = arith.constant 3 : index
    %c0_230 = arith.constant 0 : index
    %c0_231 = arith.constant 0 : index
    %319 = vector.load %arg10[%c3_229, %c0_230, %c0_231] : memref<4x2x128xf32, #tpu.memory_space<vmem>>, vector<1x2x128xf32>
    %320 = vector.shape_cast %319 : vector<1x2x128xf32> to vector<2x128xf32>
    %321 = vector.shape_cast %318 : vector<2x128xf32> to vector<1x2x128xf32>
    tpu.vector_store %arg10[%c3_229, %c0_230, %c0_231], %321 {strides = array<i32>} : memref<4x2x128xf32, #tpu.memory_space<vmem>>, vector<1x2x128xf32>,
    %c3_232 = arith.constant 3 : index
    %c0_233 = arith.constant 0 : index
    %c0_234 = arith.constant 0 : index
    %322 = vector.load %arg11[%c3_232, %c0_233, %c0_234] : memref<4x2x128xf32, #tpu.memory_space<vmem>>, vector<1x2x128xf32>
    %323 = vector.shape_cast %322 : vector<1x2x128xf32> to vector<2x128xf32>
    %324 = arith.mulf %302, %294 : vector<2x128xf32>
    %325 = arith.addf %323, %324 : vector<2x128xf32>
    %c3_235 = arith.constant 3 : index
    %c0_236 = arith.constant 0 : index
    %c0_237 = arith.constant 0 : index
    %326 = vector.load %arg11[%c3_235, %c0_236, %c0_237] : memref<4x2x128xf32, #tpu.memory_space<vmem>>, vector<1x2x128xf32>
    %327 = vector.shape_cast %326 : vector<1x2x128xf32> to vector<2x128xf32>
    %328 = vector.shape_cast %325 : vector<2x128xf32> to vector<1x2x128xf32>
    tpu.vector_store %arg11[%c3_235, %c0_236, %c0_237], %328 {strides = array<i32>} : memref<4x2x128xf32, #tpu.memory_space<vmem>>, vector<1x2x128xf32>,
    %c3_238 = arith.constant 3 : index
    %c0_239 = arith.constant 0 : index
    %c0_240 = arith.constant 0 : index
    %329 = vector.load %arg12[%c3_238, %c0_239, %c0_240] : memref<4x2x128xf32, #tpu.memory_space<vmem>>, vector<1x2x128xf32>
    %330 = vector.shape_cast %329 : vector<1x2x128xf32> to vector<2x128xf32>
    %331 = arith.mulf %330, %138 : vector<2x128xf32>
    %cst_241 = arith.constant 2.000000e+00 : f32
    %332 = vector.broadcast %cst_241 : f32 to vector<2x128xf32>
    %333 = arith.mulf %332, %331 : vector<2x128xf32>
    %334 = arith.mulf %333, %331 : vector<2x128xf32>
    %cst_242 = arith.constant 9.99999997E-7 : f32
    %335 = vector.broadcast %cst_242 : f32 to vector<2x128xf32>
    %336 = arith.addf %334, %335 : vector<2x128xf32>
    %337 = math.sqrt %336 : vector<2x128xf32>
    %338 = arith.addf %288, %337 : vector<2x128xf32>
    %339 = arith.mulf %298, %337 : vector<2x128xf32>
    %340 = arith.addf %290, %339 : vector<2x128xf32>
    %341 = arith.addf %291, %298 : vector<2x128xf32>
    %342 = arith.select %15, %187, %340 : vector<2x128xi1>, vector<2x128xf32>
    %cst_243 = arith.constant 1.000000e+00 : f32
    %343 = vector.broadcast %cst_243 : f32 to vector<2x128xf32>
    %344 = arith.select %15, %343, %341 : vector<2x128xi1>, vector<2x128xf32>
    %c0_244 = arith.constant 0 : index
    %c0_245 = arith.constant 0 : index
    %345 = vector.load %arg14[%c0_244, %c0_245] : memref<2x128xf32, #tpu.memory_space<vmem>>, vector<2x128xf32>
    %346 = arith.addf %345, %338 : vector<2x128xf32>
    %c0_246 = arith.constant 0 : index
    %c0_247 = arith.constant 0 : index
    %347 = vector.load %arg14[%c0_246, %c0_247] : memref<2x128xf32, #tpu.memory_space<vmem>>, vector<2x128xf32>
    tpu.vector_store %arg14[%c0_246, %c0_247], %346 {strides = array<i32>} : memref<2x128xf32, #tpu.memory_space<vmem>>, vector<2x128xf32>,
    %c0_248 = arith.constant 0 : index
    %c0_249 = arith.constant 0 : index
    %348 = vector.load %arg15[%c0_248, %c0_249] : memref<2x128xf32, #tpu.memory_space<vmem>>, vector<2x128xf32>
    %349 = arith.addf %348, %342 : vector<2x128xf32>
    %c0_250 = arith.constant 0 : index
    %c0_251 = arith.constant 0 : index
    %350 = vector.load %arg15[%c0_250, %c0_251] : memref<2x128xf32, #tpu.memory_space<vmem>>, vector<2x128xf32>
    tpu.vector_store %arg15[%c0_250, %c0_251], %349 {strides = array<i32>} : memref<2x128xf32, #tpu.memory_space<vmem>>, vector<2x128xf32>,
    %c0_252 = arith.constant 0 : index
    %c0_253 = arith.constant 0 : index
    %351 = vector.load %arg17[%c0_252, %c0_253] : memref<2x128xf32, #tpu.memory_space<vmem>>, vector<2x128xf32>
    %352 = arith.addf %351, %344 : vector<2x128xf32>
    %c0_254 = arith.constant 0 : index
    %c0_255 = arith.constant 0 : index
    %353 = vector.load %arg17[%c0_254, %c0_255] : memref<2x128xf32, #tpu.memory_space<vmem>>, vector<2x128xf32>
    tpu.vector_store %arg17[%c0_254, %c0_255], %352 {strides = array<i32>} : memref<2x128xf32, #tpu.memory_space<vmem>>, vector<2x128xf32>,
    %c0_256 = arith.constant 0 : index
    %c0_257 = arith.constant 0 : index
    %354 = vector.load %arg16[%c0_256, %c0_257] : memref<2x128xf32, #tpu.memory_space<vmem>>, vector<2x128xf32>
    %355 = arith.maximumf %354, %138 : vector<2x128xf32>
    %c0_258 = arith.constant 0 : index
    %c0_259 = arith.constant 0 : index
    %356 = vector.load %arg16[%c0_258, %c0_259] : memref<2x128xf32, #tpu.memory_space<vmem>>, vector<2x128xf32>
    tpu.vector_store %arg16[%c0_258, %c0_259], %355 {strides = array<i32>} : memref<2x128xf32, #tpu.memory_space<vmem>>, vector<2x128xf32>,
    %c0_260 = arith.constant 0 : index
    %c0_261 = arith.constant 0 : index
    %c0_262 = arith.constant 0 : index
    %357 = vector.load %arg13[%c0_260, %c0_261, %c0_262] : memref<2x2x128xf32, #tpu.memory_space<vmem>>, vector<1x2x128xf32>
    %358 = vector.shape_cast %357 : vector<1x2x128xf32> to vector<2x128xf32>
    %c4_i32 = arith.constant 4 : i32
    %359 = vector.broadcast %c4_i32 : i32 to vector<2x128xi32>
    %360 = arith.cmpi eq, %7, %359 : vector<2x128xi32>
    %361 = arith.extui %360 : vector<2x128xi1> to vector<2x128xi32>
    %362 = arith.sitofp %361 : vector<2x128xi32> to vector<2x128xf32>
    %363 = arith.addf %358, %362 : vector<2x128xf32>
    %c0_263 = arith.constant 0 : index
    %c0_264 = arith.constant 0 : index
    %c0_265 = arith.constant 0 : index
    %364 = vector.load %arg13[%c0_263, %c0_264, %c0_265] : memref<2x2x128xf32, #tpu.memory_space<vmem>>, vector<1x2x128xf32>
    %365 = vector.shape_cast %364 : vector<1x2x128xf32> to vector<2x128xf32>
    %366 = vector.shape_cast %363 : vector<2x128xf32> to vector<1x2x128xf32>
    tpu.vector_store %arg13[%c0_263, %c0_264, %c0_265], %366 {strides = array<i32>} : memref<2x2x128xf32, #tpu.memory_space<vmem>>, vector<1x2x128xf32>,
    %c1_266 = arith.constant 1 : index
    %c0_267 = arith.constant 0 : index
    %c0_268 = arith.constant 0 : index
    %367 = vector.load %arg13[%c1_266, %c0_267, %c0_268] : memref<2x2x128xf32, #tpu.memory_space<vmem>>, vector<1x2x128xf32>
    %368 = vector.shape_cast %367 : vector<1x2x128xf32> to vector<2x128xf32>
    %c4_i32_269 = arith.constant 4 : i32
    %369 = vector.broadcast %c4_i32_269 : i32 to vector<2x128xi32>
    %370 = arith.cmpi eq, %19, %369 : vector<2x128xi32>
    %371 = arith.extui %370 : vector<2x128xi1> to vector<2x128xi32>
    %372 = arith.sitofp %371 : vector<2x128xi32> to vector<2x128xf32>
    %373 = arith.addf %368, %372 : vector<2x128xf32>
    %c1_270 = arith.constant 1 : index
    %c0_271 = arith.constant 0 : index
    %c0_272 = arith.constant 0 : index
    %374 = vector.load %arg13[%c1_270, %c0_271, %c0_272] : memref<2x2x128xf32, #tpu.memory_space<vmem>>, vector<1x2x128xf32>
    %375 = vector.shape_cast %374 : vector<1x2x128xf32> to vector<2x128xf32>
    %376 = vector.shape_cast %373 : vector<2x128xf32> to vector<1x2x128xf32>
    tpu.vector_store %arg13[%c1_270, %c0_271, %c0_272], %376 {strides = array<i32>} : memref<2x2x128xf32, #tpu.memory_space<vmem>>, vector<1x2x128xf32>,
    %cst_273 = arith.constant 1.000000e+00 : f32
    %377 = vector.broadcast %cst_273 : f32 to vector<2x128xf32>
    %378 = arith.cmpf oeq, %11, %377 : vector<2x128xf32>
    %379 = arith.extui %378 : vector<2x128xi1> to vector<2x128xi32>
    %380 = arith.sitofp %379 : vector<2x128xi32> to vector<2x128xf32>
    %cst_274 = arith.constant 0.000000e+00 : f32
    %381 = vector.broadcast %cst_274 : f32 to vector<2x128xf32>
    %382 = arith.cmpf oeq, %11, %381 : vector<2x128xf32>
    %383 = arith.extui %382 : vector<2x128xi1> to vector<2x128xi32>
    %384 = arith.sitofp %383 : vector<2x128xi32> to vector<2x128xf32>
    %cst_275 = arith.constant 0.000000e+00 : f32
    %385 = vector.broadcast %cst_275 : f32 to vector<2x128xf32>
    %386 = arith.maximumf %9, %385 : vector<2x128xf32>
    %387 = arith.mulf %9, %11 : vector<2x128xf32>
    %388 = arith.subf %386, %387 : vector<2x128xf32>
    %389 = math.absf %9 : vector<2x128xf32>
    %cst_276 = arith.constant 0.000000e+00 : f32
    %390 = vector.broadcast %cst_276 : f32 to vector<2x128xf32>
    %391 = arith.subf %390, %389 : vector<2x128xf32>
    %392 = math.exp %391 : vector<2x128xf32>
    %cst_277 = arith.constant 1.000000e+00 : f32
    %393 = vector.broadcast %cst_277 : f32 to vector<2x128xf32>
    %394 = arith.addf %393, %392 : vector<2x128xf32>
    %395 = math.log %394 : vector<2x128xf32>
    %396 = arith.addf %388, %395 : vector<2x128xf32>
    %c0_278 = arith.constant 0 : index
    %c0_279 = arith.constant 0 : index
    %397 = vector.load %arg18[%c0_278, %c0_279] : memref<2x128xf32, #tpu.memory_space<vmem>>, vector<2x128xf32>
    %398 = arith.addf %397, %380 : vector<2x128xf32>
    %c0_280 = arith.constant 0 : index
    %c0_281 = arith.constant 0 : index
    %399 = vector.load %arg18[%c0_280, %c0_281] : memref<2x128xf32, #tpu.memory_space<vmem>>, vector<2x128xf32>
    tpu.vector_store %arg18[%c0_280, %c0_281], %398 {strides = array<i32>} : memref<2x128xf32, #tpu.memory_space<vmem>>, vector<2x128xf32>,
    %c0_282 = arith.constant 0 : index
    %c0_283 = arith.constant 0 : index
    %400 = vector.load %arg19[%c0_282, %c0_283] : memref<2x128xf32, #tpu.memory_space<vmem>>, vector<2x128xf32>
    %401 = arith.addf %400, %384 : vector<2x128xf32>
    %c0_284 = arith.constant 0 : index
    %c0_285 = arith.constant 0 : index
    %402 = vector.load %arg19[%c0_284, %c0_285] : memref<2x128xf32, #tpu.memory_space<vmem>>, vector<2x128xf32>
    tpu.vector_store %arg19[%c0_284, %c0_285], %401 {strides = array<i32>} : memref<2x128xf32, #tpu.memory_space<vmem>>, vector<2x128xf32>,
    %c0_286 = arith.constant 0 : index
    %c0_287 = arith.constant 0 : index
    %403 = vector.load %arg20[%c0_286, %c0_287] : memref<2x128xf32, #tpu.memory_space<vmem>>, vector<2x128xf32>
    %404 = arith.mulf %380, %396 : vector<2x128xf32>
    %405 = arith.addf %403, %404 : vector<2x128xf32>
    %c0_288 = arith.constant 0 : index
    %c0_289 = arith.constant 0 : index
    %406 = vector.load %arg20[%c0_288, %c0_289] : memref<2x128xf32, #tpu.memory_space<vmem>>, vector<2x128xf32>
    tpu.vector_store %arg20[%c0_288, %c0_289], %405 {strides = array<i32>} : memref<2x128xf32, #tpu.memory_space<vmem>>, vector<2x128xf32>,
    %c0_290 = arith.constant 0 : index
    %c0_291 = arith.constant 0 : index
    %407 = vector.load %arg21[%c0_290, %c0_291] : memref<2x128xf32, #tpu.memory_space<vmem>>, vector<2x128xf32>
    %408 = arith.mulf %384, %396 : vector<2x128xf32>
    %409 = arith.addf %407, %408 : vector<2x128xf32>
    %c0_292 = arith.constant 0 : index
    %c0_293 = arith.constant 0 : index
    %410 = vector.load %arg21[%c0_292, %c0_293] : memref<2x128xf32, #tpu.memory_space<vmem>>, vector<2x128xf32>
    tpu.vector_store %arg21[%c0_292, %c0_293], %409 {strides = array<i32>} : memref<2x128xf32, #tpu.memory_space<vmem>>, vector<2x128xf32>,
    %411 = arith.extui %5 : i1 to i32
    %c0_i32_294 = arith.constant 0 : i32
    %412 = arith.cmpi ne, %411, %c0_i32_294 : i32
    scf.if %412 {
      %c0_295 = arith.constant 0 : index
      %c0_296 = arith.constant 0 : index
      %c0_297 = arith.constant 0 : index
      %413 = vector.load %arg13[%c0_295, %c0_296, %c0_297] : memref<2x2x128xf32, #tpu.memory_space<vmem>>, vector<1x2x128xf32>
      %414 = vector.shape_cast %413 : vector<1x2x128xf32> to vector<2x128xf32>
      %415 = vector.shape_cast %414 : vector<2x128xf32> to vector<1x2x128xf32>
      %cst_298 = arith.constant dense<0.000000e+00> : vector<1xf32>
      %416 = vector.multi_reduction <add>, %415, %cst_298 [1, 2] : vector<1x2x128xf32> to vector<1xf32>
      %417 = vector.shape_cast %416 : vector<1xf32> to vector<1x1x1xf32>
      %418 = vector.extract %417[0, 0, 0] : f32 from vector<1x1x1xf32>
      %419 = vector.broadcast %418 : f32 to vector<1x1xf32>
      %c1_299 = arith.constant 1 : index
      %c0_300 = arith.constant 0 : index
      %c0_301 = arith.constant 0 : index
      %420 = vector.load %arg13[%c1_299, %c0_300, %c0_301] : memref<2x2x128xf32, #tpu.memory_space<vmem>>, vector<1x2x128xf32>
      %421 = vector.shape_cast %420 : vector<1x2x128xf32> to vector<2x128xf32>
      %422 = vector.shape_cast %421 : vector<2x128xf32> to vector<1x2x128xf32>
      %cst_302 = arith.constant dense<0.000000e+00> : vector<1xf32>
      %423 = vector.multi_reduction <add>, %422, %cst_302 [1, 2] : vector<1x2x128xf32> to vector<1xf32>
      %424 = vector.shape_cast %423 : vector<1xf32> to vector<1x1x1xf32>
      %425 = vector.extract %424[0, 0, 0] : f32 from vector<1x1x1xf32>
      %426 = vector.broadcast %425 : f32 to vector<1x1xf32>
      %c0_303 = arith.constant 0 : index
      %c0_304 = arith.constant 0 : index
      %c0_305 = arith.constant 0 : index
      %427 = vector.load %arg8[%c0_303, %c0_304, %c0_305] : memref<4x2x128xf32, #tpu.memory_space<vmem>>, vector<1x2x128xf32>
      %428 = vector.shape_cast %427 : vector<1x2x128xf32> to vector<2x128xf32>
      %429 = vector.shape_cast %428 : vector<2x128xf32> to vector<1x2x128xf32>
      %cst_306 = arith.constant dense<0.000000e+00> : vector<1xf32>
      %430 = vector.multi_reduction <add>, %429, %cst_306 [1, 2] : vector<1x2x128xf32> to vector<1xf32>
      %431 = vector.shape_cast %430 : vector<1xf32> to vector<1x1x1xf32>
      %432 = vector.extract %431[0, 0, 0] : f32 from vector<1x1x1xf32>
      %433 = vector.broadcast %432 : f32 to vector<1x1xf32>
      %c1_307 = arith.constant 1 : index
      %c0_308 = arith.constant 0 : index
      %c0_309 = arith.constant 0 : index
      %434 = vector.load %arg8[%c1_307, %c0_308, %c0_309] : memref<4x2x128xf32, #tpu.memory_space<vmem>>, vector<1x2x128xf32>
      %435 = vector.shape_cast %434 : vector<1x2x128xf32> to vector<2x128xf32>
      %436 = vector.shape_cast %435 : vector<2x128xf32> to vector<1x2x128xf32>
      %cst_310 = arith.constant dense<0.000000e+00> : vector<1xf32>
      %437 = vector.multi_reduction <add>, %436, %cst_310 [1, 2] : vector<1x2x128xf32> to vector<1xf32>
      %438 = vector.shape_cast %437 : vector<1xf32> to vector<1x1x1xf32>
      %439 = vector.extract %438[0, 0, 0] : f32 from vector<1x1x1xf32>
      %440 = vector.broadcast %439 : f32 to vector<1x1xf32>
      %c2_311 = arith.constant 2 : index
      %c0_312 = arith.constant 0 : index
      %c0_313 = arith.constant 0 : index
      %441 = vector.load %arg8[%c2_311, %c0_312, %c0_313] : memref<4x2x128xf32, #tpu.memory_space<vmem>>, vector<1x2x128xf32>
      %442 = vector.shape_cast %441 : vector<1x2x128xf32> to vector<2x128xf32>
      %443 = vector.shape_cast %442 : vector<2x128xf32> to vector<1x2x128xf32>
      %cst_314 = arith.constant dense<0.000000e+00> : vector<1xf32>
      %444 = vector.multi_reduction <add>, %443, %cst_314 [1, 2] : vector<1x2x128xf32> to vector<1xf32>
      %445 = vector.shape_cast %444 : vector<1xf32> to vector<1x1x1xf32>
      %446 = vector.extract %445[0, 0, 0] : f32 from vector<1x1x1xf32>
      %447 = vector.broadcast %446 : f32 to vector<1x1xf32>
      %c3_315 = arith.constant 3 : index
      %c0_316 = arith.constant 0 : index
      %c0_317 = arith.constant 0 : index
      %448 = vector.load %arg8[%c3_315, %c0_316, %c0_317] : memref<4x2x128xf32, #tpu.memory_space<vmem>>, vector<1x2x128xf32>
      %449 = vector.shape_cast %448 : vector<1x2x128xf32> to vector<2x128xf32>
      %450 = vector.shape_cast %449 : vector<2x128xf32> to vector<1x2x128xf32>
      %cst_318 = arith.constant dense<0.000000e+00> : vector<1xf32>
      %451 = vector.multi_reduction <add>, %450, %cst_318 [1, 2] : vector<1x2x128xf32> to vector<1xf32>
      %452 = vector.shape_cast %451 : vector<1xf32> to vector<1x1x1xf32>
      %453 = vector.extract %452[0, 0, 0] : f32 from vector<1x1x1xf32>
      %454 = vector.broadcast %453 : f32 to vector<1x1xf32>
      %c0_319 = arith.constant 0 : index
      %c0_320 = arith.constant 0 : index
      %c0_321 = arith.constant 0 : index
      %455 = vector.load %arg10[%c0_319, %c0_320, %c0_321] : memref<4x2x128xf32, #tpu.memory_space<vmem>>, vector<1x2x128xf32>
      %456 = vector.shape_cast %455 : vector<1x2x128xf32> to vector<2x128xf32>
      %457 = vector.shape_cast %456 : vector<2x128xf32> to vector<1x2x128xf32>
      %cst_322 = arith.constant dense<0.000000e+00> : vector<1xf32>
      %458 = vector.multi_reduction <add>, %457, %cst_322 [1, 2] : vector<1x2x128xf32> to vector<1xf32>
      %459 = vector.shape_cast %458 : vector<1xf32> to vector<1x1x1xf32>
      %460 = vector.extract %459[0, 0, 0] : f32 from vector<1x1x1xf32>
      %461 = vector.broadcast %460 : f32 to vector<1x1xf32>
      %c1_323 = arith.constant 1 : index
      %c0_324 = arith.constant 0 : index
      %c0_325 = arith.constant 0 : index
      %462 = vector.load %arg10[%c1_323, %c0_324, %c0_325] : memref<4x2x128xf32, #tpu.memory_space<vmem>>, vector<1x2x128xf32>
      %463 = vector.shape_cast %462 : vector<1x2x128xf32> to vector<2x128xf32>
      %464 = vector.shape_cast %463 : vector<2x128xf32> to vector<1x2x128xf32>
      %cst_326 = arith.constant dense<0.000000e+00> : vector<1xf32>
      %465 = vector.multi_reduction <add>, %464, %cst_326 [1, 2] : vector<1x2x128xf32> to vector<1xf32>
      %466 = vector.shape_cast %465 : vector<1xf32> to vector<1x1x1xf32>
      %467 = vector.extract %466[0, 0, 0] : f32 from vector<1x1x1xf32>
      %468 = vector.broadcast %467 : f32 to vector<1x1xf32>
      %c2_327 = arith.constant 2 : index
      %c0_328 = arith.constant 0 : index
      %c0_329 = arith.constant 0 : index
      %469 = vector.load %arg10[%c2_327, %c0_328, %c0_329] : memref<4x2x128xf32, #tpu.memory_space<vmem>>, vector<1x2x128xf32>
      %470 = vector.shape_cast %469 : vector<1x2x128xf32> to vector<2x128xf32>
      %471 = vector.shape_cast %470 : vector<2x128xf32> to vector<1x2x128xf32>
      %cst_330 = arith.constant dense<0.000000e+00> : vector<1xf32>
      %472 = vector.multi_reduction <add>, %471, %cst_330 [1, 2] : vector<1x2x128xf32> to vector<1xf32>
      %473 = vector.shape_cast %472 : vector<1xf32> to vector<1x1x1xf32>
      %474 = vector.extract %473[0, 0, 0] : f32 from vector<1x1x1xf32>
      %475 = vector.broadcast %474 : f32 to vector<1x1xf32>
      %c3_331 = arith.constant 3 : index
      %c0_332 = arith.constant 0 : index
      %c0_333 = arith.constant 0 : index
      %476 = vector.load %arg10[%c3_331, %c0_332, %c0_333] : memref<4x2x128xf32, #tpu.memory_space<vmem>>, vector<1x2x128xf32>
      %477 = vector.shape_cast %476 : vector<1x2x128xf32> to vector<2x128xf32>
      %478 = vector.shape_cast %477 : vector<2x128xf32> to vector<1x2x128xf32>
      %cst_334 = arith.constant dense<0.000000e+00> : vector<1xf32>
      %479 = vector.multi_reduction <add>, %478, %cst_334 [1, 2] : vector<1x2x128xf32> to vector<1xf32>
      %480 = vector.shape_cast %479 : vector<1xf32> to vector<1x1x1xf32>
      %481 = vector.extract %480[0, 0, 0] : f32 from vector<1x1x1xf32>
      %482 = vector.broadcast %481 : f32 to vector<1x1xf32>
      %483 = arith.addf %454, %419 : vector<1x1xf32>
      %484 = arith.addf %433, %440 : vector<1x1xf32>
      %485 = arith.addf %484, %447 : vector<1x1xf32>
      %486 = arith.addf %485, %483 : vector<1x1xf32>
      %cst_335 = arith.constant 0.000000e+00 : f32
      %487 = vector.broadcast %cst_335 : f32 to vector<1x1xf32>
      %cst_336 = arith.constant 0.000000e+00 : f32
      %488 = vector.broadcast %cst_336 : f32 to vector<1x1xf32>
      %489 = arith.divf %433, %486 : vector<1x1xf32>
      %cst_337 = arith.constant 0.000000e+00 : f32
      %490 = vector.broadcast %cst_337 : f32 to vector<1x1xf32>
      %491 = arith.cmpf one, %433, %490 : vector<1x1xf32>
      %cst_338 = arith.constant 1.000000e+00 : f32
      %492 = vector.broadcast %cst_338 : f32 to vector<1x1xf32>
      %493 = arith.subf %492, %489 : vector<1x1xf32>
      %cst_339 = arith.constant 1.000000e+00 : f32
      %494 = vector.broadcast %cst_339 : f32 to vector<1x1xf32>
      %495 = arith.mulf %494, %493 : vector<1x1xf32>
      %cst_340 = arith.constant 0.000000e+00 : f32
      %496 = vector.broadcast %cst_340 : f32 to vector<1x1xf32>
      %497 = arith.select %491, %495, %496 : vector<1x1xi1>, vector<1x1xf32>
      %cst_341 = arith.constant 1.000000e+00 : f32
      %498 = vector.broadcast %cst_341 : f32 to vector<1x1xf32>
      %499 = arith.addf %497, %498 : vector<1x1xf32>
      %500 = arith.mulf %499, %461 : vector<1x1xf32>
      %501 = arith.addf %487, %500 : vector<1x1xf32>
      %502 = arith.mulf %499, %433 : vector<1x1xf32>
      %503 = arith.addf %488, %502 : vector<1x1xf32>
      %504 = arith.divf %440, %486 : vector<1x1xf32>
      %cst_342 = arith.constant 0.000000e+00 : f32
      %505 = vector.broadcast %cst_342 : f32 to vector<1x1xf32>
      %506 = arith.cmpf one, %440, %505 : vector<1x1xf32>
      %cst_343 = arith.constant 1.000000e+00 : f32
      %507 = vector.broadcast %cst_343 : f32 to vector<1x1xf32>
      %508 = arith.subf %507, %504 : vector<1x1xf32>
      %cst_344 = arith.constant 1.000000e+00 : f32
      %509 = vector.broadcast %cst_344 : f32 to vector<1x1xf32>
      %510 = arith.mulf %509, %508 : vector<1x1xf32>
      %cst_345 = arith.constant 0.000000e+00 : f32
      %511 = vector.broadcast %cst_345 : f32 to vector<1x1xf32>
      %512 = arith.select %506, %510, %511 : vector<1x1xi1>, vector<1x1xf32>
      %cst_346 = arith.constant 1.000000e+00 : f32
      %513 = vector.broadcast %cst_346 : f32 to vector<1x1xf32>
      %514 = arith.addf %512, %513 : vector<1x1xf32>
      %515 = arith.mulf %514, %468 : vector<1x1xf32>
      %516 = arith.addf %501, %515 : vector<1x1xf32>
      %517 = arith.mulf %514, %440 : vector<1x1xf32>
      %518 = arith.addf %503, %517 : vector<1x1xf32>
      %519 = arith.divf %447, %486 : vector<1x1xf32>
      %cst_347 = arith.constant 0.000000e+00 : f32
      %520 = vector.broadcast %cst_347 : f32 to vector<1x1xf32>
      %521 = arith.cmpf one, %447, %520 : vector<1x1xf32>
      %cst_348 = arith.constant 1.000000e+00 : f32
      %522 = vector.broadcast %cst_348 : f32 to vector<1x1xf32>
      %523 = arith.subf %522, %519 : vector<1x1xf32>
      %cst_349 = arith.constant 1.000000e+00 : f32
      %524 = vector.broadcast %cst_349 : f32 to vector<1x1xf32>
      %525 = arith.mulf %524, %523 : vector<1x1xf32>
      %cst_350 = arith.constant 0.000000e+00 : f32
      %526 = vector.broadcast %cst_350 : f32 to vector<1x1xf32>
      %527 = arith.select %521, %525, %526 : vector<1x1xi1>, vector<1x1xf32>
      %cst_351 = arith.constant 1.000000e+00 : f32
      %528 = vector.broadcast %cst_351 : f32 to vector<1x1xf32>
      %529 = arith.addf %527, %528 : vector<1x1xf32>
      %530 = arith.mulf %529, %475 : vector<1x1xf32>
      %531 = arith.addf %516, %530 : vector<1x1xf32>
      %532 = arith.mulf %529, %447 : vector<1x1xf32>
      %533 = arith.addf %518, %532 : vector<1x1xf32>
      %534 = arith.divf %483, %486 : vector<1x1xf32>
      %cst_352 = arith.constant 0.000000e+00 : f32
      %535 = vector.broadcast %cst_352 : f32 to vector<1x1xf32>
      %536 = arith.cmpf one, %483, %535 : vector<1x1xf32>
      %cst_353 = arith.constant 1.000000e+00 : f32
      %537 = vector.broadcast %cst_353 : f32 to vector<1x1xf32>
      %538 = arith.subf %537, %534 : vector<1x1xf32>
      %cst_354 = arith.constant 1.000000e+00 : f32
      %539 = vector.broadcast %cst_354 : f32 to vector<1x1xf32>
      %540 = arith.mulf %539, %538 : vector<1x1xf32>
      %cst_355 = arith.constant 0.000000e+00 : f32
      %541 = vector.broadcast %cst_355 : f32 to vector<1x1xf32>
      %542 = arith.select %536, %540, %541 : vector<1x1xi1>, vector<1x1xf32>
      %cst_356 = arith.constant 1.000000e+00 : f32
      %543 = vector.broadcast %cst_356 : f32 to vector<1x1xf32>
      %544 = arith.addf %542, %543 : vector<1x1xf32>
      %545 = arith.mulf %544, %482 : vector<1x1xf32>
      %546 = arith.addf %531, %545 : vector<1x1xf32>
      %547 = arith.mulf %544, %454 : vector<1x1xf32>
      %548 = arith.addf %533, %547 : vector<1x1xf32>
      %cst_357 = arith.constant 0.000000e+00 : f32
      %549 = vector.broadcast %cst_357 : f32 to vector<1x1xf32>
      %550 = arith.subf %549, %546 : vector<1x1xf32>
      %551 = arith.divf %550, %548 : vector<1x1xf32>
      %c0_358 = arith.constant 0 : index
      %c0_359 = arith.constant 0 : index
      %c0_360 = arith.constant 0 : index
      %552 = vector.load %arg9[%c0_358, %c0_359, %c0_360] : memref<4x2x128xf32, #tpu.memory_space<vmem>>, vector<1x2x128xf32>
      %553 = vector.shape_cast %552 : vector<1x2x128xf32> to vector<2x128xf32>
      %554 = vector.shape_cast %553 : vector<2x128xf32> to vector<1x2x128xf32>
      %cst_361 = arith.constant dense<0.000000e+00> : vector<1xf32>
      %555 = vector.multi_reduction <add>, %554, %cst_361 [1, 2] : vector<1x2x128xf32> to vector<1xf32>
      %556 = vector.shape_cast %555 : vector<1xf32> to vector<1x1x1xf32>
      %557 = vector.extract %556[0, 0, 0] : f32 from vector<1x1x1xf32>
      %558 = vector.broadcast %557 : f32 to vector<1x1xf32>
      %c1_362 = arith.constant 1 : index
      %c0_363 = arith.constant 0 : index
      %c0_364 = arith.constant 0 : index
      %559 = vector.load %arg9[%c1_362, %c0_363, %c0_364] : memref<4x2x128xf32, #tpu.memory_space<vmem>>, vector<1x2x128xf32>
      %560 = vector.shape_cast %559 : vector<1x2x128xf32> to vector<2x128xf32>
      %561 = vector.shape_cast %560 : vector<2x128xf32> to vector<1x2x128xf32>
      %cst_365 = arith.constant dense<0.000000e+00> : vector<1xf32>
      %562 = vector.multi_reduction <add>, %561, %cst_365 [1, 2] : vector<1x2x128xf32> to vector<1xf32>
      %563 = vector.shape_cast %562 : vector<1xf32> to vector<1x1x1xf32>
      %564 = vector.extract %563[0, 0, 0] : f32 from vector<1x1x1xf32>
      %565 = vector.broadcast %564 : f32 to vector<1x1xf32>
      %c2_366 = arith.constant 2 : index
      %c0_367 = arith.constant 0 : index
      %c0_368 = arith.constant 0 : index
      %566 = vector.load %arg9[%c2_366, %c0_367, %c0_368] : memref<4x2x128xf32, #tpu.memory_space<vmem>>, vector<1x2x128xf32>
      %567 = vector.shape_cast %566 : vector<1x2x128xf32> to vector<2x128xf32>
      %568 = vector.shape_cast %567 : vector<2x128xf32> to vector<1x2x128xf32>
      %cst_369 = arith.constant dense<0.000000e+00> : vector<1xf32>
      %569 = vector.multi_reduction <add>, %568, %cst_369 [1, 2] : vector<1x2x128xf32> to vector<1xf32>
      %570 = vector.shape_cast %569 : vector<1xf32> to vector<1x1x1xf32>
      %571 = vector.extract %570[0, 0, 0] : f32 from vector<1x1x1xf32>
      %572 = vector.broadcast %571 : f32 to vector<1x1xf32>
      %c3_370 = arith.constant 3 : index
      %c0_371 = arith.constant 0 : index
      %c0_372 = arith.constant 0 : index
      %573 = vector.load %arg9[%c3_370, %c0_371, %c0_372] : memref<4x2x128xf32, #tpu.memory_space<vmem>>, vector<1x2x128xf32>
      %574 = vector.shape_cast %573 : vector<1x2x128xf32> to vector<2x128xf32>
      %575 = vector.shape_cast %574 : vector<2x128xf32> to vector<1x2x128xf32>
      %cst_373 = arith.constant dense<0.000000e+00> : vector<1xf32>
      %576 = vector.multi_reduction <add>, %575, %cst_373 [1, 2] : vector<1x2x128xf32> to vector<1xf32>
      %577 = vector.shape_cast %576 : vector<1xf32> to vector<1x1x1xf32>
      %578 = vector.extract %577[0, 0, 0] : f32 from vector<1x1x1xf32>
      %579 = vector.broadcast %578 : f32 to vector<1x1xf32>
      %c0_374 = arith.constant 0 : index
      %c0_375 = arith.constant 0 : index
      %c0_376 = arith.constant 0 : index
      %580 = vector.load %arg11[%c0_374, %c0_375, %c0_376] : memref<4x2x128xf32, #tpu.memory_space<vmem>>, vector<1x2x128xf32>
      %581 = vector.shape_cast %580 : vector<1x2x128xf32> to vector<2x128xf32>
      %582 = vector.shape_cast %581 : vector<2x128xf32> to vector<1x2x128xf32>
      %cst_377 = arith.constant dense<0.000000e+00> : vector<1xf32>
      %583 = vector.multi_reduction <add>, %582, %cst_377 [1, 2] : vector<1x2x128xf32> to vector<1xf32>
      %584 = vector.shape_cast %583 : vector<1xf32> to vector<1x1x1xf32>
      %585 = vector.extract %584[0, 0, 0] : f32 from vector<1x1x1xf32>
      %586 = vector.broadcast %585 : f32 to vector<1x1xf32>
      %c1_378 = arith.constant 1 : index
      %c0_379 = arith.constant 0 : index
      %c0_380 = arith.constant 0 : index
      %587 = vector.load %arg11[%c1_378, %c0_379, %c0_380] : memref<4x2x128xf32, #tpu.memory_space<vmem>>, vector<1x2x128xf32>
      %588 = vector.shape_cast %587 : vector<1x2x128xf32> to vector<2x128xf32>
      %589 = vector.shape_cast %588 : vector<2x128xf32> to vector<1x2x128xf32>
      %cst_381 = arith.constant dense<0.000000e+00> : vector<1xf32>
      %590 = vector.multi_reduction <add>, %589, %cst_381 [1, 2] : vector<1x2x128xf32> to vector<1xf32>
      %591 = vector.shape_cast %590 : vector<1xf32> to vector<1x1x1xf32>
      %592 = vector.extract %591[0, 0, 0] : f32 from vector<1x1x1xf32>
      %593 = vector.broadcast %592 : f32 to vector<1x1xf32>
      %c2_382 = arith.constant 2 : index
      %c0_383 = arith.constant 0 : index
      %c0_384 = arith.constant 0 : index
      %594 = vector.load %arg11[%c2_382, %c0_383, %c0_384] : memref<4x2x128xf32, #tpu.memory_space<vmem>>, vector<1x2x128xf32>
      %595 = vector.shape_cast %594 : vector<1x2x128xf32> to vector<2x128xf32>
      %596 = vector.shape_cast %595 : vector<2x128xf32> to vector<1x2x128xf32>
      %cst_385 = arith.constant dense<0.000000e+00> : vector<1xf32>
      %597 = vector.multi_reduction <add>, %596, %cst_385 [1, 2] : vector<1x2x128xf32> to vector<1xf32>
      %598 = vector.shape_cast %597 : vector<1xf32> to vector<1x1x1xf32>
      %599 = vector.extract %598[0, 0, 0] : f32 from vector<1x1x1xf32>
      %600 = vector.broadcast %599 : f32 to vector<1x1xf32>
      %c3_386 = arith.constant 3 : index
      %c0_387 = arith.constant 0 : index
      %c0_388 = arith.constant 0 : index
      %601 = vector.load %arg11[%c3_386, %c0_387, %c0_388] : memref<4x2x128xf32, #tpu.memory_space<vmem>>, vector<1x2x128xf32>
      %602 = vector.shape_cast %601 : vector<1x2x128xf32> to vector<2x128xf32>
      %603 = vector.shape_cast %602 : vector<2x128xf32> to vector<1x2x128xf32>
      %cst_389 = arith.constant dense<0.000000e+00> : vector<1xf32>
      %604 = vector.multi_reduction <add>, %603, %cst_389 [1, 2] : vector<1x2x128xf32> to vector<1xf32>
      %605 = vector.shape_cast %604 : vector<1xf32> to vector<1x1x1xf32>
      %606 = vector.extract %605[0, 0, 0] : f32 from vector<1x1x1xf32>
      %607 = vector.broadcast %606 : f32 to vector<1x1xf32>
      %608 = arith.addf %579, %426 : vector<1x1xf32>
      %609 = arith.addf %558, %565 : vector<1x1xf32>
      %610 = arith.addf %609, %572 : vector<1x1xf32>
      %611 = arith.addf %610, %608 : vector<1x1xf32>
      %cst_390 = arith.constant 0.000000e+00 : f32
      %612 = vector.broadcast %cst_390 : f32 to vector<1x1xf32>
      %cst_391 = arith.constant 0.000000e+00 : f32
      %613 = vector.broadcast %cst_391 : f32 to vector<1x1xf32>
      %614 = arith.divf %558, %611 : vector<1x1xf32>
      %cst_392 = arith.constant 0.000000e+00 : f32
      %615 = vector.broadcast %cst_392 : f32 to vector<1x1xf32>
      %616 = arith.cmpf one, %558, %615 : vector<1x1xf32>
      %cst_393 = arith.constant 1.000000e+00 : f32
      %617 = vector.broadcast %cst_393 : f32 to vector<1x1xf32>
      %618 = arith.subf %617, %614 : vector<1x1xf32>
      %cst_394 = arith.constant 1.000000e+00 : f32
      %619 = vector.broadcast %cst_394 : f32 to vector<1x1xf32>
      %620 = arith.mulf %619, %618 : vector<1x1xf32>
      %cst_395 = arith.constant 0.000000e+00 : f32
      %621 = vector.broadcast %cst_395 : f32 to vector<1x1xf32>
      %622 = arith.select %616, %620, %621 : vector<1x1xi1>, vector<1x1xf32>
      %cst_396 = arith.constant 1.000000e+00 : f32
      %623 = vector.broadcast %cst_396 : f32 to vector<1x1xf32>
      %624 = arith.addf %622, %623 : vector<1x1xf32>
      %625 = arith.mulf %624, %586 : vector<1x1xf32>
      %626 = arith.addf %612, %625 : vector<1x1xf32>
      %627 = arith.mulf %624, %558 : vector<1x1xf32>
      %628 = arith.addf %613, %627 : vector<1x1xf32>
      %629 = arith.divf %565, %611 : vector<1x1xf32>
      %cst_397 = arith.constant 0.000000e+00 : f32
      %630 = vector.broadcast %cst_397 : f32 to vector<1x1xf32>
      %631 = arith.cmpf one, %565, %630 : vector<1x1xf32>
      %cst_398 = arith.constant 1.000000e+00 : f32
      %632 = vector.broadcast %cst_398 : f32 to vector<1x1xf32>
      %633 = arith.subf %632, %629 : vector<1x1xf32>
      %cst_399 = arith.constant 1.000000e+00 : f32
      %634 = vector.broadcast %cst_399 : f32 to vector<1x1xf32>
      %635 = arith.mulf %634, %633 : vector<1x1xf32>
      %cst_400 = arith.constant 0.000000e+00 : f32
      %636 = vector.broadcast %cst_400 : f32 to vector<1x1xf32>
      %637 = arith.select %631, %635, %636 : vector<1x1xi1>, vector<1x1xf32>
      %cst_401 = arith.constant 1.000000e+00 : f32
      %638 = vector.broadcast %cst_401 : f32 to vector<1x1xf32>
      %639 = arith.addf %637, %638 : vector<1x1xf32>
      %640 = arith.mulf %639, %593 : vector<1x1xf32>
      %641 = arith.addf %626, %640 : vector<1x1xf32>
      %642 = arith.mulf %639, %565 : vector<1x1xf32>
      %643 = arith.addf %628, %642 : vector<1x1xf32>
      %644 = arith.divf %572, %611 : vector<1x1xf32>
      %cst_402 = arith.constant 0.000000e+00 : f32
      %645 = vector.broadcast %cst_402 : f32 to vector<1x1xf32>
      %646 = arith.cmpf one, %572, %645 : vector<1x1xf32>
      %cst_403 = arith.constant 1.000000e+00 : f32
      %647 = vector.broadcast %cst_403 : f32 to vector<1x1xf32>
      %648 = arith.subf %647, %644 : vector<1x1xf32>
      %cst_404 = arith.constant 1.000000e+00 : f32
      %649 = vector.broadcast %cst_404 : f32 to vector<1x1xf32>
      %650 = arith.mulf %649, %648 : vector<1x1xf32>
      %cst_405 = arith.constant 0.000000e+00 : f32
      %651 = vector.broadcast %cst_405 : f32 to vector<1x1xf32>
      %652 = arith.select %646, %650, %651 : vector<1x1xi1>, vector<1x1xf32>
      %cst_406 = arith.constant 1.000000e+00 : f32
      %653 = vector.broadcast %cst_406 : f32 to vector<1x1xf32>
      %654 = arith.addf %652, %653 : vector<1x1xf32>
      %655 = arith.mulf %654, %600 : vector<1x1xf32>
      %656 = arith.addf %641, %655 : vector<1x1xf32>
      %657 = arith.mulf %654, %572 : vector<1x1xf32>
      %658 = arith.addf %643, %657 : vector<1x1xf32>
      %659 = arith.divf %608, %611 : vector<1x1xf32>
      %cst_407 = arith.constant 0.000000e+00 : f32
      %660 = vector.broadcast %cst_407 : f32 to vector<1x1xf32>
      %661 = arith.cmpf one, %608, %660 : vector<1x1xf32>
      %cst_408 = arith.constant 1.000000e+00 : f32
      %662 = vector.broadcast %cst_408 : f32 to vector<1x1xf32>
      %663 = arith.subf %662, %659 : vector<1x1xf32>
      %cst_409 = arith.constant 1.000000e+00 : f32
      %664 = vector.broadcast %cst_409 : f32 to vector<1x1xf32>
      %665 = arith.mulf %664, %663 : vector<1x1xf32>
      %cst_410 = arith.constant 0.000000e+00 : f32
      %666 = vector.broadcast %cst_410 : f32 to vector<1x1xf32>
      %667 = arith.select %661, %665, %666 : vector<1x1xi1>, vector<1x1xf32>
      %cst_411 = arith.constant 1.000000e+00 : f32
      %668 = vector.broadcast %cst_411 : f32 to vector<1x1xf32>
      %669 = arith.addf %667, %668 : vector<1x1xf32>
      %670 = arith.mulf %669, %607 : vector<1x1xf32>
      %671 = arith.addf %656, %670 : vector<1x1xf32>
      %672 = arith.mulf %669, %579 : vector<1x1xf32>
      %673 = arith.addf %658, %672 : vector<1x1xf32>
      %cst_412 = arith.constant 0.000000e+00 : f32
      %674 = vector.broadcast %cst_412 : f32 to vector<1x1xf32>
      %675 = arith.subf %674, %671 : vector<1x1xf32>
      %676 = arith.divf %675, %673 : vector<1x1xf32>
      %c0_413 = arith.constant 0 : index
      %c0_414 = arith.constant 0 : index
      %677 = vector.load %arg18[%c0_413, %c0_414] : memref<2x128xf32, #tpu.memory_space<vmem>>, vector<2x128xf32>
      %678 = vector.shape_cast %677 : vector<2x128xf32> to vector<1x2x128xf32>
      %cst_415 = arith.constant dense<0.000000e+00> : vector<1xf32>
      %679 = vector.multi_reduction <add>, %678, %cst_415 [1, 2] : vector<1x2x128xf32> to vector<1xf32>
      %680 = vector.shape_cast %679 : vector<1xf32> to vector<1x1x1xf32>
      %681 = vector.extract %680[0, 0, 0] : f32 from vector<1x1x1xf32>
      %682 = vector.broadcast %681 : f32 to vector<1x1xf32>
      %c0_416 = arith.constant 0 : index
      %c0_417 = arith.constant 0 : index
      %683 = vector.load %arg19[%c0_416, %c0_417] : memref<2x128xf32, #tpu.memory_space<vmem>>, vector<2x128xf32>
      %684 = vector.shape_cast %683 : vector<2x128xf32> to vector<1x2x128xf32>
      %cst_418 = arith.constant dense<0.000000e+00> : vector<1xf32>
      %685 = vector.multi_reduction <add>, %684, %cst_418 [1, 2] : vector<1x2x128xf32> to vector<1xf32>
      %686 = vector.shape_cast %685 : vector<1xf32> to vector<1x1x1xf32>
      %687 = vector.extract %686[0, 0, 0] : f32 from vector<1x1x1xf32>
      %688 = vector.broadcast %687 : f32 to vector<1x1xf32>
      %c0_419 = arith.constant 0 : index
      %c0_420 = arith.constant 0 : index
      %689 = vector.load %arg20[%c0_419, %c0_420] : memref<2x128xf32, #tpu.memory_space<vmem>>, vector<2x128xf32>
      %690 = vector.shape_cast %689 : vector<2x128xf32> to vector<1x2x128xf32>
      %cst_421 = arith.constant dense<0.000000e+00> : vector<1xf32>
      %691 = vector.multi_reduction <add>, %690, %cst_421 [1, 2] : vector<1x2x128xf32> to vector<1xf32>
      %692 = vector.shape_cast %691 : vector<1xf32> to vector<1x1x1xf32>
      %693 = vector.extract %692[0, 0, 0] : f32 from vector<1x1x1xf32>
      %694 = vector.broadcast %693 : f32 to vector<1x1xf32>
      %c0_422 = arith.constant 0 : index
      %c0_423 = arith.constant 0 : index
      %695 = vector.load %arg21[%c0_422, %c0_423] : memref<2x128xf32, #tpu.memory_space<vmem>>, vector<2x128xf32>
      %696 = vector.shape_cast %695 : vector<2x128xf32> to vector<1x2x128xf32>
      %cst_424 = arith.constant dense<0.000000e+00> : vector<1xf32>
      %697 = vector.multi_reduction <add>, %696, %cst_424 [1, 2] : vector<1x2x128xf32> to vector<1xf32>
      %698 = vector.shape_cast %697 : vector<1xf32> to vector<1x1x1xf32>
      %699 = vector.extract %698[0, 0, 0] : f32 from vector<1x1x1xf32>
      %700 = vector.broadcast %699 : f32 to vector<1x1xf32>
      %701 = arith.mulf %688, %694 : vector<1x1xf32>
      %702 = arith.mulf %682, %700 : vector<1x1xf32>
      %703 = arith.addf %701, %702 : vector<1x1xf32>
      %704 = arith.addf %682, %688 : vector<1x1xf32>
      %705 = arith.divf %703, %704 : vector<1x1xf32>
      %cst_425 = arith.constant 5.120000e+02 : f32
      %706 = vector.broadcast %cst_425 : f32 to vector<1x1xf32>
      %707 = arith.divf %705, %706 : vector<1x1xf32>
      %c0_426 = arith.constant 0 : index
      %c0_427 = arith.constant 0 : index
      %708 = vector.load %arg16[%c0_426, %c0_427] : memref<2x128xf32, #tpu.memory_space<vmem>>, vector<2x128xf32>
      %709 = vector.shape_cast %708 : vector<2x128xf32> to vector<1x2x128xf32>
      %cst_428 = arith.constant dense<0xFF800000> : vector<1xf32>
      %710 = vector.multi_reduction <maximumf>, %709, %cst_428 [1, 2] : vector<1x2x128xf32> to vector<1xf32>
      %711 = vector.shape_cast %710 : vector<1xf32> to vector<1x1x1xf32>
      %712 = vector.extract %711[0, 0, 0] : f32 from vector<1x1x1xf32>
      %713 = vector.broadcast %712 : f32 to vector<1x1xf32>
      %cst_429 = arith.constant 2.000000e+00 : f32
      %714 = vector.broadcast %cst_429 : f32 to vector<1x1xf32>
      %715 = arith.mulf %714, %713 : vector<1x1xf32>
      %716 = arith.mulf %715, %713 : vector<1x1xf32>
      %cst_430 = arith.constant 9.99999997E-7 : f32
      %717 = vector.broadcast %cst_430 : f32 to vector<1x1xf32>
      %718 = arith.addf %716, %717 : vector<1x1xf32>
      %719 = math.sqrt %718 : vector<1x1xf32>
      %c0_431 = arith.constant 0 : index
      %c0_432 = arith.constant 0 : index
      %720 = vector.load %arg14[%c0_431, %c0_432] : memref<2x128xf32, #tpu.memory_space<vmem>>, vector<2x128xf32>
      %721 = vector.shape_cast %720 : vector<2x128xf32> to vector<1x2x128xf32>
      %cst_433 = arith.constant dense<0.000000e+00> : vector<1xf32>
      %722 = vector.multi_reduction <add>, %721, %cst_433 [1, 2] : vector<1x2x128xf32> to vector<1xf32>
      %723 = vector.shape_cast %722 : vector<1xf32> to vector<1x1x1xf32>
      %724 = vector.extract %723[0, 0, 0] : f32 from vector<1x1x1xf32>
      %725 = vector.broadcast %724 : f32 to vector<1x1xf32>
      %c0_434 = arith.constant 0 : index
      %c0_435 = arith.constant 0 : index
      %726 = vector.load %arg15[%c0_434, %c0_435] : memref<2x128xf32, #tpu.memory_space<vmem>>, vector<2x128xf32>
      %727 = vector.shape_cast %726 : vector<2x128xf32> to vector<1x2x128xf32>
      %cst_436 = arith.constant dense<0.000000e+00> : vector<1xf32>
      %728 = vector.multi_reduction <add>, %727, %cst_436 [1, 2] : vector<1x2x128xf32> to vector<1xf32>
      %729 = vector.shape_cast %728 : vector<1xf32> to vector<1x1x1xf32>
      %730 = vector.extract %729[0, 0, 0] : f32 from vector<1x1x1xf32>
      %731 = vector.broadcast %730 : f32 to vector<1x1xf32>
      %c0_437 = arith.constant 0 : index
      %c0_438 = arith.constant 0 : index
      %732 = vector.load %arg17[%c0_437, %c0_438] : memref<2x128xf32, #tpu.memory_space<vmem>>, vector<2x128xf32>
      %733 = vector.shape_cast %732 : vector<2x128xf32> to vector<1x2x128xf32>
      %cst_439 = arith.constant dense<0.000000e+00> : vector<1xf32>
      %734 = vector.multi_reduction <add>, %733, %cst_439 [1, 2] : vector<1x2x128xf32> to vector<1xf32>
      %735 = vector.shape_cast %734 : vector<1xf32> to vector<1x1x1xf32>
      %736 = vector.extract %735[0, 0, 0] : f32 from vector<1x1x1xf32>
      %737 = vector.broadcast %736 : f32 to vector<1x1xf32>
      %cst_440 = arith.constant 2.048000e+03 : f32
      %738 = vector.broadcast %cst_440 : f32 to vector<1x1xf32>
      %739 = arith.subf %738, %737 : vector<1x1xf32>
      %cst_441 = arith.constant 7.07106607E-4 : f32
      %740 = vector.broadcast %cst_441 : f32 to vector<1x1xf32>
      %741 = arith.mulf %739, %740 : vector<1x1xf32>
      %742 = arith.subf %737, %741 : vector<1x1xf32>
      %cst_442 = arith.constant 2.000000e+00 : f32
      %743 = vector.broadcast %cst_442 : f32 to vector<1x1xf32>
      %744 = arith.mulf %743, %731 : vector<1x1xf32>
      %745 = arith.subf %725, %744 : vector<1x1xf32>
      %746 = arith.divf %745, %719 : vector<1x1xf32>
      %747 = arith.addf %742, %746 : vector<1x1xf32>
      %cst_443 = arith.constant 2.048000e+03 : f32
      %748 = vector.broadcast %cst_443 : f32 to vector<1x1xf32>
      %749 = arith.divf %747, %748 : vector<1x1xf32>
      %750 = tpu.iota {dimensions = array<i32: 1>} : vector<1x128xi32>
      %c0_i32_444 = arith.constant 0 : i32
      %751 = vector.broadcast %c0_i32_444 : i32 to vector<1x128xi32>
      %752 = arith.cmpi eq, %750, %751 : vector<1x128xi32>
      %cst_445 = arith.constant 0.000000e+00 : f32
      %753 = vector.shape_cast %551 : vector<1x1xf32> to vector<1x1xf32>
      %754 = vector.broadcast %753 : vector<1x1xf32> to vector<1x128xf32>
      %755 = vector.broadcast %cst_445 : f32 to vector<1x128xf32>
      %756 = arith.select %752, %754, %755 : vector<1x128xi1>, vector<1x128xf32>
      %c1_i32_446 = arith.constant 1 : i32
      %757 = vector.broadcast %c1_i32_446 : i32 to vector<1x128xi32>
      %758 = arith.cmpi eq, %750, %757 : vector<1x128xi32>
      %cst_447 = arith.constant 0.000000e+00 : f32
      %759 = vector.shape_cast %707 : vector<1x1xf32> to vector<1x1xf32>
      %760 = vector.broadcast %759 : vector<1x1xf32> to vector<1x128xf32>
      %761 = vector.broadcast %cst_447 : f32 to vector<1x128xf32>
      %762 = arith.select %758, %760, %761 : vector<1x128xi1>, vector<1x128xf32>
      %763 = arith.addf %756, %762 : vector<1x128xf32>
      %c2_i32_448 = arith.constant 2 : i32
      %764 = vector.broadcast %c2_i32_448 : i32 to vector<1x128xi32>
      %765 = arith.cmpi eq, %750, %764 : vector<1x128xi32>
      %cst_449 = arith.constant 0.000000e+00 : f32
      %766 = vector.shape_cast %676 : vector<1x1xf32> to vector<1x1xf32>
      %767 = vector.broadcast %766 : vector<1x1xf32> to vector<1x128xf32>
      %768 = vector.broadcast %cst_449 : f32 to vector<1x128xf32>
      %769 = arith.select %765, %767, %768 : vector<1x128xi1>, vector<1x128xf32>
      %770 = arith.addf %763, %769 : vector<1x128xf32>
      %c3_i32_450 = arith.constant 3 : i32
      %771 = vector.broadcast %c3_i32_450 : i32 to vector<1x128xi32>
      %772 = arith.cmpi eq, %750, %771 : vector<1x128xi32>
      %cst_451 = arith.constant 0.000000e+00 : f32
      %773 = vector.shape_cast %749 : vector<1x1xf32> to vector<1x1xf32>
      %774 = vector.broadcast %773 : vector<1x1xf32> to vector<1x128xf32>
      %775 = vector.broadcast %cst_451 : f32 to vector<1x128xf32>
      %776 = arith.select %772, %774, %775 : vector<1x128xi1>, vector<1x128xf32>
      %777 = arith.addf %770, %776 : vector<1x128xf32>
      %c0_452 = arith.constant 0 : index
      %c0_453 = arith.constant 0 : index
      %778 = vector.load %arg7[%c0_452, %c0_453] : memref<1x128xf32, #tpu.memory_space<vmem>>, vector<1x128xf32>
      tpu.vector_store %arg7[%c0_452, %c0_453], %777 {strides = array<i32>} : memref<1x128xf32, #tpu.memory_space<vmem>>, vector<1x128xf32>,
    } else {
    }
    return
  }
  func.func @transform_0(%arg0: i32, %arg1: i32) -> (i32, i32, i32, i32) {
    %c0_i32 = arith.constant 0 : i32
    %c0_i32_0 = arith.constant 0 : i32
    %c0_i32_1 = arith.constant 0 : i32
    return %arg0, %c0_i32, %arg1, %c0_i32_0 : i32, i32, i32, i32
  }
  func.func @transform_1(%arg0: i32, %arg1: i32) -> (i32, i32, i32, i32) {
    %c0_i32 = arith.constant 0 : i32
    %c0_i32_0 = arith.constant 0 : i32
    %c0_i32_1 = arith.constant 0 : i32
    return %arg0, %c0_i32, %arg1, %c0_i32_0 : i32, i32, i32, i32
  }
  func.func @transform_2(%arg0: i32, %arg1: i32) -> (i32, i32, i32) {
    %c0_i32 = arith.constant 0 : i32
    %c0_i32_0 = arith.constant 0 : i32
    return %arg0, %arg1, %c0_i32 : i32, i32, i32
  }
  func.func @transform_3(%arg0: i32, %arg1: i32) -> (i32, i32, i32) {
    %c0_i32 = arith.constant 0 : i32
    %c0_i32_0 = arith.constant 0 : i32
    return %arg0, %arg1, %c0_i32 : i32, i32, i32
  }
  func.func @transform_4(%arg0: i32, %arg1: i32) -> (i32, i32, i32) {
    %c0_i32 = arith.constant 0 : i32
    %c0_i32_0 = arith.constant 0 : i32
    return %arg0, %arg1, %c0_i32 : i32, i32, i32
  }
  func.func @transform_5(%arg0: i32, %arg1: i32) -> (i32, i32) {
    %c0_i32 = arith.constant 0 : i32
    %c0_i32_0 = arith.constant 0 : i32
    %c0_i32_1 = arith.constant 0 : i32
    return %c0_i32, %c0_i32_0 : i32, i32
  }
}

</mosaic_0001>

<bundles_post_ra>
// kernel: tpu_custom_call.1
= control target key start
LH: loop header
LB: loop body
LE: loop exit
PB: predicated region body
PF: predicated region fallthrough
CT: control target
= control target key end

     0   :  { %10 = vsyncpa [#allocation17], 0  ;;  %s2186_s0 = inlined_call_operand.hbm [shape: f32[2,4,2,128], index: 0, kind: input, shape index: {}]   ;;  %s2187_s1 = inlined_call_operand.hbm [shape: f32[2,4,2,128], index: 1, kind: input, shape index: {}]   ;;  %s2188_s2 = inlined_call_operand.vmem [shape: s32[2,2,128], index: 2, kind: input, shape index: {}]   ;;  %s2189_s3 = inlined_call_operand.vmem [shape: f32[2,2,128], index: 3, kind: input, shape index: {}]   ;;  %s2190_s4 = inlined_call_operand.vmem [shape: f32[2,2,128], index: 4, kind: input, shape index: {}]   ;;  %s2191_s5 = inlined_call_operand.hbm [shape: f32[1,128], index: 5, kind: output, shape index: {}]  }
   0x1   :  { %12 = vsyncpa [#allocation17 + $0x1], 0 }
   0x2   :  { %13 = vsyncpa [#allocation20], 0 }
   0x3   :  { %15 = vsyncpa [#allocation20 + $0x1], 0 }
   0x4   :  { %16 = vsyncpa [#allocation18], 0  ;;  %s1713_s18 = smov 0   ;;  %s1715_s19 = smov 0  }
   0x5   :  { %s1717_s20 = smov 0   ;;  %s1719_s21 = smov 0  }
   0x6   :  { %s1721_s22 = smov 0   ;;  %s1723_s23 = smov 0  }
   0x7 LB: > { %s1309_s24 = sadd.s32 4294967295, %s1674_s23   ;;  %s34_s25 = sadd.s32 1, %s1670_s22  ;;  %s1674_s23 = sphi %s1723_s23, %s22_s23   ;;  %s1670_s22 = sphi %s1721_s22, %s2203_s22   ;;  %s1666_s21 = sphi %s1719_s21, %s2202_s21   ;;  %s1662_s20 = sphi %s1717_s20, %s2201_s20   ;;  %s1658_s19 = sphi %s1715_s19, %s2200_s19   ;;  %s1654_s18 = sphi %s1713_s18, %s2199_s18  }
   0x8   : > { %p36_p0 = scmp.ge.s32.totalorder %s34_s25, 2  ;;  %s43_s26 = sadd.s32 1, %s1662_s20 }
   0x9   : > { %p50_p1 = scmp.ne.s32.totalorder %s1662_s20, %s1658_s19  ;;  %p51_p2 = scmp.eq.s32.totalorder %s1674_s23, 0 }
   0xa   : > { %s2205_s25 = smov (%p36_p0, %s34_s25), 0  ;;  %p56_p4 = scmp.ne.s32.totalorder %s1658_s19, %s1654_s18 }
   0xb   : > { %p1749_p3 = por %p51_p2, %p50_p1  ;;  %s38_s28 = ssub.s32 %s1670_s22, %s2205_s25 }
   0xc   : > { %p57_p5 = scmp.eq.s32.totalorder %s1309_s24, 0  ;;  %p41_p6 = scmp.eq.s32.totalorder %s38_s28, 0 }
   0xd   : > { %p1428_p8 = scmp.lt.s32.totalorder %s1674_s23, 2  ;;  %s1767_s6 = sand.u32 1, %s1662_s20  }
   0xe   : > { %p1758_p7 = por %p57_p5, %p56_p4  ;;  %s1357_s7 = sshll.u32 %s1670_s22, 7 }
   0xf   : > { %s1764_s30 = scalar_select %p41_p6, %s1662_s20, %s43_s26  }
  0x10   : > { %s2194_s29 = scalar_select %p1758_p7, 1, 0 }
  0x11   : > { %s1312_s8 = sshll.u32 %s1767_s6, 3  ;;  %s1776_s11 = scalar_lea.hbm %s2186_s0, %s1357_s7 }
  0x12   : > { %s217_s12 = scalar_lea.vmem [#allocation16], %s1312_s8  ;;  %p1782_p9 = pnand %p1428_p8, %p1749_p3 }
  0x13   : > { %s225_s13 = sshll.u32 %s217_s12, 4  ;;  %s214_s15 = scalar_lea.sflag [#allocation17], %s1767_s6  ;;  %s1786_s13 = int_to_ptr.vmem [resolvable:$true] %s225_s13 }
  0x14   : > { %s1530_s16 = scalar_lea.hbm %s1776_s11, 128  ;;  %p1532_p11 = pneg %p1782_p9 }
  0x15   : > { %p1531_p10 = scmp.ne.s32.totalorder %s1776_s11, %s1530_s16  ;;  %s1535_s26 = scalar_lea.hbm %s2186_s0, 256 }
  0x16   : > { %p1536_p0 = scmp.lt.u32.totalorder %s1776_s11, %s2186_s0  ;;  %p1537_p1 = scmp.lt.u32.totalorder %s1535_s26, %s1530_s16 }
  0x17   : > { %p1533_p12 = pnand %p1532_p11, %p1531_p10  ;;  %p1539_p3 = scmp.lt.u32.totalorder %s1530_s16, %s1776_s11 }
  0x18   : > { %p1538_p2 = por %p1537_p1, %p1536_p0 }
  0x19   : > { %p1534_p13 = pneg %p1533_p12 }
  0x1a   : > { %p1540_p4 = por %p1539_p3, %p1538_p2 }
  0x1c   : > { %p1541_p5 = pnand %p1540_p4, %p1534_p13 }
  0x1e   : > { %1544 = shalt.err (!%p1541_p5)
}
  0x1f   : > { %s1545_s9 = scalar_lea.vmem %s1786_s13, 128  ;;  %s1676_s10 = smov [#allocation16]  }
  0x20   : > { %p1546_p6 = scmp.ne.s32.totalorder %s1786_s13, %s1545_s9  ;;  %s1550_s12 = sshll.u32 %s1676_s10, 4  ;;  %s1551_s12 = int_to_ptr.vmem [resolvable:$false] %s1550_s12 }
  0x21   : > { %s1552_s17 = scalar_lea.vmem %s1551_s12, 256  ;;  %p1553_p12 = scmp.lt.s32.totalorder %s1786_s13, %s1551_s12 }
  0x22   : > { %p1548_p8 = pnand %p1546_p6, %p1532_p11  ;;  %p1554_p0 = scmp.lt.s32.totalorder %s1552_s17, %s1545_s9 }
  0x24   : > { %p1549_p10 = pneg %p1548_p8  ;;  %p1555_p1 = por %p1554_p0, %p1553_p12 }
  0x26   : > { %p1556_p2 = pnand %p1555_p1, %p1549_p10 }
  0x28   : > { %1559 = shalt.err (!%p1556_p2)
}
  0x29   : > { %s1677_s16 = smov 32   ;;  %s1678_s18 = smov 2  }
  0x2a   : > { %1424 = dma.hbm_to_vmem [thread:$0]  (!%p1782_p9), %s1776_s11, 128, %s1786_s13, %s214_s15, %s1677_s16, %s1677_s16, %s1678_s18  }
  0x2b   : > { %p1318_p13 = scmp.ge.s32.totalorder %s1674_s23, 1  ;;  %p285_p3 = scmp.lt.s32.totalorder %s1674_s23, 3 }
  0x2c   : > { %s1830_s9 = scalar_lea.hbm %s2187_s1, %s1357_s7  ;;  %s239_s10 = scalar_lea.vmem [#allocation19], %s1312_s8 }
  0x2d   : > { %p1821_p4 = pnand %p1318_p13, %p285_p3  ;;  %s247_s12 = sshll.u32 %s239_s10, 4  ;;  %s1834_s12 = int_to_ptr.vmem [resolvable:$true] %s247_s12 }
  0x2e   : > { %s236_s11 = scalar_lea.sflag [#allocation20], %s1767_s6  ;;  %s1560_s13 = scalar_lea.hbm %s1830_s9, 128 }
  0x2f   : > { %p1561_p5 = scmp.ne.s32.totalorder %s1830_s9, %s1560_s13  ;;  %s1565_s7 = scalar_lea.hbm %s2187_s1, 256 }
  0x30   : > { %p1566_p10 = scmp.lt.u32.totalorder %s1830_s9, %s2187_s1  ;;  %p1567_p12 = scmp.lt.u32.totalorder %s1565_s7, %s1560_s13 }
  0x31   : > { %p1563_p6 = pnand %p1561_p5, %p1532_p11  ;;  %p1569_p1 = scmp.lt.u32.totalorder %s1560_s13, %s1830_s9 }
  0x32   : > { %p1568_p0 = por %p1567_p12, %p1566_p10 }
  0x33   : > { %p1564_p8 = pneg %p1563_p6 }
  0x34   : > { %p1570_p2 = por %p1569_p1, %p1568_p0 }
  0x36   : > { %p1571_p13 = pnand %p1570_p2, %p1564_p8 }
  0x38   : > { %1574 = shalt.err (!%p1571_p13)
}
  0x39   : > { %s1575_s8 = scalar_lea.vmem %s1834_s12, 128  ;;  %s1679_s10 = smov [#allocation19]  }
  0x3a   : > { %p1576_p3 = scmp.ne.s32.totalorder %s1834_s12, %s1575_s8  ;;  %s1580_s15 = sshll.u32 %s1679_s10, 4  ;;  %s1581_s15 = int_to_ptr.vmem [resolvable:$false] %s1580_s15 }
  0x3b   : > { %s1582_s17 = scalar_lea.vmem %s1581_s15, 256  ;;  %p1583_p7 = scmp.lt.s32.totalorder %s1834_s12, %s1581_s15 }
  0x3c   : > { %p1578_p5 = pnand %p1576_p3, %p1532_p11  ;;  %p1584_p10 = scmp.lt.s32.totalorder %s1582_s17, %s1575_s8 }
  0x3e   : > { %p1579_p6 = pneg %p1578_p5  ;;  %p1585_p12 = por %p1584_p10, %p1583_p7 }
  0x40   : > { %p1586_p0 = pnand %p1585_p12, %p1579_p6 }
  0x42   : > { %1589 = shalt.err (!%p1586_p0)
}
  0x43   : > { %1427 = dma.hbm_to_vmem [thread:$0]  (!%p1782_p9), %s1830_s9, 128, %s1834_s12, %s236_s11, %s1677_s16, %s1677_s16, %s1678_s18  }
  0x44   : > { %289 = sbr.rel (%p1821_p4) target bundleno = 483 (0x1e3), region = 40  ;;  %s291_s13 = sand.u32 (!%p1821_p4), 1, %s1658_s19  }
  0x45   : > { %s1319_s7 = sshll.u32 (!%p1821_p4), %s291_s13, 3  ;;  %s292_s27 = scalar_lea.sflag (!%p1821_p4), [#allocation17], %s291_s13 }
  0x46   : > { %s1868_s28 = scalar_lea.vmem (!%p1821_p4), [#allocation16], %s1319_s7  ;;  %p2197_p7 = scmp.ne.s32.totalorder (!%p1821_p4), %s2194_s29, 0 }
  0x4b   : > { %1641 = dma.done.wait (%p2197_p7), %s292_s27, 128  }
  0x4c   : > { %1643 = vsyncadd (%p2197_p7), %s292_s27, 4294967168  ;;  %s301_s6 = scalar_lea.sflag [#allocation20], %s291_s13  ;;  %s1874_s14 = scalar_lea.vmem [#allocation19], %s1319_s7 }
  0x4d   : > { %1645 = dma.done.wait (%p2197_p7), %s301_s6, 128  }
  0x4e   : > { %1647 = vsyncadd (%p2197_p7), %s301_s6, 4294967168  ;;  %p352_p9 = scmp.lt.s32.totalorder %s1666_s21, 1  ;;  %p373_p11 = scmp.eq.s32.totalorder %s1666_s21, 0 }
  0x4f   : > { %p377_p4 = scmp.eq.s32.totalorder %s1666_s21, 1  ;;  %v1680_v3 = vmov (%p373_p11), 0.0  }
  0x50   : > { %s353_s16 = scalar_select %p352_p9, %s1666_s21, 1 }
  0x51   : > { %384 = sbr.rel (!%p373_p11) target bundleno = 94 (0x5e), region = 52  ;;  %385 = vst [vmem:[#allocation2] sm:$0x3] (%p373_p11), %v1680_v3  ;;  %386 = vst [vmem:[#allocation2 + $0x2] sm:$0x3] (%p373_p11), %v1680_v3 }
  0x52   : > { %s1321_s18 = sshll.u32 %s353_s16, 1  ;;  %387 = vst [vmem:[#allocation2 + $0x4] sm:$0x3] (%p373_p11), %v1680_v3  ;;  %388 = vst [vmem:[#allocation2 + $0x6] sm:$0x3] (%p373_p11), %v1680_v3 }
  0x53   : > { %s358_s12 = scalar_lea.vmem %s2188_s2, %s1321_s18  ;;  %s365_s10 = scalar_lea.vmem %s2189_s3, %s1321_s18  ;;  %389 = vst [vmem:[#allocation3] sm:$0x3] (%p373_p11), %v1680_v3  ;;  %390 = vst [vmem:[#allocation3 + $0x2] sm:$0x3] (%p373_p11), %v1680_v3 }
  0x54   : > { %s372_s17 = scalar_lea.vmem %s2190_s4, %s1321_s18  ;;  %v1893_v0 = vld [vmem:[%s358_s12] sm:$0x3]  ;;  %391 = vst [vmem:[#allocation3 + $0x4] sm:$0x3] (%p373_p11), %v1680_v3  ;;  %392 = vst [vmem:[#allocation3 + $0x6] sm:$0x3] (%p373_p11), %v1680_v3 }
  0x55   : > { %v1895_v1 = vld [vmem:[%s365_s10] sm:$0x3]  ;;  %393 = vst [vmem:[#allocation4] sm:$0x3] (%p373_p11), %v1680_v3  ;;  %394 = vst [vmem:[#allocation4 + $0x2] sm:$0x3] (%p373_p11), %v1680_v3 }
  0x56   : > { %v1897_v2 = vld [vmem:[%s372_s17] sm:$0x3]  ;;  %395 = vst [vmem:[#allocation4 + $0x4] sm:$0x3] (%p373_p11), %v1680_v3  ;;  %396 = vst [vmem:[#allocation4 + $0x6] sm:$0x3] (%p373_p11), %v1680_v3 }
  0x57   : > { %397 = vst [vmem:[#allocation5] sm:$0x3] (%p373_p11), %v1680_v3  ;;  %398 = vst [vmem:[#allocation5 + $0x2] sm:$0x3] (%p373_p11), %v1680_v3 }
  0x58   : > { %399 = vst [vmem:[#allocation5 + $0x4] sm:$0x3] %v1680_v3  ;;  %400 = vst [vmem:[#allocation5 + $0x6] sm:$0x3] %v1680_v3 }
  0x59   : > { %401 = vst [vmem:[#allocation7] sm:$0x3] %v1680_v3  ;;  %402 = vst [vmem:[#allocation7 + $0x2] sm:$0x3] %v1680_v3 }
  0x5a   : > { %403 = vst [vmem:[#allocation8] sm:$0x3] %v1680_v3  ;;  %404 = vst [vmem:[#allocation9] sm:$0x3] %v1680_v3 }
  0x5b   : > { %405 = vst [vmem:[#allocation10] sm:$0x3] %v1680_v3  ;;  %406 = vst [vmem:[#allocation11] sm:$0x3] %v1680_v3 }
  0x5c   : > { %407 = vst [vmem:[#allocation12] sm:$0x3] %v1680_v3  ;;  %408 = vst [vmem:[#allocation13] sm:$0x3] %v1680_v3 }
  0x5d   : > { %409 = vst [vmem:[#allocation14] sm:$0x3] %v1680_v3  ;;  %410 = vst [vmem:[#allocation15] sm:$0x3] %v1680_v3 }
  0x5e PF: > { %vm411_vm0 = vcmp.eq.s32.totalorder %v1893_v0, 5  ;;  %v414_v4 = vld [vmem:[%s1868_s28] sm:$0x3]  ;;  %v415_v5 = vld [vmem:[%s1874_s14] sm:$0x3]  ;;  %vm628_vm1 = vcmp.eq.s32.totalorder %v1893_v0, 3 }
  0x5f   : > { %v416_v6 = vsel %vm411_vm0, 0.0, %v414_v4  ;;  %v1326_v7 = vld [vmem:[%s1868_s28 + $0x2] sm:$0x3]  ;;  %v1327_v8 = vld [vmem:[%s1874_s14 + $0x2] sm:$0x3]  ;;  %v1681_v14 = vmov 0.0  }
  0x60   : > { %v417_v9 = vadd.f32 %v416_v6, %v415_v5  ;;  %v421_v10 = vmax.f32 %v414_v4, %v1326_v7  ;;  %v424_v11 = vsel %vm411_vm0, 0.0, %v1326_v7  ;;  %v1328_v12 = vld [vmem:[%s1868_s28 + $0x4] sm:$0x3]  ;;  %v1329_v13 = vld [vmem:[%s1874_s14 + $0x4] sm:$0x3]  ;;  %v1912_v15 = vsel %vm628_vm1, 1.0, %v1681_v14 }
  0x61   : > { %v425_v16 = vadd.f32 %v1327_v8, %v424_v11  ;;  %v433_v17 = vsel %vm411_vm0, 0.0, %v1328_v12  ;;  %v1330_v18 = vld [vmem:[%s1868_s28 + $0x6] sm:$0x3]  ;;  %v1331_v19 = vld [vmem:[%s1874_s14 + $0x6] sm:$0x3]  ;;  %vm506_vm2 = vcmp.eq.s32.totalorder %v1893_v0, 0 }
  0x62   : > { %v418_v20 = vmul.f32 2.0, %v417_v9  ;;  %v430_v21 = vmax.f32 %v421_v10, %v1328_v12  ;;  %v434_v22 = vadd.f32 %v1329_v13, %v433_v17  ;;  %v442_v23 = vsel %vm411_vm0, 0.0, %v1330_v18  ;;  %v1332_v24 = vld [vmem:[%s1868_s28 + $0x2] sm:$0x3]  ;;  %v1333_v25 = vld [vmem:[%s1874_s14 + $0x2] sm:$0x3] }
  0x63   : > { %v426_v26 = vmul.f32 2.0, %v425_v16  ;;  %v443_v27 = vadd.f32 %v1331_v19, %v442_v23  ;;  %v461_v28 = vsel %vm411_vm0, 0.0, %v1332_v24  ;;  %v1334_v29 = vld [vmem:[%s1868_s28 + $0x4] sm:$0x3]  ;;  %v1335_v30 = vld [vmem:[%s1874_s14 + $0x4] sm:$0x3] }
  0x64   : > { %v435_v31 = vmul.f32 2.0, %v434_v22  ;;  %v1927_v32 = vmax.f32 %v430_v21, %v1330_v18  ;;  %v462_v33 = vadd.f32 %v1333_v25, %v461_v28  ;;  %v476_v34 = vsel %vm411_vm0, 0.0, %v1334_v29  ;;  %v1336_v35 = vld [vmem:[%s1868_s28 + $0x6] sm:$0x3]  ;;  %v1337_v36 = vld [vmem:[%s1874_s14 + $0x6] sm:$0x3] }
  0x65   : > { %v427_v37 = vmax.f32 %v418_v20, %v426_v26  ;;  %v444_v38 = vmul.f32 2.0, %v443_v27  ;;  %v477_v39 = vadd.f32 %v1335_v30, %v476_v34  ;;  %v491_v40 = vsel %vm411_vm0, 0.0, %v1336_v35  ;;  %v512_v49 = vld [vmem:[#allocation2] sm:$0x3]  ;;  %v551_v61 = vld [vmem:[#allocation2 + $0x2] sm:$0x3] }
  0x66   : > { %v446_v41 = vsub.f32 %v414_v4, %v1927_v32  ;;  %v456_v42 = vsub.f32 %v1332_v24, %v1927_v32  ;;  %v463_v43 = vmul.f32 2.0, %v462_v33  ;;  %v471_v44 = vsub.f32 %v1334_v29, %v1927_v32  ;;  %v515_v3 = vld [vmem:[#allocation3] sm:$0x3]  ;;  %v555_v5 = vld [vmem:[#allocation3 + $0x2] sm:$0x3] }
  0x67   : > { %v436_v45 = vmax.f32 %v427_v37, %v435_v31  ;;  %v478_v46 = vmul.f32 2.0, %v477_v39  ;;  %v486_v47 = vsub.f32 %v1336_v35, %v1927_v32  ;;  %v492_v48 = vadd.f32 %v1337_v36, %v491_v40  ;;  %v593_v11 = vld [vmem:[#allocation2 + $0x4] sm:$0x3]  ;;  %v597_v19 = vld [vmem:[#allocation3 + $0x4] sm:$0x3] }
  0x68   : > { %v447_v50 = vmul.f32 1.442695, %v446_v41  ;;  %v457_v51 = vmul.f32 1.442695, %v456_v42  ;;  %v472_v52 = vmul.f32 1.442695, %v471_v44 }
  0x69   : > { %v445_v53 = vmax.f32 %v436_v45, %v444_v38  ;;  %v487_v54 = vmul.f32 1.442695, %v486_v47  ;;  %v493_v55 = vmul.f32 2.0, %v492_v48  ;;  %v1942_v56 = vsel %vm506_vm2, 1.0, %v1681_v14  ;;  %v639_v23 = vld [vmem:[#allocation3 + $0x6] sm:$0x3] }
  0x6a   : > { %1484 = vpow2.f32 %v447_v50  ;;  %v513_v57 = vadd.f32 %v1942_v56, %v512_v49  ;;  %vm412_vm3 = vcmp.gt.f32.partialorder %v1895_v1, 0.8  ;;  %vm544_vm4 = vcmp.eq.s32.totalorder %v1893_v0, 1  ;;  %v682_v31 = vld [vmem:[#allocation7] sm:$0x3] }
  0x6b   : > { %v450_v58 = vsub.f32 %v418_v20, %v445_v53  ;;  %1486 = vpow2.f32 %v457_v51  ;;  %v464_v59 = vsub.f32 %v463_v43, %v445_v53  ;;  %v479_v60 = vsub.f32 %v478_v46, %v445_v53  ;;  %v635_v20 = vld [vmem:[#allocation2 + $0x6] sm:$0x3]  ;;  %v689_v36 = vld [vmem:[#allocation7 + $0x2] sm:$0x3]  ;;  %v712_v38 = vld [vmem:[#allocation12] sm:$0x3] }
  0x6c   : > { %1488 = vpow2.f32 %v472_v52  ;;  %v494_v62 = vsub.f32 %v493_v55, %v445_v53  ;;  %514 = vst [vmem:[#allocation2] sm:$0x3] %v513_v57  ;;  %v413_v63 = vsel %vm412_vm3, %v1893_v0, 255  ;;  %v1949_v4 = vsel %vm544_vm4, 1.0, %v1681_v14  ;;  %v676_v42 = vld [vmem:[#allocation11] sm:$0x3] }
  0x6d   : > { %v451_v6 = vmul.f32 1.442695, %v450_v58  ;;  %v465_v7 = vmul.f32 1.442695, %v464_v59  ;;  %v480_v8 = vmul.f32 1.442695, %v479_v60  ;;  %1490 = vpow2.f32 %v487_v54 }
  0x6e   : > { %v495_v9 = vmul.f32 1.442695, %v494_v62  ;;  %vm509_vm5 = vcmp.eq.s32.totalorder %v413_v63, 0  ;;  %v552_v10 = vadd.f32 %v1949_v4, %v551_v61  ;;  %vm547_vm6 = vcmp.eq.s32.totalorder %v413_v63, 1  ;;  %v715_v45 = vld [vmem:[#allocation13] sm:$0x3] }
  0x6f   : > { %1492 = vpow2.f32 %v451_v6  ;;  %v1953_v12 = vsel %vm509_vm5, 1.0, %v1681_v14  ;;  %v1956_v13 = vsel %vm547_vm6, 1.0, %v1681_v14  ;;  %vm586_vm7 = vcmp.eq.s32.totalorder %v1893_v0, 2 }
  0x70   : > { %1494 = vpow2.f32 %v465_v7  ;;  %v516_v16 = vadd.f32 %v1953_v12, %v515_v3  ;;  %553 = vst [vmem:[#allocation2 + $0x2] sm:$0x3] %v552_v10  ;;  %v556_v17 = vadd.f32 %v1956_v13, %v555_v5  ;;  %v1962_v18 = vsel %vm586_vm7, 1.0, %v1681_v14  ;;  %v504_v5 = vld [vmem:[%s1868_s28] sm:$0x3] }
  0x71   : > { %1496 = vpow2.f32 %v480_v8  ;;  %v594_v21 = vadd.f32 %v1962_v18, %v593_v11  ;;  %vm589_vm8 = vcmp.eq.s32.totalorder %v413_v63, 2  ;;  %v636_v22 = vadd.f32 %v1912_v15, %v635_v20  ;;  %v1340_v8 = vld [vmem:[%s1868_s28 + $0x2] sm:$0x3]  ;;  %v1346_v11 = vld [vmem:[%s1868_s28 + $0x6] sm:$0x3] }
  0x72   : > { %1498 = vpow2.f32 %v495_v9  ;;  %517 = vst [vmem:[#allocation3] sm:$0x3] %v516_v16  ;;  %557 = vst [vmem:[#allocation3 + $0x2] sm:$0x3] %v556_v17  ;;  %v1967_v24 = vsel %vm589_vm8, 1.0, %v1681_v14  ;;  %vm631_vm9 = vcmp.eq.s32.totalorder %v413_v63, 3  ;;  %v583_v25 = vadd.f32 %v1949_v4, %v1942_v56 }
  0x73   : > { %595 = vst [vmem:[#allocation2 + $0x4] sm:$0x3] %v594_v21  ;;  %v598_v26 = vadd.f32 %v1967_v24, %v597_v19  ;;  %637 = vst [vmem:[#allocation2 + $0x6] sm:$0x3] %v636_v22  ;;  %v1973_v27 = vsel %vm631_vm9, 1.0, %v1681_v14  ;;  %vm683_vm10 = vcmp.eq.s32.totalorder %v1893_v0, 4  ;;  %v702_v22 = vmul.f32 %v1897_v2, %v1895_v1 }
  0x74   : > { %v1485_v28 = vpop.eup %1484  ;;  %v640_v29 = vadd.f32 %v1973_v27, %v639_v23  ;;  %v625_v30 = vadd.f32 %v1962_v18, %v583_v25  ;;  %v1349_v33 = vsel %vm683_vm10, 1.0, %v1681_v14  ;;  %vm690_vm11 = vcmp.eq.s32.totalorder %v413_v63, 4  ;;  %v1343_v9 = vld [vmem:[%s1868_s28 + $0x4] sm:$0x3] }
  0x75   : > { %v1487_v34 = vpop.eup %1486  ;;  %599 = vst [vmem:[#allocation3 + $0x4] sm:$0x3] %v598_v26  ;;  %v686_v35 = vadd.f32 %v1349_v33, %v682_v31  ;;  %v1350_v37 = vsel %vm690_vm11, 1.0, %v1681_v14  ;;  %vm695_vm12 = vcmp.eq.f32.partialorder %v1897_v2, 1.0  ;;  %vm698_vm13 = vcmp.eq.f32.partialorder %v1897_v2, 0.0 }
  0x76   : > { %v1489_v39 = vpop.eup %1488  ;;  %v459_v40 = vadd.f32 %v1487_v34, %v1485_v28  ;;  %641 = vst [vmem:[#allocation3 + $0x6] sm:$0x3] %v640_v29  ;;  %v667_v41 = vadd.f32 %v1912_v15, %v625_v30  ;;  %v693_v43 = vadd.f32 %v1350_v37, %v689_v36  ;;  %v1983_v44 = vsel %vm695_vm12, 1.0, %v1681_v14  ;;  %v518_v26 = vld [vmem:[#allocation4] sm:$0x3] }
  0x77   : > { %v1491_v46 = vpop.eup %1490  ;;  %687 = vst [vmem:[#allocation7] sm:$0x3] %v686_v35  ;;  %v713_v47 = vadd.f32 %v1983_v44, %v712_v38  ;;  %v704_v48 = vand.u32 2147483647, %v1895_v1  ;;  %v1991_v51 = vsel %vm698_vm13, 1.0, %v1681_v14  ;;  %vm729_vm7 = vcmask (%p377_p4), 1041408  }
  0x78   : > { %v474_v49 = vadd.f32 %v1489_v39, %v459_v40  ;;  %v669_v50 = vsel %vm411_vm0, 1.0, %v667_v41  ;;  %694 = vst [vmem:[#allocation7 + $0x2] sm:$0x3] %v693_v43  ;;  %v716_v54 = vadd.f32 %v1991_v51, %v715_v45  ;;  %v522_v36 = vld [vmem:[#allocation5] sm:$0x3] }
  0x79   : > { %v1493_v52 = vpop.eup %1492  ;;  %v677_v53 = vadd.f32 %v676_v42, %v669_v50  ;;  %714 = vst [vmem:[#allocation12] sm:$0x3] %v713_v47  ;;  %v705_v55 = vsub.f32 0.0, %v704_v48  ;;  %v559_v37 = vld [vmem:[#allocation4 + $0x2] sm:$0x3] }
  0x7a   : > { %v1495_v57 = vpop.eup %1494  ;;  %453 = vst [vmem:[#allocation6] sm:$0x3] %v1493_v52  ;;  %v489_v58 = vadd.f32 %v1491_v46, %v474_v49  ;;  %717 = vst [vmem:[#allocation13] sm:$0x3] %v716_v54  ;;  %v564_v38 = vld [vmem:[#allocation5 + $0x2] sm:$0x3] }
  0x7b   : > { %v1497_v59 = vpop.eup %1496  ;;  %468 = vst [vmem:[#allocation6 + $0x2] sm:$0x3] %v1495_v57  ;;  %v469_v60 = vadd.f32 %v1495_v57, %v1493_v52  ;;  %678 = vst [vmem:[#allocation11] sm:$0x3] %v677_v53  ;;  %v706_v61 = vmul.f32 1.442695, %v705_v55 }
  0x7c   : > { %v1499_v14 = vpop.eup %1498  ;;  %483 = vst [vmem:[#allocation6 + $0x4] sm:$0x3] %v1497_v59  ;;  %1500 = vlog2.f32 %v489_v58  ;;  %v679_v50 = vld [vmem:[#allocation10] sm:$0x3]  ;;  %v601_v57 = vld [vmem:[#allocation4 + $0x4] sm:$0x3] }
  0x7d   : > { %v484_v62 = vadd.f32 %v1497_v59, %v469_v60  ;;  %498 = vst [vmem:[#allocation6 + $0x6] sm:$0x3] %v1499_v14  ;;  %1502 = vpow2.f32 %v706_v61  ;;  %v606_v58 = vld [vmem:[#allocation5 + $0x4] sm:$0x3]  ;;  %v701_v61 = vmax.f32 %v1895_v1, 0.0 }
  0x7f   : > { %v499_v63 = vadd.f32 %v1499_v14, %v484_v62  ;;  %v703_v1 = vsub.f32 %v701_v61, %v702_v22 }
  0x81   : > { %1504 = vrcp.f32 %v499_v63  ;;  %v526_v10 = vld [vmem:[#allocation6] sm:$0x3] }
  0x82   : > { %v568_v17 = vld [vmem:[#allocation6 + $0x2] sm:$0x3] }
  0x83   : > { %v610_v19 = vld [vmem:[#allocation6 + $0x4] sm:$0x3] }
  0x84   : > { %v652_v20 = vld [vmem:[#allocation6 + $0x6] sm:$0x3] }
  0x86   : > { %v1501_v3 = vpop.eup %1500 }
  0x87   : > { %v1503_v6 = vpop.eup %1502  ;;  %v501_v7 = vmul.f32 0.6931472, %v1501_v3 }
  0x88   : > { %v708_v16 = vadd.f32 1.0, %v1503_v6 }
  0x89   : > { %v502_v21 = vadd.f32 %v501_v7, %v1927_v32 }
  0x8a   : > { %1506 = vlog2.f32 %v708_v16 }
  0x8b   : > { %v1505_v23 = vpop.eup %1504  ;;  %v505_v25 = vsub.f32 %v504_v5, %v502_v21  ;;  %v543_v28 = vsub.f32 %v1340_v8, %v502_v21  ;;  %v585_v29 = vsub.f32 %v1343_v9, %v502_v21  ;;  %v627_v30 = vsub.f32 %v1346_v11, %v502_v21 }
  0x8c   : > { %v527_v31 = vmul.f32 %v1505_v23, %v526_v10  ;;  %v569_v33 = vmul.f32 %v1505_v23, %v568_v17  ;;  %v611_v34 = vmul.f32 %v1505_v23, %v610_v19  ;;  %v653_v35 = vmul.f32 %v1505_v23, %v652_v20  ;;  %v718_v19 = vld [vmem:[#allocation14] sm:$0x3]  ;;  %v722_v20 = vld [vmem:[#allocation15] sm:$0x3] }
  0x8d   : > { %v519_v39 = vmul.f32 %v1942_v56, %v505_v25  ;;  %v523_v32 = vmul.f32 %v1953_v12, %v505_v25  ;;  %v560_v2 = vmul.f32 %v1949_v4, %v543_v28  ;;  %v565_v40 = vmul.f32 %v1956_v13, %v543_v28  ;;  %v643_v12 = vld [vmem:[#allocation4 + $0x6] sm:$0x3] }
  0x8e   : > { %v528_v41 = vmul.f32 2.0, %v527_v31  ;;  %v570_v42 = vmul.f32 2.0, %v569_v33  ;;  %v612_v43 = vmul.f32 2.0, %v611_v34  ;;  %v654_v45 = vmul.f32 2.0, %v653_v35 }
  0x8f   : > { %v520_v46 = vadd.f32 %v519_v39, %v518_v26  ;;  %v524_v47 = vadd.f32 %v523_v32, %v522_v36  ;;  %v561_v48 = vadd.f32 %v560_v2, %v559_v37  ;;  %v566_v49 = vadd.f32 %v565_v40, %v564_v38 }
  0x90   : > { %v529_v52 = vmul.f32 %v528_v41, %v527_v31  ;;  %v571_v53 = vmul.f32 %v570_v42, %v569_v33  ;;  %v613_v54 = vmul.f32 %v612_v43, %v611_v34  ;;  %v655_v55 = vmul.f32 %v654_v45, %v653_v35 }
  0x91   : > { %521 = vst [vmem:[#allocation4] sm:$0x3] %v520_v46  ;;  %525 = vst [vmem:[#allocation5] sm:$0x3] %v524_v47  ;;  %v602_v13 = vmul.f32 %v1962_v18, %v585_v29  ;;  %v607_v59 = vmul.f32 %v1967_v24, %v585_v29  ;;  %v644_v60 = vmul.f32 %v1912_v15, %v627_v30  ;;  %v648_v24 = vld [vmem:[#allocation5 + $0x6] sm:$0x3] }
  0x92   : > { %562 = vst [vmem:[#allocation4 + $0x2] sm:$0x3] %v561_v48  ;;  %567 = vst [vmem:[#allocation5 + $0x2] sm:$0x3] %v566_v49  ;;  %v530_v14 = vadd.f32 1e-06, %v529_v52  ;;  %v680_v3 = vmax.f32 %v679_v50, %v1505_v23  ;;  %v649_v10 = vmul.f32 %v1973_v27, %v627_v30 }
  0x93   : > { %v572_v62 = vadd.f32 1e-06, %v571_v53  ;;  %v614_v63 = vadd.f32 1e-06, %v613_v54  ;;  %v656_v5 = vadd.f32 1e-06, %v655_v55  ;;  %v603_v6 = vadd.f32 %v602_v13, %v601_v57 }
  0x94   : > { %v608_v7 = vadd.f32 %v607_v59, %v606_v58  ;;  %v645_v8 = vadd.f32 %v644_v60, %v643_v12  ;;  %v1507_v9 = vpop.eup %1506  ;;  %1508 = vrsqrt.f32 %v530_v14  ;;  %681 = vst [vmem:[#allocation10] sm:$0x3] %v680_v3  ;;  %v650_v11 = vadd.f32 %v649_v10, %v648_v24  ;;  %v670_v50 = vld [vmem:[#allocation8] sm:$0x3]  ;;  %v673_v58 = vld [vmem:[#allocation9] sm:$0x3] }
  0x95   : > { %1510 = vrsqrt.f32 %v572_v62  ;;  %604 = vst [vmem:[#allocation4 + $0x4] sm:$0x3] %v603_v6  ;;  %v710_v16 = vmul.f32 0.6931472, %v1507_v9  ;;  %vm533_vm14 = vcmp.eq.f32.partialorder %v530_v14, inf  ;;  %vm535_vm15 = vcmp.eq.f32.partialorder %v530_v14, 0.0 }
  0x96   : > { %609 = vst [vmem:[#allocation5 + $0x4] sm:$0x3] %v608_v7  ;;  %646 = vst [vmem:[#allocation4 + $0x6] sm:$0x3] %v645_v8  ;;  %1512 = vrsqrt.f32 %v614_v63  ;;  %v536_v30 = vand.u32 2147483648, %v530_v14  ;;  %vm575_vm1 = vcmp.eq.f32.partialorder %v572_v62, inf }
  0x97   : > { %1514 = vrsqrt.f32 %v656_v5  ;;  %651 = vst [vmem:[#allocation5 + $0x6] sm:$0x3] %v650_v11  ;;  %v711_v17 = vadd.f32 %v710_v16, %v703_v1  ;;  %vm577_vm2 = vcmp.eq.f32.partialorder %v572_v62, 0.0  ;;  %v578_v33 = vand.u32 2147483648, %v572_v62  ;;  %v765_v59 = vld [vmem:[#allocation2 + $0x2] sm:$0x3] (%p377_p4) }
  0x98   : > { %vm617_vm3 = vcmp.eq.f32.partialorder %v614_v63, inf  ;;  %vm619_vm4 = vcmp.eq.f32.partialorder %v614_v63, 0.0  ;;  %v620_v35 = vand.u32 2147483648, %v614_v63  ;;  %vm659_vm5 = vcmp.eq.f32.partialorder %v656_v5, inf  ;;  %v741_v60 = vld [vmem:[#allocation7 + $0x2] sm:$0x3] (%p377_p4) }
  0x99   : > { %v719_v21 = vmul.f32 %v1983_v44, %v711_v17  ;;  %v723_v23 = vmul.f32 %v1991_v51, %v711_v17  ;;  %vm661_vm6 = vcmp.eq.f32.partialorder %v656_v5, 0.0  ;;  %v662_v2 = vand.u32 2147483648, %v656_v5  ;;  %v801_v6 = vld [vmem:[#allocation4] sm:$0x3] (%p377_p4)  ;;  %v905_v11 = vld [vmem:[#allocation3 + $0x2] sm:$0x3] (%p377_p4) }
  0x9a   : > { %v766_v61 = vsel (%p377_p4), %vm729_vm7, %v765_v59, 0.0  ;;  %v742_v0 = vsel (%p377_p4), %vm729_vm7, %v741_v60, 0.0  ;;  %v802_v8 = vsel (%p377_p4), %vm729_vm7, %v801_v6, 0.0  ;;  %v893_v16 = vld [vmem:[#allocation3] sm:$0x3] (%p377_p4)  ;;  %v906_v17 = vsel (%p377_p4), %vm729_vm7, %v905_v11, 0.0 }
  0x9b   : > { %v720_v25 = vadd.f32 %v719_v21, %v718_v19  ;;  %v724_v26 = vadd.f32 %v723_v23, %v722_v20  ;;  %v894_v19 = vsel (%p377_p4), %vm729_vm7, %v893_v16, 0.0  ;;  %v929_v20 = vld [vmem:[#allocation3 + $0x6] sm:$0x3] (%p377_p4)  ;;  %v917_v21 = vld [vmem:[#allocation3 + $0x4] sm:$0x3] (%p377_p4) }
  0x9c   : > { %v825_v10 = vld [vmem:[#allocation4 + $0x4] sm:$0x3] (%p377_p4)  ;;  %v930_v23 = vsel (%p377_p4), %vm729_vm7, %v929_v20, 0.0 }
  0x9d   : > { %721 = vst [vmem:[#allocation14] sm:$0x3] %v720_v25  ;;  %725 = vst [vmem:[#allocation15] sm:$0x3] %v724_v26  ;;  %v837_v9 = vld [vmem:[#allocation4 + $0x6] sm:$0x3] (%p377_p4) }
  0x9e   : > { %v1509_v27 = vpop.eup %1508  ;;  %v838_v24 = vsel (%p377_p4), %vm729_vm7, %v837_v9, 0.0  ;;  %v826_v1 = vsel (%p377_p4), %vm729_vm7, %v825_v10, 0.0  ;;  %v953_v25 = vld [vmem:[#allocation5 + $0x2] sm:$0x3] (%p377_p4)  ;;  %v941_v26 = vld [vmem:[#allocation5] sm:$0x3] (%p377_p4) }
  0x9f   : > { %v1511_v28 = vpop.eup %1510  ;;  %v532_v29 = vmul.f32 %v1509_v27, %v530_v14  ;;  %v918_v27 = vsel (%p377_p4), %vm729_vm7, %v917_v21, 0.0 }
  0xa0   : > { %v1513_v22 = vpop.eup %1512  ;;  %v574_v31 = vmul.f32 %v1511_v28, %v572_v62  ;;  %v954_v28 = vsel (%p377_p4), %vm729_vm7, %v953_v25, 0.0 }
  0xa1   : > { %v1515_v44 = vpop.eup %1514  ;;  %v534_v51 = vsel %vm533_vm14, %v530_v14, %v532_v29  ;;  %v616_v34 = vmul.f32 %v1513_v22, %v614_v63  ;;  %v789_v14 = vld [vmem:[#allocation2 + $0x6] sm:$0x3] (%p377_p4)  ;;  %v942_v29 = vsel (%p377_p4), %vm729_vm7, %v941_v26, 0.0  ;;  %v965_v22 = vld [vmem:[#allocation5 + $0x4] sm:$0x3] (%p377_p4) }
  0xa2   : > { %v537_v36 = vsel %vm535_vm15, %v536_v30, %v534_v51  ;;  %v576_v37 = vsel %vm575_vm1, %v572_v62, %v574_v31  ;;  %v658_v38 = vmul.f32 %v1515_v44, %v656_v5  ;;  %v777_v62 = vld [vmem:[#allocation2 + $0x4] sm:$0x3] (%p377_p4)  ;;  %v977_v30 = vld [vmem:[#allocation5 + $0x6] sm:$0x3] (%p377_p4)  ;;  %v1045_v44 = vld [vmem:[#allocation13] sm:$0x3] (%p377_p4) }
  0xa3   : > { %v579_v39 = vsel %vm577_vm2, %v578_v33, %v576_v37  ;;  %v618_v32 = vsel %vm617_vm3, %v614_v63, %v616_v34  ;;  %v539_v40 = vmul.f32 %v1942_v56, %v537_v36  ;;  %v790_v63 = vsel (%p377_p4), %vm729_vm7, %v789_v14, 0.0  ;;  %v1033_v51 = vld [vmem:[#allocation12] sm:$0x3] (%p377_p4) }
  0xa4   : > { %v580_v41 = vadd.f32 %v579_v39, %v537_v36  ;;  %v621_v42 = vsel %vm619_vm4, %v620_v35, %v618_v32  ;;  %v660_v43 = vsel %vm659_vm5, %v656_v5, %v658_v38  ;;  %v581_v45 = vmul.f32 %v1949_v4, %v579_v39  ;;  %v753_v4 = vld [vmem:[#allocation2] sm:$0x3] (%p377_p4)  ;;  %v813_v5 = vld [vmem:[#allocation4 + $0x2] sm:$0x3] (%p377_p4)  ;;  %v1057_v37 = vld [vmem:[#allocation14] sm:$0x3] (%p377_p4) }
  0xa5   : > { %v663_v46 = vsel %vm661_vm6, %v662_v2, %v660_v43  ;;  %v623_v48 = vmul.f32 %v1962_v18, %v621_v42  ;;  %v728_v18 = vld [vmem:[#allocation7] sm:$0x3] (%p377_p4)  ;;  %v754_v13 = vsel (%p377_p4), %vm729_vm7, %v753_v4, 0.0  ;;  %v778_v3 = vsel (%p377_p4), %vm729_vm7, %v777_v62, 0.0  ;;  %v1089_v32 = vld [vmem:[#allocation10] sm:$0x3] (%p377_p4) }
  0xa6   : > { %v622_v47 = vadd.f32 %v621_v42, %v580_v41  ;;  %v582_v49 = vadd.f32 %v581_v45, %v539_v40  ;;  %v665_v53 = vmul.f32 %v1912_v15, %v663_v46  ;;  %v730_v15 = vsel (%p377_p4), %vm729_vm7, %v728_v18, 0.0  ;;  %755 = vadd.xlane.f32.xlu1 (%p377_p4), %v754_v13  ;;  %v1135_v43 = vld [vmem:[#allocation11] sm:$0x3] (%p377_p4) }
  0xa7   : > { %731 = vadd.xlane.f32.xlu0 (%p377_p4), %v730_v15  ;;  %v814_v7 = vsel (%p377_p4), %vm729_vm7, %v813_v5, 0.0  ;;  %v978_v31 = vsel (%p377_p4), %vm729_vm7, %v977_v30, 0.0  ;;  %v966_v33 = vsel (%p377_p4), %vm729_vm7, %v965_v22, 0.0  ;;  %v1046_v34 = vsel (%p377_p4), %vm729_vm7, %v1045_v44, 0.0 }
  0xa8   : > { %v664_v52 = vadd.f32 %v663_v46, %v622_v47  ;;  %v624_v54 = vadd.f32 %v623_v48, %v582_v49  ;;  %v1034_v35 = vsel (%p377_p4), %vm729_vm7, %v1033_v51, 0.0  ;;  %v1058_v39 = vsel (%p377_p4), %vm729_vm7, %v1057_v37, 0.0 }
  0xa9   : > { %727 = sbr.rel (!%p377_p4) target bundleno = 458 (0x1ca), region = 56  ;;  %v1090_v40 = vsel (%p377_p4), %vm729_vm7, %v1089_v32, -inf  ;;  %v1136_v46 = vsel (%p377_p4), %vm729_vm7, %v1135_v43, 0.0 }
  0xaa   : > { %v671_v55 = vadd.f32 %v670_v50, %v664_v52  ;;  %v666_v57 = vadd.f32 %v665_v53, %v624_v54  ;;  %767 = vadd.xlane.f32.xlu1 (%p377_p4), %v766_v61 }
  0xab   : > { %743 = vadd.xlane.f32.xlu0 (%p377_p4), %v742_v0 }
  0xac   : > { %672 = vst [vmem:[#allocation8] sm:$0x3] %v671_v55  ;;  %v668_v56 = vsel %vm411_vm0, %v537_v36, %v666_v57  ;;  %v1069_v36 = vld [vmem:[#allocation15] sm:$0x3] (%p377_p4) }
  0xad   : > { %v674_v12 = vadd.f32 %v673_v58, %v668_v56  ;;  %v1070_v38 = vsel (%p377_p4), %vm729_vm7, %v1069_v36, 0.0 }
  0xae   : > { %791 = vadd.xlane.f32.xlu1 (%p377_p4), %v790_v63 }
  0xaf   : > { %675 = vst [vmem:[#allocation9] sm:$0x3] %v674_v12  ;;  %779 = vadd.xlane.f32.xlu0 (%p377_p4), %v778_v3 }
  0xb2   : > { %815 = vadd.xlane.f32.xlu1 %v814_v7 }
  0xb3   : > { %803 = vadd.xlane.f32.xlu0 %v802_v8  ;;  %v1111_v2 = vld [vmem:[#allocation8] sm:$0x3] }
  0xb4   : > { %v1112_v41 = vsel %vm729_vm7, %v1111_v2, 0.0 }
  0xb6   : > { %839 = vadd.xlane.f32.xlu1 %v838_v24  ;;  %v1123_v42 = vld [vmem:[#allocation9] sm:$0x3] }
  0xb7   : > { %827 = vadd.xlane.f32.xlu0 %v826_v1  ;;  %v1124_v45 = vsel %vm729_vm7, %v1123_v42, 0.0 }
  0xba   : > { %907 = vadd.xlane.f32.xlu1 %v906_v17 }
  0xbb   : > { %895 = vadd.xlane.f32.xlu0 %v894_v19 }
  0xbe   : > { %931 = vadd.xlane.f32.xlu1 %v930_v23 }
  0xbf   : > { %919 = vadd.xlane.f32.xlu0 %v918_v27 }
  0xc2   : > { %955 = vadd.xlane.f32.xlu1 %v954_v28 }
  0xc3   : > { %943 = vadd.xlane.f32.xlu0 %v942_v29 }
  0xc6   : > { %979 = vadd.xlane.f32.xlu1 %v978_v31 }
  0xc7   : > { %967 = vadd.xlane.f32.xlu0 %v966_v33 }
  0xca   : > { %1047 = vadd.xlane.f32.xlu1 %v1046_v34 }
  0xcb   : > { %1035 = vadd.xlane.f32.xlu0 %v1034_v35 }
  0xce   : > { %1071 = vadd.xlane.f32.xlu1 %v1070_v38 }
  0xcf   : > { %1059 = vadd.xlane.f32.xlu0 %v1058_v39 }
  0xd2   : > { %1113 = vadd.xlane.f32.xlu1 %v1112_v41 }
  0xd3   : > { %1091 = vmax.xlane.f32.xlu0 %v1090_v40 }
  0xd6   : > { %1137 = vadd.xlane.f32.xlu1 %v1136_v46 }
  0xd7   : > { %1125 = vadd.xlane.f32.xlu0 %v1124_v45 }
 0x133   : > { %v756_v47 = vpop.xlane.xlu1 %755 }
 0x134   : > { %v732_v48 = vpop.xlane.xlu0 %731  ;;  %v757_v49 = vrot.slane %v756_v47, 4 }
 0x135   : > { %v733_v50 = vrot.slane %v732_v48, 4 }
 0x136   : > { %v758_v52 = vadd.f32 %v757_v49, %v756_v47 }
 0x137   : > { %v734_v53 = vadd.f32 %v733_v50, %v732_v48  ;;  %v768_v54 = vpop.xlane.xlu1 %767 }
 0x138   : > { %v744_v55 = vpop.xlane.xlu0 %743  ;;  %v759_v57 = vrot.slane %v758_v52, 2  ;;  %v769_v56 = vrot.slane %v768_v54, 4 }
 0x139   : > { %v735_v58 = vrot.slane %v734_v53, 2  ;;  %v745_v12 = vrot.slane %v744_v55, 4 }
 0x13a   : > { %v770_v4 = vadd.f32 %v769_v56, %v768_v54  ;;  %v760_v60 = vadd.f32 %v759_v57, %v758_v52 }
 0x13b   : > { %v746_v18 = vadd.f32 %v745_v12, %v744_v55  ;;  %v736_v13 = vadd.f32 %v735_v58, %v734_v53  ;;  %v792_v15 = vpop.xlane.xlu1 %791 }
 0x13c   : > { %v780_v59 = vpop.xlane.xlu0 %779  ;;  %v771_v61 = vrot.slane %v770_v4, 2  ;;  %v793_v14 = vrot.slane %v792_v15, 4  ;;  %v761_v24 = vrot.slane %v760_v60, 1 }
 0x13d   : > { %v747_v0 = vrot.slane %v746_v18, 2  ;;  %v781_v62 = vrot.slane %v780_v59, 4  ;;  %v737_v63 = vrot.slane %v736_v13, 1 }
 0x13e   : > { %v794_v3 = vadd.f32 %v793_v14, %v792_v15  ;;  %v772_v7 = vadd.f32 %v771_v61, %v770_v4  ;;  %v762_v30 = vadd.f32 %v761_v24, %v760_v60 }
 0x13f   : > { %v782_v5 = vadd.f32 %v781_v62, %v780_v59  ;;  %v748_v6 = vadd.f32 %v747_v0, %v746_v18  ;;  %v816_v8 = vpop.xlane.xlu1 %815  ;;  %v738_v10 = vadd.f32 %v737_v63, %v736_v13 }
 0x140   : > { %v804_v9 = vpop.xlane.xlu0 %803  ;;  %v795_v1 = vrot.slane %v794_v3, 2  ;;  %v817_v16 = vrot.slane %v816_v8, 4  ;;  %v773_v20 = vrot.slane %v772_v7, 1 }
 0x141   : > { %v783_v11 = vrot.slane %v782_v5, 2  ;;  %v805_v17 = vrot.slane %v804_v9, 4  ;;  %1361 = vpush %v738_v10  ;;  %v749_v19 = vrot.slane %v748_v6, 1 }
 0x142   : > { %v818_v21 = vadd.f32 %v817_v16, %v816_v8  ;;  %v796_v25 = vadd.f32 %v795_v1, %v794_v3  ;;  %v774_v22 = vadd.f32 %v773_v20, %v772_v7 }
 0x143   : > { %v806_v23 = vadd.f32 %v805_v17, %v804_v9  ;;  %v784_v27 = vadd.f32 %v783_v11, %v782_v5  ;;  %v840_v26 = vpop.xlane.xlu1 %839  ;;  %v750_v29 = vadd.f32 %v749_v19, %v748_v6 }
 0x144   : > { %v828_v28 = vpop.xlane.xlu0 %827  ;;  %v819_v31 = vrot.slane %v818_v21, 2  ;;  %v841_v44 = vrot.slane %v840_v26, 4  ;;  %v797_v35 = vrot.slane %v796_v25, 1 }
 0x145   : > { %v807_v33 = vrot.slane %v806_v23, 2  ;;  %v829_v51 = vrot.slane %v828_v28, 4  ;;  %1363 = vpush %v750_v29  ;;  %v785_v34 = vrot.slane %v784_v27, 1 }
 0x146   : > { %v842_v36 = vadd.f32 %v841_v44, %v840_v26  ;;  %1365 = vpush %v762_v30  ;;  %v820_v39 = vadd.f32 %v819_v31, %v818_v21  ;;  %v798_v41 = vadd.f32 %v797_v35, %v796_v25 }
 0x147   : > { %v830_v37 = vadd.f32 %v829_v51, %v828_v28  ;;  %v808_v38 = vadd.f32 %v807_v33, %v806_v23  ;;  %1367 = vpush %v774_v22  ;;  %v908_v32 = vpop.xlane.xlu1 %907  ;;  %v786_v40 = vadd.f32 %v785_v34, %v784_v27 }
 0x148   : > { %v896_v2 = vpop.xlane.xlu0 %895  ;;  %v843_v42 = vrot.slane %v842_v36, 2  ;;  %v909_v45 = vrot.slane %v908_v32, 4  ;;  %v821_v48 = vrot.slane %v820_v39, 1 }
 0x149   : > { %v831_v43 = vrot.slane %v830_v37, 2  ;;  %v897_v46 = vrot.slane %v896_v2, 4  ;;  %1369 = vpush %v786_v40  ;;  %v809_v47 = vrot.slane %v808_v38, 1 }
 0x14a   : > { %v910_v49 = vadd.f32 %v909_v45, %v908_v32  ;;  %1371 = vpush %v798_v41  ;;  %v844_v53 = vadd.f32 %v843_v42, %v842_v36  ;;  %v822_v58 = vadd.f32 %v821_v48, %v820_v39 }
 0x14b   : > { %v898_v50 = vadd.f32 %v897_v46, %v896_v2  ;;  %v832_v52 = vadd.f32 %v831_v43, %v830_v37  ;;  %v932_v54 = vpop.xlane.xlu1 %931  ;;  %v810_v57 = vadd.f32 %v809_v47, %v808_v38 }
 0x14c   : > { %v920_v55 = vpop.xlane.xlu0 %919  ;;  %v911_v56 = vrot.slane %v910_v49, 2  ;;  %v933_v4 = vrot.slane %v932_v54, 4  ;;  %v845_v15 = vrot.slane %v844_v53, 1 }
 0x14d   : > { %v899_v12 = vrot.slane %v898_v50, 2  ;;  %v921_v18 = vrot.slane %v920_v55, 4  ;;  %1373 = vpush %v810_v57  ;;  %v833_v13 = vrot.slane %v832_v52, 1 }
 0x14e   : > { %v934_v59 = vadd.f32 %v933_v4, %v932_v54  ;;  %1375 = vpush %v822_v58  ;;  %v912_v0 = vadd.f32 %v911_v56, %v910_v49  ;;  %v846_v3 = vadd.f32 %v845_v15, %v844_v53 }
 0x14f   : > { %v922_v60 = vadd.f32 %v921_v18, %v920_v55  ;;  %v900_v61 = vadd.f32 %v899_v12, %v898_v50  ;;  %v956_v14 = vpop.xlane.xlu1 %955  ;;  %v834_v63 = vadd.f32 %v833_v13, %v832_v52 }
 0x150   : > { %v944_v62 = vpop.xlane.xlu0 %943  ;;  %v935_v5 = vrot.slane %v934_v59, 2  ;;  %v957_v7 = vrot.slane %v956_v14, 4  ;;  %v913_v10 = vrot.slane %v912_v0, 1 }
 0x151   : > { %v923_v6 = vrot.slane %v922_v60, 2  ;;  %v945_v8 = vrot.slane %v944_v62, 4  ;;  %1377 = vpush %v834_v63  ;;  %v901_v9 = vrot.slane %v900_v61, 1 }
 0x152   : > { %v958_v24 = vadd.f32 %v957_v7, %v956_v14  ;;  %1379 = vpush %v846_v3  ;;  %v936_v16 = vadd.f32 %v935_v5, %v934_v59  ;;  %v914_v21 = vadd.f32 %v913_v10, %v912_v0 }
 0x153   : > { %v946_v1 = vadd.f32 %v945_v8, %v944_v62  ;;  %v924_v11 = vadd.f32 %v923_v6, %v922_v60  ;;  %v980_v17 = vpop.xlane.xlu1 %979  ;;  %v902_v20 = vadd.f32 %v901_v9, %v900_v61 }
 0x154   : > { %v968_v19 = vpop.xlane.xlu0 %967  ;;  %v959_v23 = vrot.slane %v958_v24, 2  ;;  %v981_v25 = vrot.slane %v980_v17, 4  ;;  %v937_v29 = vrot.slane %v936_v16, 1 }
 0x155   : > { %v947_v27 = vrot.slane %v946_v1, 2  ;;  %v969_v26 = vrot.slane %v968_v19, 4  ;;  %1381 = vpush %v902_v20  ;;  %v925_v28 = vrot.slane %v924_v11, 1 }
 0x156   : > { %v982_v30 = vadd.f32 %v981_v25, %v980_v17  ;;  %1383 = vpush %v914_v21  ;;  %v960_v33 = vadd.f32 %v959_v23, %v958_v24  ;;  %v938_v35 = vadd.f32 %v937_v29, %v936_v16 }
 0x157   : > { %v970_v22 = vadd.f32 %v969_v26, %v968_v19  ;;  %v948_v31 = vadd.f32 %v947_v27, %v946_v1  ;;  %v1048_v44 = vpop.xlane.xlu1 %1047  ;;  %v926_v34 = vadd.f32 %v925_v28, %v924_v11 }
 0x158   : > { %v1036_v51 = vpop.xlane.xlu0 %1035  ;;  %v983_v36 = vrot.slane %v982_v30, 2  ;;  %v1049_v38 = vrot.slane %v1048_v44, 4  ;;  %v961_v2 = vrot.slane %v960_v33, 1 }
 0x159   : > { %v971_v37 = vrot.slane %v970_v22, 2  ;;  %v1037_v39 = vrot.slane %v1036_v51, 4  ;;  %1385 = vpush %v926_v34  ;;  %v949_v32 = vrot.slane %v948_v31, 1 }
 0x15a   : > { %v1050_v40 = vadd.f32 %v1049_v38, %v1048_v44  ;;  %1387 = vpush %v938_v35  ;;  %v984_v43 = vadd.f32 %v983_v36, %v982_v30  ;;  %v962_v48 = vadd.f32 %v961_v2, %v960_v33 }
 0x15b   : > { %v1038_v41 = vadd.f32 %v1037_v39, %v1036_v51  ;;  %v972_v42 = vadd.f32 %v971_v37, %v970_v22  ;;  %v1072_v45 = vpop.xlane.xlu1 %1071  ;;  %v950_v47 = vadd.f32 %v949_v32, %v948_v31 }
 0x15c   : > { %v1060_v46 = vpop.xlane.xlu0 %1059  ;;  %v1051_v49 = vrot.slane %v1050_v40, 2  ;;  %v1073_v52 = vrot.slane %v1072_v45, 4  ;;  %v985_v55 = vrot.slane %v984_v43, 1 }
 0x15d   : > { %v1039_v50 = vrot.slane %v1038_v41, 2  ;;  %v1061_v53 = vrot.slane %v1060_v46, 4  ;;  %1389 = vpush %v950_v47  ;;  %v973_v54 = vrot.slane %v972_v42, 1 }
 0x15e   : > { %v1074_v57 = vadd.f32 %v1073_v52, %v1072_v45  ;;  %1391 = vpush %v962_v48  ;;  %v1052_v12 = vadd.f32 %v1051_v49, %v1050_v40  ;;  %v986_v13 = vadd.f32 %v985_v55, %v984_v43 }
 0x15f   : > { %v1062_v58 = vadd.f32 %v1061_v53, %v1060_v46  ;;  %v1040_v56 = vadd.f32 %v1039_v50, %v1038_v41  ;;  %v974_v18 = vadd.f32 %v973_v54, %v972_v42  ;;  %v1114_v15 = vpop.xlane.xlu1 %1113 }
 0x160   : > { %v1092_v4 = vpop.xlane.xlu0 %1091  ;;  %v1075_v59 = vrot.slane %v1074_v57, 2  ;;  %v1053_v14 = vrot.slane %v1052_v12, 1  ;;  %v1115_v62 = vrot.slane %v1114_v15, 4 }
 0x161   : > { %v1063_v60 = vrot.slane %v1062_v58, 2  ;;  %v1093_v61 = vrot.slane %v1092_v4, 4  ;;  %v1041_v0 = vrot.slane %v1040_v56, 1  ;;  %1393 = vpush %v974_v18 }
 0x162   : > { %1395 = vpush %v986_v13  ;;  %v1076_v6 = vadd.f32 %v1075_v59, %v1074_v57  ;;  %v1054_v7 = vadd.f32 %v1053_v14, %v1052_v12  ;;  %v1116_v8 = vadd.f32 %v1115_v62, %v1114_v15 }
 0x163   : > { %v1094_v63 = vmax.f32 %v1092_v4, %v1093_v61  ;;  %v1042_v3 = vadd.f32 %v1041_v0, %v1040_v56  ;;  %v1064_v5 = vadd.f32 %v1063_v60, %v1062_v58  ;;  %v1138_v10 = vpop.xlane.xlu1 %1137 }
 0x164   : > { %v1126_v9 = vpop.xlane.xlu0 %1125  ;;  %v1077_v11 = vrot.slane %v1076_v6, 1  ;;  %v1117_v17 = vrot.slane %v1116_v8, 2  ;;  %v1139_v19 = vrot.slane %v1138_v10, 4 }
 0x165   : > { %v1095_v24 = vrot.slane %v1094_v63, 2  ;;  %1397 = vpush %v1042_v3  ;;  %v1065_v1 = vrot.slane %v1064_v5, 1  ;;  %v1127_v16 = vrot.slane %v1126_v9, 4 }
 0x166   : > { %1399 = vpush %v1054_v7  ;;  %v1078_v21 = vadd.f32 %v1077_v11, %v1076_v6  ;;  %v1140_v25 = vadd.f32 %v1139_v19, %v1138_v10  ;;  %v1118_v26 = vadd.f32 %v1117_v17, %v1116_v8 }
 0x167   : > { %v1066_v20 = vadd.f32 %v1065_v1, %v1064_v5  ;;  %v1096_v23 = vmax.f32 %v1094_v63, %v1095_v24  ;;  %v1128_v27 = vadd.f32 %v1127_v16, %v1126_v9 }
 0x168   : > { %v1141_v30 = vrot.slane %v1140_v25, 2  ;;  %v1119_v22 = vrot.slane %v1118_v26, 1 }
 0x169   : > { %1401 = vpush %v1066_v20  ;;  %v1097_v28 = vrot.slane %v1096_v23, 1  ;;  %v1129_v29 = vrot.slane %v1128_v27, 2 }
 0x16a   : > { %1403 = vpush %v1078_v21  ;;  %v1142_v44 = vadd.f32 %v1141_v30, %v1140_v25  ;;  %v1120_v51 = vadd.f32 %v1119_v22, %v1118_v26 }
 0x16b   : > { %v1098_v31 = vmax.f32 %v1096_v23, %v1097_v28  ;;  %v1130_v33 = vadd.f32 %v1129_v29, %v1128_v27 }
 0x16c   : > { %v1143_v35 = vrot.slane %v1142_v44, 1 }
 0x16d   : > { %1405 = vpush %v1098_v31  ;;  %v1131_v34 = vrot.slane %v1130_v33, 1 }
 0x16e   : > { %1407 = vpush %v1120_v51  ;;  %v1144_v37 = vadd.f32 %v1143_v35, %v1142_v44 }
 0x16f   : > { %v1132_v36 = vadd.f32 %v1131_v34, %v1130_v33 }
 0x171   : > { %1409 = vpush %v1132_v36 }
 0x172   : > { %1411 = vpush %v1144_v37  ;;  %s1362_s21 = spop %1361 }
 0x173   : > { %v740_v40 = vstv %s1362_s21 }
 0x176   : > { %s2050_s13 = spop %1363 }
 0x177   : > { %s1366_s7 = spop %1365  ;;  %v752_v53 = vstv %s2050_s13 }
 0x178   : > { %v764_v38 = vstv %s1366_s7  ;;  %s1368_s27 = spop %1367 }
 0x179   : > { %v776_v39 = vstv %s1368_s27  ;;  %vm855_vm0 = vcmp.ne.f32.partialorder %v764_v38, 0.0 }
 0x17a   : > { %v850_v32 = vadd.f32 %v776_v39, %v764_v38  ;;  %s1370_s28 = spop %1369  ;;  %vm864_vm8 = vcmp.ne.f32.partialorder %v776_v39, 0.0 }
 0x17b   : > { %v2052_v2 = vstv %s1370_s28  ;;  %s2054_s6 = spop %1371 }
 0x17c   : > { %v851_v41 = vadd.f32 %v850_v32, %v2052_v2  ;;  %v800_v42 = vstv %s2054_s6  ;;  %vm873_vm9 = vcmp.ne.f32.partialorder %v2052_v2, 0.0 }
 0x17d   : > { %v849_v43 = vadd.f32 %v800_v42, %v740_v40 }
 0x17e   : > { %s2060_s14 = spop %1373 }
 0x17f   : > { %v852_v45 = vadd.f32 %v851_v41, %v849_v43  ;;  %s2062_s16 = spop %1375  ;;  %vm882_vm10 = vcmp.ne.f32.partialorder %v849_v43, 0.0  ;;  %v812_v32 = vstv %s2060_s14 }
 0x181   : > { %1516 = vrcp.f32 %v852_v45 }
 0x182   : > { %s2064_s18 = spop %1377 }
 0x183   : > { %s2066_s26 = spop %1379 }
 0x186   : > { %s1382_s9 = spop %1381 }
 0x187   : > { %s1384_s12 = spop %1383  ;;  %v2068_v46 = vstv %s1382_s9 }
 0x188   : > { %v2070_v47 = vstv %s1384_s12  ;;  %vm995_vm11 = vcmp.ne.f32.partialorder %v2068_v46, 0.0 }
 0x189   : > { %v990_v49 = vadd.f32 %v2070_v47, %v2068_v46  ;;  %vm1004_vm12 = vcmp.ne.f32.partialorder %v2070_v47, 0.0 }
 0x18a   : > { %s1386_s11 = spop %1385 }
 0x18b   : > { %v2072_v48 = vstv %s1386_s11  ;;  %s2074_s8 = spop %1387  ;;  %v1517_v50 = vpop.eup %1516 }
 0x18c   : > { %v940_v52 = vstv %s2074_s8  ;;  %v991_v54 = vadd.f32 %v990_v49, %v2072_v48  ;;  %v854_v57 = vmul.f32 %v1517_v50, %v764_v38  ;;  %v863_v58 = vmul.f32 %v1517_v50, %v776_v39 }
 0x18d   : > { %v989_v55 = vadd.f32 %v940_v52, %v752_v53  ;;  %v872_v18 = vmul.f32 %v1517_v50, %v2052_v2  ;;  %v881_v59 = vmul.f32 %v1517_v50, %v849_v43  ;;  %vm1013_vm13 = vcmp.ne.f32.partialorder %v2072_v48, 0.0 }
 0x18e   : > { %s2083_s10 = spop %1389  ;;  %v856_v12 = vsub.f32 1.0, %v854_v57  ;;  %v865_v4 = vsub.f32 1.0, %v863_v58 }
 0x18f   : > { %v992_v56 = vadd.f32 %v991_v54, %v989_v55  ;;  %s2085_s15 = spop %1391  ;;  %v874_v60 = vsub.f32 1.0, %v872_v18  ;;  %v883_v14 = vsub.f32 1.0, %v881_v59  ;;  %vm1022_vm14 = vcmp.ne.f32.partialorder %v989_v55, 0.0 }
 0x190   : > { %v857_v13 = vsel %vm855_vm0, %v856_v12, 0.0  ;;  %v866_v15 = vsel %vm864_vm8, %v865_v4, 0.0  ;;  %v952_v45 = vstv %s2083_s10  ;;  %v964_v49 = vstv %s2085_s15 }
 0x191   : > { %1518 = vrcp.f32 %v992_v56  ;;  %v858_v61 = vadd.f32 1.0, %v857_v13  ;;  %v867_v0 = vadd.f32 1.0, %v866_v15  ;;  %v875_v62 = vsel %vm873_vm9, %v874_v60, 0.0 }
 0x192   : > { %s2087_s29 = spop %1393  ;;  %v876_v1 = vadd.f32 1.0, %v875_v62  ;;  %v884_v11 = vsel %vm882_vm10, %v883_v14, 0.0  ;;  %v836_v12 = vstv %s2064_s18 }
 0x193   : > { %s2090_s17 = spop %1395  ;;  %v861_v5 = vmul.f32 %v858_v61, %v764_v38  ;;  %v870_v6 = vmul.f32 %v867_v0, %v776_v39  ;;  %v885_v34 = vadd.f32 1.0, %v884_v11  ;;  %v859_v50 = vmul.f32 %v858_v61, %v812_v32 }
 0x194   : > { %v879_v51 = vmul.f32 %v876_v1, %v2052_v2  ;;  %v824_v2 = vstv %s2062_s16  ;;  %v877_v18 = vmul.f32 %v876_v1, %v836_v12  ;;  %v1157_v1 = vlaneseq }
 0x195   : > { %v871_v23 = vadd.f32 %v870_v6, %v861_v5  ;;  %v888_v43 = vmul.f32 %v885_v34, %v800_v42  ;;  %v868_v54 = vmul.f32 %v867_v0, %v824_v2  ;;  %v848_v6 = vstv %s2066_s26 }
 0x196   : > { %s2092_s21 = spop %1397 }
 0x197   : > { %s2094_s13 = spop %1399  ;;  %v1044_v27 = vstv %s2092_s21  ;;  %v880_v39 = vadd.f32 %v879_v51, %v871_v23  ;;  %v869_v4 = vadd.f32 %v868_v54, %v859_v50 }
 0x198   : > { %v1056_v25 = vstv %s2094_s13 }
 0x199   : > { %v1084_v38 = vadd.f32 %v1056_v25, %v1044_v27  ;;  %v878_v62 = vadd.f32 %v877_v18, %v869_v4 }
 0x19a   : > { %s2096_s7 = spop %1401 }
 0x19b   : > { %s2098_s27 = spop %1403  ;;  %v1519_v3 = vpop.eup %1518  ;;  %v1068_v56 = vstv %s2096_s7 }
 0x19c   : > { %v994_v8 = vmul.f32 %v1519_v3, %v2068_v46  ;;  %v1003_v9 = vmul.f32 %v1519_v3, %v2070_v47  ;;  %v1012_v10 = vmul.f32 %v1519_v3, %v2072_v48  ;;  %v1021_v24 = vmul.f32 %v1519_v3, %v989_v55 }
 0x19d   : > { %v1081_v15 = vmul.f32 %v1068_v56, %v1056_v25  ;;  %v1158_v25 = vand.u32 127, %v1157_v1 }
 0x19e   : > { %s1406_s28 = spop %1405  ;;  %v996_v17 = vsub.f32 1.0, %v994_v8  ;;  %v1005_v19 = vsub.f32 1.0, %v1003_v9  ;;  %v1014_v20 = vsub.f32 1.0, %v1012_v10  ;;  %v1023_v21 = vsub.f32 1.0, %v1021_v24 }
 0x19f   : > { %v1100_v63 = vstv %s1406_s28  ;;  %s2131_s6 = spop %1407  ;;  %v886_v9 = vmul.f32 %v885_v34, %v848_v6  ;;  %vm1161_vm2 = vcmp.eq.s32.totalorder %v1158_v25, 1  ;;  %vm1159_vm3 = vcmp.eq.s32.totalorder %v1158_v25, 0 }
 0x1a0   : > { %v1101_v7 = vmul.f32 2.0, %v1100_v63  ;;  %v997_v28 = vsel %vm995_vm11, %v996_v17, 0.0  ;;  %v1006_v29 = vsel %vm1004_vm12, %v1005_v19, 0.0  ;;  %v1015_v30 = vsel %vm1013_vm13, %v1014_v20, 0.0 }
 0x1a1   : > { %v1024_v22 = vsel %vm1022_vm14, %v1023_v21, 0.0  ;;  %v998_v31 = vadd.f32 1.0, %v997_v28  ;;  %v1007_v33 = vadd.f32 1.0, %v1006_v29  ;;  %v1016_v44 = vadd.f32 1.0, %v1015_v30 }
 0x1a2   : > { %v1102_v16 = vmul.f32 %v1101_v7, %v1100_v63  ;;  %v1025_v37 = vadd.f32 1.0, %v1024_v22  ;;  %s1410_s14 = spop %1409  ;;  %v988_v7 = vstv %s2090_s17  ;;  %vm1164_vm4 = vcmp.eq.s32.totalorder %v1158_v25, 2 }
 0x1a3   : > { %v1001_v35 = vmul.f32 %v998_v31, %v2068_v46  ;;  %v1010_v36 = vmul.f32 %v1007_v33, %v2070_v47  ;;  %v1019_v41 = vmul.f32 %v1016_v44, %v2072_v48  ;;  %v889_v47 = vadd.f32 %v888_v43, %v880_v39  ;;  %s2134_s16 = spop %1411 }
 0x1a4   : > { %v1103_v26 = vadd.f32 1e-06, %v1102_v16  ;;  %v1028_v46 = vmul.f32 %v1025_v37, %v940_v52  ;;  %v999_v55 = vmul.f32 %v998_v31, %v952_v45  ;;  %v1008_v57 = vmul.f32 %v1007_v33, %v964_v49 }
 0x1a5   : > { %v1011_v40 = vadd.f32 %v1010_v36, %v1001_v35  ;;  %v1080_v48 = vstv %s2098_s27  ;;  %v976_v52 = vstv %s2087_s29  ;;  %v1146_v8 = vstv %s2134_s16 }
 0x1a6   : > { %1520 = vrsqrt.f32 %v1103_v26  ;;  %v1009_v13 = vadd.f32 %v1008_v57, %v999_v55  ;;  %v1017_v60 = vmul.f32 %v1016_v44, %v976_v52  ;;  %v1082_v61 = vmul.f32 %v1080_v48, %v1044_v27 }
 0x1a7   : > { %v1020_v53 = vadd.f32 %v1019_v41, %v1011_v40  ;;  %1522 = vrcp.f32 %v1084_v38  ;;  %vm1106_vm15 = vcmp.eq.f32.partialorder %v1103_v26, inf  ;;  %v1109_v0 = vand.u32 2147483648, %v1103_v26 }
 0x1a8   : > { %1524 = vrcp.f32 %v889_v47  ;;  %vm1108_vm1 = vcmp.eq.f32.partialorder %v1103_v26, 0.0  ;;  %v1018_v63 = vadd.f32 %v1017_v60, %v1009_v13  ;;  %v1026_v10 = vmul.f32 %v1025_v37, %v988_v7 }
 0x1a9   : > { %v1029_v58 = vadd.f32 %v1028_v46, %v1020_v53  ;;  %v1083_v24 = vadd.f32 %v1082_v61, %v1081_v15  ;;  %v1134_v11 = vstv %s1410_s14  ;;  %v887_v16 = vadd.f32 %v886_v9, %v878_v62 }
 0x1aa   : > { %v1027_v17 = vadd.f32 %v1026_v10, %v1018_v63  ;;  %v1147_v20 = vsub.f32 2048.0, %v1146_v8  ;;  %v1150_v23 = vmul.f32 2.0, %v1134_v11  ;;  %vm1167_vm5 = vcmp.eq.s32.totalorder %v1158_v25, 3 }
 0x1ab   : > { %1526 = vrcp.f32 %v1029_v58  ;;  %v890_v28 = vsub.f32 0.0, %v887_v16 }
 0x1ac   : > { %v1030_v29 = vsub.f32 0.0, %v1027_v17  ;;  %v1148_v22 = vmul.f32 0.0007071066, %v1147_v20 }
 0x1ae   : > { %v1149_v35 = vsub.f32 %v1146_v8, %v1148_v22 }
 0x1b0   : > { %v1521_v42 = vpop.eup %1520 }
 0x1b1   : > { %v1105_v59 = vmul.f32 %v1521_v42, %v1103_v26  ;;  %v1523_v5 = vpop.eup %1522 }
 0x1b2   : > { %v1086_v19 = vmul.f32 %v1523_v5, %v1083_v24  ;;  %v1525_v21 = vpop.eup %1524 }
 0x1b3   : > { %v1107_v14 = vsel %vm1106_vm15, %v1103_v26, %v1105_v59  ;;  %v1122_v26 = vstv %s2131_s6  ;;  %v892_v31 = vmul.f32 %v1525_v21, %v890_v28 }
 0x1b4   : > { %v1110_v3 = vsel %vm1108_vm1, %v1109_v0, %v1107_v14  ;;  %v1088_v30 = vmul.f32 0.001953125, %v1086_v19  ;;  %v1151_v44 = vsub.f32 %v1122_v26, %v1150_v23 }
 0x1b5   : > { %1528 = vrcp.f32 %v1110_v3  ;;  %v1527_v27 = vpop.eup %1526  ;;  %v1160_v37 = vsel %vm1159_vm3, %v892_v31, 0.0 }
 0x1b6   : > { %v1032_v33 = vmul.f32 %v1527_v27, %v1030_v29  ;;  %v1162_v34 = vsel %vm1161_vm2, %v1088_v30, 0.0 }
 0x1b7   : > { %v1163_v32 = vadd.f32 %v1162_v34, %v1160_v37 }
 0x1b8   : > { %v1165_v38 = vsel %vm1164_vm4, %v1032_v33, 0.0 }
 0x1b9   : > { %v1166_v41 = vadd.f32 %v1165_v38, %v1163_v32 }
 0x1bf   : > { %v1529_v51 = vpop.eup %1528 }
 0x1c0   : > { %v1153_v36 = vmul.f32 %v1529_v51, %v1151_v44 }
 0x1c2   : > { %v1154_v39 = vadd.f32 %v1153_v36, %v1149_v35 }
 0x1c4   : > { %v1156_v40 = vmul.f32 0.00048828125, %v1154_v39 }
 0x1c6   : > { %v1168_v43 = vsel %vm1167_vm5, %v1156_v40, 0.0 }
 0x1c7   : > { %v1169_v2 = vadd.f32 %v1168_v43, %v1166_v41 }
 0x1c9   : > { %1170 = vst [vmem:[#allocation21] sm:$0x1] %v1169_v2 }
 0x1ca PF: > { %p2142_p8 = scmp.eq.s32.totalorder %s1309_s24, 1  ;;  %s1682_s26 = smov [#allocation21]  }
 0x1cb   : > { %s1178_s9 = sshll.u32 %s1682_s26, 4  ;;  %s1179_s9 = int_to_ptr.vmem [resolvable:$true] %s1178_s9 }
 0x1cc   : > { %s1590_s12 = scalar_lea.vmem %s1179_s9, 16  ;;  %s1596_s11 = scalar_lea.vmem %s1179_s9, 32 }
 0x1cd   : > { %p1591_p1 = scmp.ne.s32.totalorder %s1179_s9, %s1590_s12  ;;  %p1597_p3 = scmp.lt.s32.totalorder %s1179_s9, %s1179_s9 }
 0x1ce   : > { %p1598_p5 = scmp.lt.s32.totalorder %s1596_s11, %s1590_s12 }
 0x1cf   : > { %p1592_p2 = pnand %p1591_p1, %p2142_p8 }
 0x1d0   : > { %p1599_p6 = por %p1598_p5, %p1597_p3 }
 0x1d1   : > { %p1593_p13 = pneg %p1592_p2 }
 0x1d3   : > { %p1600_p10 = pnand %p1599_p6, %p1593_p13 }
 0x1d5   : > { %1603 = shalt.err (!%p1600_p10)
}
 0x1d6   : > { %s1604_s10 = scalar_lea.hbm %s2191_s5, 16 }
 0x1d7   : > { %p1605_p12 = scmp.ne.s32.totalorder %s2191_s5, %s1604_s10  ;;  %p1610_p9 = scmp.lt.u32.totalorder %s1604_s10, %s2191_s5 }
 0x1d9   : > { %p1606_p0 = pnand %p1605_p12, %p2142_p8 }
 0x1db   : > { %p1607_p7 = pneg %p1606_p0 }
 0x1dd   : > { %p1612_p11 = pnand %p1610_p9, %p1607_p7 }
 0x1df   : > { %1615 = shalt.err (!%p1612_p11)
}
 0x1e0   : > { %1418 = dma.vmem_to_hbm [thread:$0]  (%p2142_p8), %s1179_s9, 16, %s2191_s5, [#allocation18]  }
 0x1e1   : > { %1649 = dma.done.wait (%p2142_p8), [#allocation18], 16  }
 0x1e2   : > { %1651 = vsyncadd (%p2142_p8), [#allocation18], 4294967280 }
 0x1e3 PF: > { %s22_s23 = sadd.s32 1, %s1674_s23   ;;  %s2199_s18 = smov %s1658_s19 }
 0x1e4   : > { %p19_p4 = scmp.ge.s32.totalorder %s22_s23, 4   ;;  %s2200_s19 = smov %s1662_s20 }
 0x1e5   : > { %s2201_s20 = smov %s1764_s30  ;;  %s2202_s21 = smov %s1670_s22 }
 0x1e6   : > { %s2203_s22 = smov %s2205_s25  ;;  %21 = sbr.rel (!%p19_p4) target bundleno = 7 (0x7), region = 129 }
 0x1ed   :  { %1191 = vsyncpa [#allocation17], 1 }
 0x1ee   :  { %1193 = vsyncpa [#allocation17 + $0x1], 1 }
 0x1ef   :  { %1194 = vsyncpa [#allocation20], 1 }
 0x1f0   :  { %1196 = vsyncpa [#allocation20 + $0x1], 1 }
 0x1f1   :  { %1197 = vsyncpa [#allocation18], 1 }
 0x1f2   :  { %1199 = vsyncpa [#allocation18 + $0x1], 1 }

</bundles_post_ra>
